<compile_context>
chip_gen: v7x
topology: tpu7x:2x2x1
jax: 0.10.0
libtpu: 0.0.40
codegen_flags: <defaults>
</compile_context>

<pallas_src>
import math
import jax
import jax.numpy as jnp
from jax.experimental import pallas as pl
from jax.experimental.pallas import tpu as pltpu

EPS = 1e-5
F = 128               # lane-dense padded feature width (hidden dim <= 128)


# ------------------------------ fused kernel --------------------------------

def _make_fused_kernel(*, B, N, etn, pstep, start_idx, has_er, has_et,
                       compute_node, compute_edge, node_dim_out, edge_dim_out, idx):
    BN, BNN = B * N, B * N * N

    def kernel(*refs):
        x_ref, w_ref, w2_ref, v_ref = refs[:4]
        k = 4
        er_ref = et_ref = None
        if has_er:
            er_ref = refs[k]; k += 1
        if has_et:
            et_ref = refs[k]; k += 1
        outs = refs[k:]

        def W(name):                      # (F, F) bf16 weight block
            return w_ref[pl.ds(idx[name] * F, F), :]

        def W2(name):                     # (F, 2F) bf16 fused [W_r | W_s] block
            return w2_ref[pl.ds(idx[name] * F, F), :]

        def V(name):                      # (1, F) f32 bias / gamma / beta row
            return v_ref[pl.ds(idx[name], 1), :]

        def mxu(a, b):                    # bf16 MXU inputs, f32 accumulation
            return jnp.dot(a, b, preferred_element_type=jnp.float32)

        def bf(a):
            return a.astype(jnp.bfloat16)

        def bn(h, gname, bname):
            # BatchNorm1d (training mode): shifted two-pass batch stats, f32 math.
            m = jnp.mean(h, axis=0, keepdims=True)
            c = h - m
            var = jnp.mean(c * c, axis=0, keepdims=True)
            return c * jax.lax.rsqrt(var + EPS) * V(gname) + V(bname)

        # ---- block-structured receiver/sender expansion & aggregation (exact f32) ----
        # edge row e = (b*N + i)*N + j ; receiver node = (b, i), sender node = (b, j).
        def expand_recv(a):               # (BN,F) -> (BNN,F): repeat each node row N times
            return jnp.broadcast_to(a[:, None, :], (BN, N, F)).reshape(BNN, F)

        def expand_send(a):               # (BN,F) -> (BNN,F): tile each batch block N times
            a4 = a.reshape(B, 1, N, F)
            return jnp.broadcast_to(a4, (B, N, N, F)).reshape(BNN, F)

        def agg_send(e):                  # (BNN,F) -> (BN,F): sum over senders j
            return e.reshape(BN, N, F).sum(axis=1)

        x_bf = bf(x_ref[...])             # node features, cast to bf16 once
        er_bf = er_ref[...] if has_er else None   # already bf16 from the wrapper

        if has_et:
            et_all = et_ref[...]
            # full-lane per-type masks built once, reused by every (step, type) pair
            et_b = {t: jnp.broadcast_to(et_all[:, t:t + 1], (BNN, F))
                    for t in range(start_idx, etn)}

        # ---- node encoder: Linear -> ReLU -> BN ----
        node_enc = bn(jnp.maximum(mxu(x_bf, W('ne_w')) + V('ne_b'), 0.0),
                      'ne_g', 'ne_be')
        node_enc_bf = bf(node_enc)

        # ---- edge encoders: node terms computed at BN rows, expanded exactly ----
        edge_enc = None
        for t in range(start_idx, etn):
            rs = mxu(x_bf, W2(('ee_wrs', t)))                 # (BN, 2F), one fused matmul
            pre = expand_recv(rs[:, :F]) + expand_send(rs[:, F:]) + V(('ee_b', t))
            if has_er:
                pre = pre + mxu(er_bf, W(('ee_we', t)))
            h = bn(jnp.maximum(pre, 0.0), ('ee_g', t), ('ee_be', t))
            if has_et:
                h = h * et_b[t]
            edge_enc = h if edge_enc is None else edge_enc + h

        # ---- propagation steps ----
        node_effect = node_enc
        edge_effect = edge_enc
        for i in range(pstep):
            ne_bf = bf(node_effect)       # one cast per step, reused across edge types
            ee_bf = bf(edge_effect)
            new_edge = None
            for t in range(start_idx, etn):
                rs = mxu(ne_bf, W2(('ep_wrs', i, t)))         # (BN, 2F)
                pre = (expand_recv(rs[:, :F]) + expand_send(rs[:, F:])
                       + mxu(ee_bf, W(('ep_we', i, t))) + V(('ep_b1', i, t)))
                h = jnp.maximum(pre, 0.0)
                h = jnp.maximum(mxu(bf(h), W(('ep_w2', i, t))) + V(('ep_b2', i, t)), 0.0)
                h = bn(h, ('ep_g', i, t), ('ep_be', i, t))
                if has_et:
                    h = h * et_b[t]
                new_edge = h if new_edge is None else new_edge + h
            edge_effect = new_edge

            agg = agg_send(edge_effect)                       # exact f32 sender-sum
            pre = (mxu(node_enc_bf, W('np_wa')) + mxu(ne_bf, W('np_wb'))
                   + mxu(bf(agg), W('np_wc')) + V('np_b1'))
            h = jnp.maximum(pre, 0.0)
            h = jnp.maximum(mxu(bf(h), W('np_w2')) + V('np_b2'), 0.0)
            node_effect = bn(h, 'np_g', 'np_be')

        # ---- predictors: exact-width outputs (no padded-slab write amplification) ----
        out_i = 0
        if compute_node:
            h = jnp.maximum(mxu(bf(node_effect), W('npr_wx'))
                            + mxu(node_enc_bf, W('npr_wy')) + V('npr_b1'), 0.0)
            h = bn(h, 'npr_g', 'npr_be')
            pred = mxu(bf(h), W('npr_w2')) + V('npr_b2')
            outs[out_i][...] = pred[:, :node_dim_out]
            out_i += 1
        if compute_edge:
            h = jnp.maximum(mxu(bf(edge_effect), W('epr_wx'))
                            + mxu(bf(edge_enc), W('epr_wy')) + V('epr_b1'), 0.0)
            h = bn(h, 'epr_g', 'epr_be')
            pred = mxu(bf(h), W('epr_w2')) + V('epr_b2')
            outs[out_i][...] = pred[:, :edge_dim_out]

    return kernel


# ----------------------- deterministic parameter init -----------------------

def _linear(key, fan_in, fan_out):
    # PyTorch-style uniform(-1/sqrt(fan_in), 1/sqrt(fan_in)); weight stored (in, out).
    kw, kb = jax.random.split(key)
    bound = 1.0 / math.sqrt(fan_in)
    w = jax.random.uniform(kw, (fan_in, fan_out), jnp.float32, -bound, bound)
    b = jax.random.uniform(kb, (fan_out,), jnp.float32, -bound, bound)
    return w, b


def _bn_params(nf):
    return jnp.ones((nf,), jnp.float32), jnp.zeros((nf,), jnp.float32)


def _pack_params(raw, dims):
    """Pack weights into bf16 slabs: (NW*F, F) single blocks + (NW2*F, 2F) fused
    [W_r | W_s] blocks, plus a (NV, F) f32 bias/gamma/beta slab."""
    nf, din, edim = dims['nf_hidden'], dims['node_dim_in'], dims['edge_dim_in']
    etn, pstep = dims['edge_type_num'], dims['pstep']
    for v in (nf, din, edim, dims['node_dim_out'], dims['edge_dim_out']):
        # TODO(synk): feature dims > 128 would need a tiled-K/N variant of the kernel.
        assert v <= F, "feature dims > 128 not supported by this single-block kernel"

    wblocks, w2blocks, vrows, idx = [], [], [], {}

    def pad_block(w):
        return jnp.zeros((F, F), jnp.float32).at[:w.shape[0], :w.shape[1]].set(w)

    def addw(name, w):
        idx[name] = len(wblocks)
        wblocks.append(pad_block(w))

    def addw2(name, wr, ws):              # fused [W_r | W_s] -> (F, 2F)
        idx[name] = len(w2blocks)
        w2blocks.append(jnp.concatenate([pad_block(wr), pad_block(ws)], axis=1))

    def addv(name, v, fill=0.0):
        idx[name] = len(vrows)
        v = jnp.reshape(v, (-1,))
        vrows.append(jnp.full((F,), fill, jnp.float32).at[:v.shape[0]].set(v))

    w1, b1, g, be = raw['node_encoder']
    addw('ne_w', w1); addv('ne_b', b1); addv('ne_g', g, 1.0); addv('ne_be', be)

    for t in range(etn):
        w1, b1, g, be = raw['edge_encoders'][t]
        addw2(('ee_wrs', t), w1[:din], w1[din:2 * din])
        if edim > 0:
            addw(('ee_we', t), w1[2 * din:])
        addv(('ee_b', t), b1); addv(('ee_g', t), g, 1.0); addv(('ee_be', t), be)

    w1, b1, w2, b2, g, be = raw['node_propagator']
    addw('np_wa', w1[:nf]); addw('np_wb', w1[nf:2 * nf]); addw('np_wc', w1[2 * nf:])
    addv('np_b1', b1); addw('np_w2', w2); addv('np_b2', b2)
    addv('np_g', g, 1.0); addv('np_be', be)

    for i in range(pstep):
        for t in range(etn):
            w1, b1, w2, b2, g, be = raw['edge_propagators'][i][t]
            addw2(('ep_wrs', i, t), w1[:nf], w1[nf:2 * nf])
            addw(('ep_we', i, t), w1[2 * nf:])
            addv(('ep_b1', i, t), b1); addw(('ep_w2', i, t), w2); addv(('ep_b2', i, t), b2)
            addv(('ep_g', i, t), g, 1.0); addv(('ep_be', i, t), be)

    w1, b1, g, be, w2, b2 = raw['node_predictor']
    addw('npr_wx', w1[:nf]); addw('npr_wy', w1[nf:]); addv('npr_b1', b1)
    addv('npr_g', g, 1.0); addv('npr_be', be); addw('npr_w2', w2); addv('npr_b2', b2)

    w1, b1, g, be, w2, b2 = raw['edge_predictor']
    addw('epr_wx', w1[:nf]); addw('epr_wy', w1[nf:]); addv('epr_b1', b1)
    addv('epr_g', g, 1.0); addv('epr_be', be); addw('epr_w2', w2); addv('epr_b2', b2)

    wslab = jnp.concatenate(wblocks, axis=0).astype(jnp.bfloat16)
    wslab2 = jnp.concatenate(w2blocks, axis=0).astype(jnp.bfloat16)
    vslab = jnp.stack(vrows, axis=0)
    return wslab, wslab2, vslab, idx


def init_propnet_params(key, node_dim_in, edge_dim_in, nf_hidden, node_dim_out,
                        edge_dim_out, edge_type_num=1, pstep=2):
    n_lin = 1 + edge_type_num + 2 + 2 * pstep * edge_type_num + 2 + 2
    ki = iter(jax.random.split(key, n_lin))
    raw = {}
    raw['node_encoder'] = _linear(next(ki), node_dim_in, nf_hidden) + _bn_params(nf_hidden)
    raw['edge_encoders'] = [
        _linear(next(ki), node_dim_in * 2 + edge_dim_in, nf_hidden) + _bn_params(nf_hidden)
        for _ in range(edge_type_num)]
    w1, b1 = _linear(next(ki), nf_hidden * 3, nf_hidden)
    w2, b2 = _linear(next(ki), nf_hidden, nf_hidden)
    raw['node_propagator'] = (w1, b1, w2, b2) + _bn_params(nf_hidden)
    raw['edge_propagators'] = []
    for _ in range(pstep):
        step = []
        for _ in range(edge_type_num):
            w1, b1 = _linear(next(ki), nf_hidden * 3, nf_hidden)
            w2, b2 = _linear(next(ki), nf_hidden, nf_hidden)
            step.append((w1, b1, w2, b2) + _bn_params(nf_hidden))
        raw['edge_propagators'].append(step)
    w1, b1 = _linear(next(ki), nf_hidden * 2, nf_hidden)
    w2, b2 = _linear(next(ki), nf_hidden, node_dim_out)
    raw['node_predictor'] = (w1, b1) + _bn_params(nf_hidden) + (w2, b2)
    w1, b1 = _linear(next(ki), nf_hidden * 2, nf_hidden)
    w2, b2 = _linear(next(ki), nf_hidden, edge_dim_out)
    raw['edge_predictor'] = (w1, b1) + _bn_params(nf_hidden) + (w2, b2)

    dims = dict(node_dim_in=node_dim_in, edge_dim_in=edge_dim_in, nf_hidden=nf_hidden,
                node_dim_out=node_dim_out, edge_dim_out=edge_dim_out,
                edge_type_num=edge_type_num, pstep=pstep)
    wslab, wslab2, vslab, idx = _pack_params(raw, dims)
    return {'dims': dims, 'wslab': wslab, 'wslab2': wslab2, 'vslab': vslab, 'idx': idx}


# ------------------------------- forward pass --------------------------------

def propnet_forward(params, node_rep, edge_rep=None, edge_type=None,
                    start_idx=0, ignore_node=False, ignore_edge=False):
    d = params['dims']
    etn, pstep = d['edge_type_num'], d['pstep']
    node_dim_out, edge_dim_out = d['node_dim_out'], d['edge_dim_out']
    B, N, din = node_rep.shape
    # TODO(synk): general N needs N padded to a multiple of 8 plus row-masked BN stats.
    assert N % 8 == 0, "in-kernel broadcast/reshape expansion requires N % 8 == 0"
    BN, BNN = B * N, B * N * N

    # lane-dense padded node features (f32; cast to bf16 once inside the kernel)
    x = jnp.zeros((BN, F), jnp.float32).at[:, :din].set(
        node_rep.reshape(BN, din).astype(jnp.float32))

    args = [x, params['wslab'], params['wslab2'], params['vslab']]

    has_er = edge_rep is not None
    has_et = edge_type is not None
    if has_er:
        er = edge_rep.reshape(BNN, -1)
        args.append(jnp.zeros((BNN, F), jnp.bfloat16)
                    .at[:, :er.shape[1]].set(er.astype(jnp.bfloat16)))
    if has_et:
        et = edge_type.reshape(BNN, etn).astype(jnp.float32)
        args.append(jnp.zeros((BNN, F), jnp.float32).at[:, :etn].set(et))

    if ignore_node:
        compute_node, compute_edge = False, True
    elif ignore_edge:
        compute_node, compute_edge = True, False
    else:
        compute_node, compute_edge = True, True

    out_shapes = []
    if compute_node:
        out_shapes.append(jax.ShapeDtypeStruct((BN, node_dim_out), jnp.float32))
    if compute_edge:
        out_shapes.append(jax.ShapeDtypeStruct((BNN, edge_dim_out), jnp.float32))

    kernel = _make_fused_kernel(
        B=B, N=N, etn=etn, pstep=pstep, start_idx=start_idx,
        has_er=has_er, has_et=has_et,
        compute_node=compute_node, compute_edge=compute_edge,
        node_dim_out=node_dim_out, edge_dim_out=edge_dim_out, idx=params['idx'])

    # VMEM budget: weights + generous bound on live activations; capped at 64 MiB so the
    # same setting is valid on v7x. Raise toward ~100 MiB on v5e/v6e for larger problems.
    w_bytes = (params['wslab'].size + params['wslab2'].size) * 2 + params['vslab'].size * 4
    act_bytes = BNN * F * 4 * 10 + BN * F * 4 * 8
    vmem_limit = int(min(max(2 * (w_bytes + act_bytes), 32 << 20), 64 << 20))

    outs = pl.pallas_call(
        kernel,
        out_shape=tuple(out_shapes),
        in_specs=[pl.BlockSpec(memory_space=pltpu.MemorySpace.VMEM)] * len(args),
        out_specs=tuple(pl.BlockSpec(memory_space=pltpu.MemorySpace.VMEM)
                        for _ in out_shapes),
        compiler_params=pltpu.CompilerParams(vmem_limit_bytes=vmem_limit),
    )(*args)

    oi = 0
    node_pred = edge_pred = None
    if compute_node:
        node_pred = outs[oi].reshape(B, N, node_dim_out)
        oi += 1
    if compute_edge:
        edge_pred = outs[oi].reshape(B, N, N, edge_dim_out)

    if ignore_node:
        return edge_pred
    if ignore_edge:
        return node_pred
    return node_pred, edge_pred


# ------------------------------------ main ------------------------------------

if __name__ == "__main__":
    B, N = 2, 8
    node_dim_in, edge_dim_in = 4, 0      # edge_rep=None path => edge encoder input = 2*node_dim_in
    nf_hidden = 32
    node_dim_out, edge_dim_out = 3, 5
    edge_type_num, pstep = 1, 2

    key = jax.random.PRNGKey(0)
    k_x, k_p = jax.random.split(key)
    node_rep = jax.random.normal(k_x, (B, N, node_dim_in), jnp.float32)
    params = init_propnet_params(k_p, node_dim_in, edge_dim_in, nf_hidden,
                                 node_dim_out, edge_dim_out,
                                 edge_type_num=edge_type_num, pstep=pstep)

    node_pred, edge_pred = propnet_forward(params, node_rep)
    node_pred, edge_pred = jax.block_until_ready((node_pred, edge_pred))

    assert node_pred.shape == (B, N, node_dim_out), node_pred.shape
    assert edge_pred.shape == (B, N, N, edge_dim_out), edge_pred.shape
    assert bool(jnp.all(jnp.isfinite(node_pred))) and bool(jnp.all(jnp.isfinite(edge_pred)))
    print("KERNEL_OK")
</pallas_src>

<mosaic_0001>
module attributes {stable_mosaic.version = 11 : i64} {
  func.func @kernel(%arg0: memref<16x128xf32, #tpu.memory_space<vmem>>, %arg1: memref<1920x128xbf16, #tpu.memory_space<vmem>>, %arg2: memref<384x256xbf16, #tpu.memory_space<vmem>>, %arg3: memref<26x128xf32, #tpu.memory_space<vmem>>, %arg4: memref<16x3xf32, #tpu.memory_space<vmem>>, %arg5: memref<128x5xf32, #tpu.memory_space<vmem>>) attributes {dimension_semantics = [], scalar_prefetch = 0 : i64, scratch_operands = 0 : i64, tpu.core_type = #tpu.core_type<tc>} {
    %c0 = arith.constant 0 : index
    %c0_0 = arith.constant 0 : index
    %0 = vector.load %arg0[%c0, %c0_0] : memref<16x128xf32, #tpu.memory_space<vmem>>, vector<16x128xf32>
    %1 = arith.truncf %0 : vector<16x128xf32> to vector<16x128xbf16>
    %c0_1 = arith.constant 0 : index
    %c0_2 = arith.constant 0 : index
    %2 = vector.load %arg1[%c0_1, %c0_2] : memref<1920x128xbf16, #tpu.memory_space<vmem>>, vector<128x128xbf16>
    %cst = arith.constant dense<0.000000e+00> : vector<16x128xf32>
    %3 = tpu.matmul %1, %2, %cst {dimension_numbers = #tpu.dot_dimension_numbers<[1], [0], [0], [1], [0, 0, 1, 1], [], []>} : vector<16x128xbf16>, vector<128x128xbf16>, vector<16x128xf32> -> vector<16x128xf32>
    %c0_3 = arith.constant 0 : index
    %c0_4 = arith.constant 0 : index
    %4 = vector.load %arg3[%c0_3, %c0_4] : memref<26x128xf32, #tpu.memory_space<vmem>>, vector<1x128xf32>
    %5 = vector.broadcast %4 : vector<1x128xf32> to vector<16x128xf32>
    %6 = arith.addf %3, %5 : vector<16x128xf32>
    %cst_5 = arith.constant 0.000000e+00 : f32
    %7 = vector.broadcast %cst_5 : f32 to vector<16x128xf32>
    %8 = arith.maximumf %6, %7 : vector<16x128xf32>
    %cst_6 = arith.constant dense<0.000000e+00> : vector<128xf32>
    %9 = vector.multi_reduction <add>, %8, %cst_6 [0] : vector<16x128xf32> to vector<128xf32>
    %10 = vector.shape_cast %9 : vector<128xf32> to vector<1x128xf32>
    %cst_7 = arith.constant 1.600000e+01 : f32
    %11 = vector.broadcast %cst_7 : f32 to vector<1x128xf32>
    %12 = arith.divf %10, %11 : vector<1x128xf32>
    %13 = vector.broadcast %12 : vector<1x128xf32> to vector<16x128xf32>
    %14 = arith.subf %8, %13 : vector<16x128xf32>
    %15 = arith.mulf %14, %14 : vector<16x128xf32>
    %cst_8 = arith.constant dense<0.000000e+00> : vector<128xf32>
    %16 = vector.multi_reduction <add>, %15, %cst_8 [0] : vector<16x128xf32> to vector<128xf32>
    %17 = vector.shape_cast %16 : vector<128xf32> to vector<1x128xf32>
    %cst_9 = arith.constant 1.600000e+01 : f32
    %18 = vector.broadcast %cst_9 : f32 to vector<1x128xf32>
    %19 = arith.divf %17, %18 : vector<1x128xf32>
    %cst_10 = arith.constant 9.99999974E-6 : f32
    %20 = vector.broadcast %cst_10 : f32 to vector<1x128xf32>
    %21 = arith.addf %19, %20 : vector<1x128xf32>
    %22 = math.rsqrt %21 : vector<1x128xf32>
    %23 = vector.broadcast %22 : vector<1x128xf32> to vector<16x128xf32>
    %24 = arith.mulf %14, %23 : vector<16x128xf32>
    %c1 = arith.constant 1 : index
    %c0_11 = arith.constant 0 : index
    %25 = vector.load %arg3[%c1, %c0_11] : memref<26x128xf32, #tpu.memory_space<vmem>>, vector<1x128xf32>
    %26 = vector.broadcast %25 : vector<1x128xf32> to vector<16x128xf32>
    %27 = arith.mulf %24, %26 : vector<16x128xf32>
    %c2 = arith.constant 2 : index
    %c0_12 = arith.constant 0 : index
    %28 = vector.load %arg3[%c2, %c0_12] : memref<26x128xf32, #tpu.memory_space<vmem>>, vector<1x128xf32>
    %29 = vector.broadcast %28 : vector<1x128xf32> to vector<16x128xf32>
    %30 = arith.addf %27, %29 : vector<16x128xf32>
    %31 = arith.truncf %30 : vector<16x128xf32> to vector<16x128xbf16>
    %c0_13 = arith.constant 0 : index
    %c0_14 = arith.constant 0 : index
    %32 = vector.load %arg2[%c0_13, %c0_14] : memref<384x256xbf16, #tpu.memory_space<vmem>>, vector<128x256xbf16>
    %cst_15 = arith.constant dense<0.000000e+00> : vector<16x256xf32>
    %33 = tpu.matmul %1, %32, %cst_15 {dimension_numbers = #tpu.dot_dimension_numbers<[1], [0], [0], [1], [0, 0, 1, 1], [], []>} : vector<16x128xbf16>, vector<128x256xbf16>, vector<16x256xf32> -> vector<16x256xf32>
    %34 = vector.extract_strided_slice %33 {offsets = [0, 0], sizes = [16, 128], strides = [1, 1]} : vector<16x256xf32> to vector<16x128xf32>
    %35 = vector.shape_cast %34 : vector<16x128xf32> to vector<16x1x128xf32>
    %36 = vector.shape_cast %35 : vector<16x1x128xf32> to vector<16x1x128xf32>
    %37 = vector.broadcast %36 : vector<16x1x128xf32> to vector<16x8x128xf32>
    %38 = vector.shape_cast %37 : vector<16x8x128xf32> to vector<128x128xf32>
    %39 = vector.extract_strided_slice %33 {offsets = [0, 128], sizes = [16, 128], strides = [1, 1]} : vector<16x256xf32> to vector<16x128xf32>
    %40 = vector.shape_cast %39 : vector<16x128xf32> to vector<2x1x8x128xf32>
    %41 = vector.shape_cast %40 : vector<2x1x8x128xf32> to vector<2x1x8x128xf32>
    %42 = vector.broadcast %41 : vector<2x1x8x128xf32> to vector<2x8x8x128xf32>
    %43 = vector.shape_cast %42 : vector<2x8x8x128xf32> to vector<128x128xf32>
    %44 = arith.addf %38, %43 : vector<128x128xf32>
    %c3 = arith.constant 3 : index
    %c0_16 = arith.constant 0 : index
    %45 = vector.load %arg3[%c3, %c0_16] : memref<26x128xf32, #tpu.memory_space<vmem>>, vector<1x128xf32>
    %46 = vector.broadcast %45 : vector<1x128xf32> to vector<128x128xf32>
    %47 = arith.addf %44, %46 : vector<128x128xf32>
    %cst_17 = arith.constant 0.000000e+00 : f32
    %48 = vector.broadcast %cst_17 : f32 to vector<128x128xf32>
    %49 = arith.maximumf %47, %48 : vector<128x128xf32>
    %cst_18 = arith.constant dense<0.000000e+00> : vector<128xf32>
    %50 = vector.multi_reduction <add>, %49, %cst_18 [0] : vector<128x128xf32> to vector<128xf32>
    %51 = vector.shape_cast %50 : vector<128xf32> to vector<1x128xf32>
    %cst_19 = arith.constant 1.280000e+02 : f32
    %52 = vector.broadcast %cst_19 : f32 to vector<1x128xf32>
    %53 = arith.divf %51, %52 : vector<1x128xf32>
    %54 = vector.broadcast %53 : vector<1x128xf32> to vector<128x128xf32>
    %55 = arith.subf %49, %54 : vector<128x128xf32>
    %56 = arith.mulf %55, %55 : vector<128x128xf32>
    %cst_20 = arith.constant dense<0.000000e+00> : vector<128xf32>
    %57 = vector.multi_reduction <add>, %56, %cst_20 [0] : vector<128x128xf32> to vector<128xf32>
    %58 = vector.shape_cast %57 : vector<128xf32> to vector<1x128xf32>
    %cst_21 = arith.constant 1.280000e+02 : f32
    %59 = vector.broadcast %cst_21 : f32 to vector<1x128xf32>
    %60 = arith.divf %58, %59 : vector<1x128xf32>
    %cst_22 = arith.constant 9.99999974E-6 : f32
    %61 = vector.broadcast %cst_22 : f32 to vector<1x128xf32>
    %62 = arith.addf %60, %61 : vector<1x128xf32>
    %63 = math.rsqrt %62 : vector<1x128xf32>
    %64 = vector.broadcast %63 : vector<1x128xf32> to vector<128x128xf32>
    %65 = arith.mulf %55, %64 : vector<128x128xf32>
    %c4 = arith.constant 4 : index
    %c0_23 = arith.constant 0 : index
    %66 = vector.load %arg3[%c4, %c0_23] : memref<26x128xf32, #tpu.memory_space<vmem>>, vector<1x128xf32>
    %67 = vector.broadcast %66 : vector<1x128xf32> to vector<128x128xf32>
    %68 = arith.mulf %65, %67 : vector<128x128xf32>
    %c5 = arith.constant 5 : index
    %c0_24 = arith.constant 0 : index
    %69 = vector.load %arg3[%c5, %c0_24] : memref<26x128xf32, #tpu.memory_space<vmem>>, vector<1x128xf32>
    %70 = vector.broadcast %69 : vector<1x128xf32> to vector<128x128xf32>
    %71 = arith.addf %68, %70 : vector<128x128xf32>
    %72 = arith.truncf %30 : vector<16x128xf32> to vector<16x128xbf16>
    %73 = arith.truncf %71 : vector<128x128xf32> to vector<128x128xbf16>
    %c128 = arith.constant 128 : index
    %c0_25 = arith.constant 0 : index
    %74 = vector.load %arg2[%c128, %c0_25] : memref<384x256xbf16, #tpu.memory_space<vmem>>, vector<128x256xbf16>
    %cst_26 = arith.constant dense<0.000000e+00> : vector<16x256xf32>
    %75 = tpu.matmul %72, %74, %cst_26 {dimension_numbers = #tpu.dot_dimension_numbers<[1], [0], [0], [1], [0, 0, 1, 1], [], []>} : vector<16x128xbf16>, vector<128x256xbf16>, vector<16x256xf32> -> vector<16x256xf32>
    %76 = vector.extract_strided_slice %75 {offsets = [0, 0], sizes = [16, 128], strides = [1, 1]} : vector<16x256xf32> to vector<16x128xf32>
    %77 = vector.shape_cast %76 : vector<16x128xf32> to vector<16x1x128xf32>
    %78 = vector.shape_cast %77 : vector<16x1x128xf32> to vector<16x1x128xf32>
    %79 = vector.broadcast %78 : vector<16x1x128xf32> to vector<16x8x128xf32>
    %80 = vector.shape_cast %79 : vector<16x8x128xf32> to vector<128x128xf32>
    %81 = vector.extract_strided_slice %75 {offsets = [0, 128], sizes = [16, 128], strides = [1, 1]} : vector<16x256xf32> to vector<16x128xf32>
    %82 = vector.shape_cast %81 : vector<16x128xf32> to vector<2x1x8x128xf32>
    %83 = vector.shape_cast %82 : vector<2x1x8x128xf32> to vector<2x1x8x128xf32>
    %84 = vector.broadcast %83 : vector<2x1x8x128xf32> to vector<2x8x8x128xf32>
    %85 = vector.shape_cast %84 : vector<2x8x8x128xf32> to vector<128x128xf32>
    %86 = arith.addf %80, %85 : vector<128x128xf32>
    %c640 = arith.constant 640 : index
    %c0_27 = arith.constant 0 : index
    %87 = vector.load %arg1[%c640, %c0_27] : memref<1920x128xbf16, #tpu.memory_space<vmem>>, vector<128x128xbf16>
    %cst_28 = arith.constant dense<0.000000e+00> : vector<128x128xf32>
    %88 = tpu.matmul %73, %87, %cst_28 {dimension_numbers = #tpu.dot_dimension_numbers<[1], [0], [0], [1], [0, 0, 1, 1], [], []>} : vector<128x128xbf16>, vector<128x128xbf16>, vector<128x128xf32> -> vector<128x128xf32>
    %89 = arith.addf %86, %88 : vector<128x128xf32>
    %c10 = arith.constant 10 : index
    %c0_29 = arith.constant 0 : index
    %90 = vector.load %arg3[%c10, %c0_29] : memref<26x128xf32, #tpu.memory_space<vmem>>, vector<1x128xf32>
    %91 = vector.broadcast %90 : vector<1x128xf32> to vector<128x128xf32>
    %92 = arith.addf %89, %91 : vector<128x128xf32>
    %cst_30 = arith.constant 0.000000e+00 : f32
    %93 = vector.broadcast %cst_30 : f32 to vector<128x128xf32>
    %94 = arith.maximumf %92, %93 : vector<128x128xf32>
    %95 = arith.truncf %94 : vector<128x128xf32> to vector<128x128xbf16>
    %c768 = arith.constant 768 : index
    %c0_31 = arith.constant 0 : index
    %96 = vector.load %arg1[%c768, %c0_31] : memref<1920x128xbf16, #tpu.memory_space<vmem>>, vector<128x128xbf16>
    %cst_32 = arith.constant dense<0.000000e+00> : vector<128x128xf32>
    %97 = tpu.matmul %95, %96, %cst_32 {dimension_numbers = #tpu.dot_dimension_numbers<[1], [0], [0], [1], [0, 0, 1, 1], [], []>} : vector<128x128xbf16>, vector<128x128xbf16>, vector<128x128xf32> -> vector<128x128xf32>
    %c11 = arith.constant 11 : index
    %c0_33 = arith.constant 0 : index
    %98 = vector.load %arg3[%c11, %c0_33] : memref<26x128xf32, #tpu.memory_space<vmem>>, vector<1x128xf32>
    %99 = vector.broadcast %98 : vector<1x128xf32> to vector<128x128xf32>
    %100 = arith.addf %97, %99 : vector<128x128xf32>
    %cst_34 = arith.constant 0.000000e+00 : f32
    %101 = vector.broadcast %cst_34 : f32 to vector<128x128xf32>
    %102 = arith.maximumf %100, %101 : vector<128x128xf32>
    %cst_35 = arith.constant dense<0.000000e+00> : vector<128xf32>
    %103 = vector.multi_reduction <add>, %102, %cst_35 [0] : vector<128x128xf32> to vector<128xf32>
    %104 = vector.shape_cast %103 : vector<128xf32> to vector<1x128xf32>
    %cst_36 = arith.constant 1.280000e+02 : f32
    %105 = vector.broadcast %cst_36 : f32 to vector<1x128xf32>
    %106 = arith.divf %104, %105 : vector<1x128xf32>
    %107 = vector.broadcast %106 : vector<1x128xf32> to vector<128x128xf32>
    %108 = arith.subf %102, %107 : vector<128x128xf32>
    %109 = arith.mulf %108, %108 : vector<128x128xf32>
    %cst_37 = arith.constant dense<0.000000e+00> : vector<128xf32>
    %110 = vector.multi_reduction <add>, %109, %cst_37 [0] : vector<128x128xf32> to vector<128xf32>
    %111 = vector.shape_cast %110 : vector<128xf32> to vector<1x128xf32>
    %cst_38 = arith.constant 1.280000e+02 : f32
    %112 = vector.broadcast %cst_38 : f32 to vector<1x128xf32>
    %113 = arith.divf %111, %112 : vector<1x128xf32>
    %cst_39 = arith.constant 9.99999974E-6 : f32
    %114 = vector.broadcast %cst_39 : f32 to vector<1x128xf32>
    %115 = arith.addf %113, %114 : vector<1x128xf32>
    %116 = math.rsqrt %115 : vector<1x128xf32>
    %117 = vector.broadcast %116 : vector<1x128xf32> to vector<128x128xf32>
    %118 = arith.mulf %108, %117 : vector<128x128xf32>
    %c12 = arith.constant 12 : index
    %c0_40 = arith.constant 0 : index
    %119 = vector.load %arg3[%c12, %c0_40] : memref<26x128xf32, #tpu.memory_space<vmem>>, vector<1x128xf32>
    %120 = vector.broadcast %119 : vector<1x128xf32> to vector<128x128xf32>
    %121 = arith.mulf %118, %120 : vector<128x128xf32>
    %c13 = arith.constant 13 : index
    %c0_41 = arith.constant 0 : index
    %122 = vector.load %arg3[%c13, %c0_41] : memref<26x128xf32, #tpu.memory_space<vmem>>, vector<1x128xf32>
    %123 = vector.broadcast %122 : vector<1x128xf32> to vector<128x128xf32>
    %124 = arith.addf %121, %123 : vector<128x128xf32>
    %125 = vector.shape_cast %124 : vector<128x128xf32> to vector<16x8x128xf32>
    %cst_42 = arith.constant dense<0.000000e+00> : vector<16x128xf32>
    %126 = vector.multi_reduction <add>, %125, %cst_42 [1] : vector<16x8x128xf32> to vector<16x128xf32>
    %c128_43 = arith.constant 128 : index
    %c0_44 = arith.constant 0 : index
    %127 = vector.load %arg1[%c128_43, %c0_44] : memref<1920x128xbf16, #tpu.memory_space<vmem>>, vector<128x128xbf16>
    %cst_45 = arith.constant dense<0.000000e+00> : vector<16x128xf32>
    %128 = tpu.matmul %31, %127, %cst_45 {dimension_numbers = #tpu.dot_dimension_numbers<[1], [0], [0], [1], [0, 0, 1, 1], [], []>} : vector<16x128xbf16>, vector<128x128xbf16>, vector<16x128xf32> -> vector<16x128xf32>
    %c256 = arith.constant 256 : index
    %c0_46 = arith.constant 0 : index
    %129 = vector.load %arg1[%c256, %c0_46] : memref<1920x128xbf16, #tpu.memory_space<vmem>>, vector<128x128xbf16>
    %cst_47 = arith.constant dense<0.000000e+00> : vector<16x128xf32>
    %130 = tpu.matmul %72, %129, %cst_47 {dimension_numbers = #tpu.dot_dimension_numbers<[1], [0], [0], [1], [0, 0, 1, 1], [], []>} : vector<16x128xbf16>, vector<128x128xbf16>, vector<16x128xf32> -> vector<16x128xf32>
    %131 = arith.addf %128, %130 : vector<16x128xf32>
    %132 = arith.truncf %126 : vector<16x128xf32> to vector<16x128xbf16>
    %c384 = arith.constant 384 : index
    %c0_48 = arith.constant 0 : index
    %133 = vector.load %arg1[%c384, %c0_48] : memref<1920x128xbf16, #tpu.memory_space<vmem>>, vector<128x128xbf16>
    %cst_49 = arith.constant dense<0.000000e+00> : vector<16x128xf32>
    %134 = tpu.matmul %132, %133, %cst_49 {dimension_numbers = #tpu.dot_dimension_numbers<[1], [0], [0], [1], [0, 0, 1, 1], [], []>} : vector<16x128xbf16>, vector<128x128xbf16>, vector<16x128xf32> -> vector<16x128xf32>
    %135 = arith.addf %131, %134 : vector<16x128xf32>
    %c6 = arith.constant 6 : index
    %c0_50 = arith.constant 0 : index
    %136 = vector.load %arg3[%c6, %c0_50] : memref<26x128xf32, #tpu.memory_space<vmem>>, vector<1x128xf32>
    %137 = vector.broadcast %136 : vector<1x128xf32> to vector<16x128xf32>
    %138 = arith.addf %135, %137 : vector<16x128xf32>
    %cst_51 = arith.constant 0.000000e+00 : f32
    %139 = vector.broadcast %cst_51 : f32 to vector<16x128xf32>
    %140 = arith.maximumf %138, %139 : vector<16x128xf32>
    %141 = arith.truncf %140 : vector<16x128xf32> to vector<16x128xbf16>
    %c512 = arith.constant 512 : index
    %c0_52 = arith.constant 0 : index
    %142 = vector.load %arg1[%c512, %c0_52] : memref<1920x128xbf16, #tpu.memory_space<vmem>>, vector<128x128xbf16>
    %cst_53 = arith.constant dense<0.000000e+00> : vector<16x128xf32>
    %143 = tpu.matmul %141, %142, %cst_53 {dimension_numbers = #tpu.dot_dimension_numbers<[1], [0], [0], [1], [0, 0, 1, 1], [], []>} : vector<16x128xbf16>, vector<128x128xbf16>, vector<16x128xf32> -> vector<16x128xf32>
    %c7 = arith.constant 7 : index
    %c0_54 = arith.constant 0 : index
    %144 = vector.load %arg3[%c7, %c0_54] : memref<26x128xf32, #tpu.memory_space<vmem>>, vector<1x128xf32>
    %145 = vector.broadcast %144 : vector<1x128xf32> to vector<16x128xf32>
    %146 = arith.addf %143, %145 : vector<16x128xf32>
    %cst_55 = arith.constant 0.000000e+00 : f32
    %147 = vector.broadcast %cst_55 : f32 to vector<16x128xf32>
    %148 = arith.maximumf %146, %147 : vector<16x128xf32>
    %cst_56 = arith.constant dense<0.000000e+00> : vector<128xf32>
    %149 = vector.multi_reduction <add>, %148, %cst_56 [0] : vector<16x128xf32> to vector<128xf32>
    %150 = vector.shape_cast %149 : vector<128xf32> to vector<1x128xf32>
    %cst_57 = arith.constant 1.600000e+01 : f32
    %151 = vector.broadcast %cst_57 : f32 to vector<1x128xf32>
    %152 = arith.divf %150, %151 : vector<1x128xf32>
    %153 = vector.broadcast %152 : vector<1x128xf32> to vector<16x128xf32>
    %154 = arith.subf %148, %153 : vector<16x128xf32>
    %155 = arith.mulf %154, %154 : vector<16x128xf32>
    %cst_58 = arith.constant dense<0.000000e+00> : vector<128xf32>
    %156 = vector.multi_reduction <add>, %155, %cst_58 [0] : vector<16x128xf32> to vector<128xf32>
    %157 = vector.shape_cast %156 : vector<128xf32> to vector<1x128xf32>
    %cst_59 = arith.constant 1.600000e+01 : f32
    %158 = vector.broadcast %cst_59 : f32 to vector<1x128xf32>
    %159 = arith.divf %157, %158 : vector<1x128xf32>
    %cst_60 = arith.constant 9.99999974E-6 : f32
    %160 = vector.broadcast %cst_60 : f32 to vector<1x128xf32>
    %161 = arith.addf %159, %160 : vector<1x128xf32>
    %162 = math.rsqrt %161 : vector<1x128xf32>
    %163 = vector.broadcast %162 : vector<1x128xf32> to vector<16x128xf32>
    %164 = arith.mulf %154, %163 : vector<16x128xf32>
    %c8 = arith.constant 8 : index
    %c0_61 = arith.constant 0 : index
    %165 = vector.load %arg3[%c8, %c0_61] : memref<26x128xf32, #tpu.memory_space<vmem>>, vector<1x128xf32>
    %166 = vector.broadcast %165 : vector<1x128xf32> to vector<16x128xf32>
    %167 = arith.mulf %164, %166 : vector<16x128xf32>
    %c9 = arith.constant 9 : index
    %c0_62 = arith.constant 0 : index
    %168 = vector.load %arg3[%c9, %c0_62] : memref<26x128xf32, #tpu.memory_space<vmem>>, vector<1x128xf32>
    %169 = vector.broadcast %168 : vector<1x128xf32> to vector<16x128xf32>
    %170 = arith.addf %167, %169 : vector<16x128xf32>
    %171 = arith.truncf %170 : vector<16x128xf32> to vector<16x128xbf16>
    %172 = arith.truncf %124 : vector<128x128xf32> to vector<128x128xbf16>
    %c256_63 = arith.constant 256 : index
    %c0_64 = arith.constant 0 : index
    %173 = vector.load %arg2[%c256_63, %c0_64] : memref<384x256xbf16, #tpu.memory_space<vmem>>, vector<128x256xbf16>
    %cst_65 = arith.constant dense<0.000000e+00> : vector<16x256xf32>
    %174 = tpu.matmul %171, %173, %cst_65 {dimension_numbers = #tpu.dot_dimension_numbers<[1], [0], [0], [1], [0, 0, 1, 1], [], []>} : vector<16x128xbf16>, vector<128x256xbf16>, vector<16x256xf32> -> vector<16x256xf32>
    %175 = vector.extract_strided_slice %174 {offsets = [0, 0], sizes = [16, 128], strides = [1, 1]} : vector<16x256xf32> to vector<16x128xf32>
    %176 = vector.shape_cast %175 : vector<16x128xf32> to vector<16x1x128xf32>
    %177 = vector.shape_cast %176 : vector<16x1x128xf32> to vector<16x1x128xf32>
    %178 = vector.broadcast %177 : vector<16x1x128xf32> to vector<16x8x128xf32>
    %179 = vector.shape_cast %178 : vector<16x8x128xf32> to vector<128x128xf32>
    %180 = vector.extract_strided_slice %174 {offsets = [0, 128], sizes = [16, 128], strides = [1, 1]} : vector<16x256xf32> to vector<16x128xf32>
    %181 = vector.shape_cast %180 : vector<16x128xf32> to vector<2x1x8x128xf32>
    %182 = vector.shape_cast %181 : vector<2x1x8x128xf32> to vector<2x1x8x128xf32>
    %183 = vector.broadcast %182 : vector<2x1x8x128xf32> to vector<2x8x8x128xf32>
    %184 = vector.shape_cast %183 : vector<2x8x8x128xf32> to vector<128x128xf32>
    %185 = arith.addf %179, %184 : vector<128x128xf32>
    %c896 = arith.constant 896 : index
    %c0_66 = arith.constant 0 : index
    %186 = vector.load %arg1[%c896, %c0_66] : memref<1920x128xbf16, #tpu.memory_space<vmem>>, vector<128x128xbf16>
    %cst_67 = arith.constant dense<0.000000e+00> : vector<128x128xf32>
    %187 = tpu.matmul %172, %186, %cst_67 {dimension_numbers = #tpu.dot_dimension_numbers<[1], [0], [0], [1], [0, 0, 1, 1], [], []>} : vector<128x128xbf16>, vector<128x128xbf16>, vector<128x128xf32> -> vector<128x128xf32>
    %188 = arith.addf %185, %187 : vector<128x128xf32>
    %c14 = arith.constant 14 : index
    %c0_68 = arith.constant 0 : index
    %189 = vector.load %arg3[%c14, %c0_68] : memref<26x128xf32, #tpu.memory_space<vmem>>, vector<1x128xf32>
    %190 = vector.broadcast %189 : vector<1x128xf32> to vector<128x128xf32>
    %191 = arith.addf %188, %190 : vector<128x128xf32>
    %cst_69 = arith.constant 0.000000e+00 : f32
    %192 = vector.broadcast %cst_69 : f32 to vector<128x128xf32>
    %193 = arith.maximumf %191, %192 : vector<128x128xf32>
    %194 = arith.truncf %193 : vector<128x128xf32> to vector<128x128xbf16>
    %c1024 = arith.constant 1024 : index
    %c0_70 = arith.constant 0 : index
    %195 = vector.load %arg1[%c1024, %c0_70] : memref<1920x128xbf16, #tpu.memory_space<vmem>>, vector<128x128xbf16>
    %cst_71 = arith.constant dense<0.000000e+00> : vector<128x128xf32>
    %196 = tpu.matmul %194, %195, %cst_71 {dimension_numbers = #tpu.dot_dimension_numbers<[1], [0], [0], [1], [0, 0, 1, 1], [], []>} : vector<128x128xbf16>, vector<128x128xbf16>, vector<128x128xf32> -> vector<128x128xf32>
    %c15 = arith.constant 15 : index
    %c0_72 = arith.constant 0 : index
    %197 = vector.load %arg3[%c15, %c0_72] : memref<26x128xf32, #tpu.memory_space<vmem>>, vector<1x128xf32>
    %198 = vector.broadcast %197 : vector<1x128xf32> to vector<128x128xf32>
    %199 = arith.addf %196, %198 : vector<128x128xf32>
    %cst_73 = arith.constant 0.000000e+00 : f32
    %200 = vector.broadcast %cst_73 : f32 to vector<128x128xf32>
    %201 = arith.maximumf %199, %200 : vector<128x128xf32>
    %cst_74 = arith.constant dense<0.000000e+00> : vector<128xf32>
    %202 = vector.multi_reduction <add>, %201, %cst_74 [0] : vector<128x128xf32> to vector<128xf32>
    %203 = vector.shape_cast %202 : vector<128xf32> to vector<1x128xf32>
    %cst_75 = arith.constant 1.280000e+02 : f32
    %204 = vector.broadcast %cst_75 : f32 to vector<1x128xf32>
    %205 = arith.divf %203, %204 : vector<1x128xf32>
    %206 = vector.broadcast %205 : vector<1x128xf32> to vector<128x128xf32>
    %207 = arith.subf %201, %206 : vector<128x128xf32>
    %208 = arith.mulf %207, %207 : vector<128x128xf32>
    %cst_76 = arith.constant dense<0.000000e+00> : vector<128xf32>
    %209 = vector.multi_reduction <add>, %208, %cst_76 [0] : vector<128x128xf32> to vector<128xf32>
    %210 = vector.shape_cast %209 : vector<128xf32> to vector<1x128xf32>
    %cst_77 = arith.constant 1.280000e+02 : f32
    %211 = vector.broadcast %cst_77 : f32 to vector<1x128xf32>
    %212 = arith.divf %210, %211 : vector<1x128xf32>
    %cst_78 = arith.constant 9.99999974E-6 : f32
    %213 = vector.broadcast %cst_78 : f32 to vector<1x128xf32>
    %214 = arith.addf %212, %213 : vector<1x128xf32>
    %215 = math.rsqrt %214 : vector<1x128xf32>
    %216 = vector.broadcast %215 : vector<1x128xf32> to vector<128x128xf32>
    %217 = arith.mulf %207, %216 : vector<128x128xf32>
    %c16 = arith.constant 16 : index
    %c0_79 = arith.constant 0 : index
    %218 = vector.load %arg3[%c16, %c0_79] : memref<26x128xf32, #tpu.memory_space<vmem>>, vector<1x128xf32>
    %219 = vector.broadcast %218 : vector<1x128xf32> to vector<128x128xf32>
    %220 = arith.mulf %217, %219 : vector<128x128xf32>
    %c17 = arith.constant 17 : index
    %c0_80 = arith.constant 0 : index
    %221 = vector.load %arg3[%c17, %c0_80] : memref<26x128xf32, #tpu.memory_space<vmem>>, vector<1x128xf32>
    %222 = vector.broadcast %221 : vector<1x128xf32> to vector<128x128xf32>
    %223 = arith.addf %220, %222 : vector<128x128xf32>
    %224 = vector.shape_cast %223 : vector<128x128xf32> to vector<16x8x128xf32>
    %cst_81 = arith.constant dense<0.000000e+00> : vector<16x128xf32>
    %225 = vector.multi_reduction <add>, %224, %cst_81 [1] : vector<16x8x128xf32> to vector<16x128xf32>
    %c128_82 = arith.constant 128 : index
    %c0_83 = arith.constant 0 : index
    %226 = vector.load %arg1[%c128_82, %c0_83] : memref<1920x128xbf16, #tpu.memory_space<vmem>>, vector<128x128xbf16>
    %cst_84 = arith.constant dense<0.000000e+00> : vector<16x128xf32>
    %227 = tpu.matmul %31, %226, %cst_84 {dimension_numbers = #tpu.dot_dimension_numbers<[1], [0], [0], [1], [0, 0, 1, 1], [], []>} : vector<16x128xbf16>, vector<128x128xbf16>, vector<16x128xf32> -> vector<16x128xf32>
    %c256_85 = arith.constant 256 : index
    %c0_86 = arith.constant 0 : index
    %228 = vector.load %arg1[%c256_85, %c0_86] : memref<1920x128xbf16, #tpu.memory_space<vmem>>, vector<128x128xbf16>
    %cst_87 = arith.constant dense<0.000000e+00> : vector<16x128xf32>
    %229 = tpu.matmul %171, %228, %cst_87 {dimension_numbers = #tpu.dot_dimension_numbers<[1], [0], [0], [1], [0, 0, 1, 1], [], []>} : vector<16x128xbf16>, vector<128x128xbf16>, vector<16x128xf32> -> vector<16x128xf32>
    %230 = arith.addf %227, %229 : vector<16x128xf32>
    %231 = arith.truncf %225 : vector<16x128xf32> to vector<16x128xbf16>
    %c384_88 = arith.constant 384 : index
    %c0_89 = arith.constant 0 : index
    %232 = vector.load %arg1[%c384_88, %c0_89] : memref<1920x128xbf16, #tpu.memory_space<vmem>>, vector<128x128xbf16>
    %cst_90 = arith.constant dense<0.000000e+00> : vector<16x128xf32>
    %233 = tpu.matmul %231, %232, %cst_90 {dimension_numbers = #tpu.dot_dimension_numbers<[1], [0], [0], [1], [0, 0, 1, 1], [], []>} : vector<16x128xbf16>, vector<128x128xbf16>, vector<16x128xf32> -> vector<16x128xf32>
    %234 = arith.addf %230, %233 : vector<16x128xf32>
    %c6_91 = arith.constant 6 : index
    %c0_92 = arith.constant 0 : index
    %235 = vector.load %arg3[%c6_91, %c0_92] : memref<26x128xf32, #tpu.memory_space<vmem>>, vector<1x128xf32>
    %236 = vector.broadcast %235 : vector<1x128xf32> to vector<16x128xf32>
    %237 = arith.addf %234, %236 : vector<16x128xf32>
    %cst_93 = arith.constant 0.000000e+00 : f32
    %238 = vector.broadcast %cst_93 : f32 to vector<16x128xf32>
    %239 = arith.maximumf %237, %238 : vector<16x128xf32>
    %240 = arith.truncf %239 : vector<16x128xf32> to vector<16x128xbf16>
    %c512_94 = arith.constant 512 : index
    %c0_95 = arith.constant 0 : index
    %241 = vector.load %arg1[%c512_94, %c0_95] : memref<1920x128xbf16, #tpu.memory_space<vmem>>, vector<128x128xbf16>
    %cst_96 = arith.constant dense<0.000000e+00> : vector<16x128xf32>
    %242 = tpu.matmul %240, %241, %cst_96 {dimension_numbers = #tpu.dot_dimension_numbers<[1], [0], [0], [1], [0, 0, 1, 1], [], []>} : vector<16x128xbf16>, vector<128x128xbf16>, vector<16x128xf32> -> vector<16x128xf32>
    %c7_97 = arith.constant 7 : index
    %c0_98 = arith.constant 0 : index
    %243 = vector.load %arg3[%c7_97, %c0_98] : memref<26x128xf32, #tpu.memory_space<vmem>>, vector<1x128xf32>
    %244 = vector.broadcast %243 : vector<1x128xf32> to vector<16x128xf32>
    %245 = arith.addf %242, %244 : vector<16x128xf32>
    %cst_99 = arith.constant 0.000000e+00 : f32
    %246 = vector.broadcast %cst_99 : f32 to vector<16x128xf32>
    %247 = arith.maximumf %245, %246 : vector<16x128xf32>
    %cst_100 = arith.constant dense<0.000000e+00> : vector<128xf32>
    %248 = vector.multi_reduction <add>, %247, %cst_100 [0] : vector<16x128xf32> to vector<128xf32>
    %249 = vector.shape_cast %248 : vector<128xf32> to vector<1x128xf32>
    %cst_101 = arith.constant 1.600000e+01 : f32
    %250 = vector.broadcast %cst_101 : f32 to vector<1x128xf32>
    %251 = arith.divf %249, %250 : vector<1x128xf32>
    %252 = vector.broadcast %251 : vector<1x128xf32> to vector<16x128xf32>
    %253 = arith.subf %247, %252 : vector<16x128xf32>
    %254 = arith.mulf %253, %253 : vector<16x128xf32>
    %cst_102 = arith.constant dense<0.000000e+00> : vector<128xf32>
    %255 = vector.multi_reduction <add>, %254, %cst_102 [0] : vector<16x128xf32> to vector<128xf32>
    %256 = vector.shape_cast %255 : vector<128xf32> to vector<1x128xf32>
    %cst_103 = arith.constant 1.600000e+01 : f32
    %257 = vector.broadcast %cst_103 : f32 to vector<1x128xf32>
    %258 = arith.divf %256, %257 : vector<1x128xf32>
    %cst_104 = arith.constant 9.99999974E-6 : f32
    %259 = vector.broadcast %cst_104 : f32 to vector<1x128xf32>
    %260 = arith.addf %258, %259 : vector<1x128xf32>
    %261 = math.rsqrt %260 : vector<1x128xf32>
    %262 = vector.broadcast %261 : vector<1x128xf32> to vector<16x128xf32>
    %263 = arith.mulf %253, %262 : vector<16x128xf32>
    %c8_105 = arith.constant 8 : index
    %c0_106 = arith.constant 0 : index
    %264 = vector.load %arg3[%c8_105, %c0_106] : memref<26x128xf32, #tpu.memory_space<vmem>>, vector<1x128xf32>
    %265 = vector.broadcast %264 : vector<1x128xf32> to vector<16x128xf32>
    %266 = arith.mulf %263, %265 : vector<16x128xf32>
    %c9_107 = arith.constant 9 : index
    %c0_108 = arith.constant 0 : index
    %267 = vector.load %arg3[%c9_107, %c0_108] : memref<26x128xf32, #tpu.memory_space<vmem>>, vector<1x128xf32>
    %268 = vector.broadcast %267 : vector<1x128xf32> to vector<16x128xf32>
    %269 = arith.addf %266, %268 : vector<16x128xf32>
    %270 = arith.truncf %269 : vector<16x128xf32> to vector<16x128xbf16>
    %c1152 = arith.constant 1152 : index
    %c0_109 = arith.constant 0 : index
    %271 = vector.load %arg1[%c1152, %c0_109] : memref<1920x128xbf16, #tpu.memory_space<vmem>>, vector<128x128xbf16>
    %cst_110 = arith.constant dense<0.000000e+00> : vector<16x128xf32>
    %272 = tpu.matmul %270, %271, %cst_110 {dimension_numbers = #tpu.dot_dimension_numbers<[1], [0], [0], [1], [0, 0, 1, 1], [], []>} : vector<16x128xbf16>, vector<128x128xbf16>, vector<16x128xf32> -> vector<16x128xf32>
    %c1280 = arith.constant 1280 : index
    %c0_111 = arith.constant 0 : index
    %273 = vector.load %arg1[%c1280, %c0_111] : memref<1920x128xbf16, #tpu.memory_space<vmem>>, vector<128x128xbf16>
    %cst_112 = arith.constant dense<0.000000e+00> : vector<16x128xf32>
    %274 = tpu.matmul %31, %273, %cst_112 {dimension_numbers = #tpu.dot_dimension_numbers<[1], [0], [0], [1], [0, 0, 1, 1], [], []>} : vector<16x128xbf16>, vector<128x128xbf16>, vector<16x128xf32> -> vector<16x128xf32>
    %275 = arith.addf %272, %274 : vector<16x128xf32>
    %c18 = arith.constant 18 : index
    %c0_113 = arith.constant 0 : index
    %276 = vector.load %arg3[%c18, %c0_113] : memref<26x128xf32, #tpu.memory_space<vmem>>, vector<1x128xf32>
    %277 = vector.broadcast %276 : vector<1x128xf32> to vector<16x128xf32>
    %278 = arith.addf %275, %277 : vector<16x128xf32>
    %cst_114 = arith.constant 0.000000e+00 : f32
    %279 = vector.broadcast %cst_114 : f32 to vector<16x128xf32>
    %280 = arith.maximumf %278, %279 : vector<16x128xf32>
    %cst_115 = arith.constant dense<0.000000e+00> : vector<128xf32>
    %281 = vector.multi_reduction <add>, %280, %cst_115 [0] : vector<16x128xf32> to vector<128xf32>
    %282 = vector.shape_cast %281 : vector<128xf32> to vector<1x128xf32>
    %cst_116 = arith.constant 1.600000e+01 : f32
    %283 = vector.broadcast %cst_116 : f32 to vector<1x128xf32>
    %284 = arith.divf %282, %283 : vector<1x128xf32>
    %285 = vector.broadcast %284 : vector<1x128xf32> to vector<16x128xf32>
    %286 = arith.subf %280, %285 : vector<16x128xf32>
    %287 = arith.mulf %286, %286 : vector<16x128xf32>
    %cst_117 = arith.constant dense<0.000000e+00> : vector<128xf32>
    %288 = vector.multi_reduction <add>, %287, %cst_117 [0] : vector<16x128xf32> to vector<128xf32>
    %289 = vector.shape_cast %288 : vector<128xf32> to vector<1x128xf32>
    %cst_118 = arith.constant 1.600000e+01 : f32
    %290 = vector.broadcast %cst_118 : f32 to vector<1x128xf32>
    %291 = arith.divf %289, %290 : vector<1x128xf32>
    %cst_119 = arith.constant 9.99999974E-6 : f32
    %292 = vector.broadcast %cst_119 : f32 to vector<1x128xf32>
    %293 = arith.addf %291, %292 : vector<1x128xf32>
    %294 = math.rsqrt %293 : vector<1x128xf32>
    %295 = vector.broadcast %294 : vector<1x128xf32> to vector<16x128xf32>
    %296 = arith.mulf %286, %295 : vector<16x128xf32>
    %c19 = arith.constant 19 : index
    %c0_120 = arith.constant 0 : index
    %297 = vector.load %arg3[%c19, %c0_120] : memref<26x128xf32, #tpu.memory_space<vmem>>, vector<1x128xf32>
    %298 = vector.broadcast %297 : vector<1x128xf32> to vector<16x128xf32>
    %299 = arith.mulf %296, %298 : vector<16x128xf32>
    %c20 = arith.constant 20 : index
    %c0_121 = arith.constant 0 : index
    %300 = vector.load %arg3[%c20, %c0_121] : memref<26x128xf32, #tpu.memory_space<vmem>>, vector<1x128xf32>
    %301 = vector.broadcast %300 : vector<1x128xf32> to vector<16x128xf32>
    %302 = arith.addf %299, %301 : vector<16x128xf32>
    %303 = arith.truncf %302 : vector<16x128xf32> to vector<16x128xbf16>
    %c1408 = arith.constant 1408 : index
    %c0_122 = arith.constant 0 : index
    %304 = vector.load %arg1[%c1408, %c0_122] : memref<1920x128xbf16, #tpu.memory_space<vmem>>, vector<128x128xbf16>
    %cst_123 = arith.constant dense<0.000000e+00> : vector<16x128xf32>
    %305 = tpu.matmul %303, %304, %cst_123 {dimension_numbers = #tpu.dot_dimension_numbers<[1], [0], [0], [1], [0, 0, 1, 1], [], []>} : vector<16x128xbf16>, vector<128x128xbf16>, vector<16x128xf32> -> vector<16x128xf32>
    %c21 = arith.constant 21 : index
    %c0_124 = arith.constant 0 : index
    %306 = vector.load %arg3[%c21, %c0_124] : memref<26x128xf32, #tpu.memory_space<vmem>>, vector<1x128xf32>
    %307 = vector.broadcast %306 : vector<1x128xf32> to vector<16x128xf32>
    %308 = arith.addf %305, %307 : vector<16x128xf32>
    %309 = vector.extract_strided_slice %308 {offsets = [0, 0], sizes = [16, 3], strides = [1, 1]} : vector<16x128xf32> to vector<16x3xf32>
    %c0_125 = arith.constant 0 : index
    %c0_126 = arith.constant 0 : index
    %310 = vector.load %arg4[%c0_125, %c0_126] : memref<16x3xf32, #tpu.memory_space<vmem>>, vector<16x3xf32>
    tpu.vector_store %arg4[%c0_125, %c0_126], %309 {strides = array<i32>} : memref<16x3xf32, #tpu.memory_space<vmem>>, vector<16x3xf32>,
    %311 = arith.truncf %223 : vector<128x128xf32> to vector<128x128xbf16>
    %c1536 = arith.constant 1536 : index
    %c0_127 = arith.constant 0 : index
    %312 = vector.load %arg1[%c1536, %c0_127] : memref<1920x128xbf16, #tpu.memory_space<vmem>>, vector<128x128xbf16>
    %cst_128 = arith.constant dense<0.000000e+00> : vector<128x128xf32>
    %313 = tpu.matmul %311, %312, %cst_128 {dimension_numbers = #tpu.dot_dimension_numbers<[1], [0], [0], [1], [0, 0, 1, 1], [], []>} : vector<128x128xbf16>, vector<128x128xbf16>, vector<128x128xf32> -> vector<128x128xf32>
    %314 = arith.truncf %71 : vector<128x128xf32> to vector<128x128xbf16>
    %c1664 = arith.constant 1664 : index
    %c0_129 = arith.constant 0 : index
    %315 = vector.load %arg1[%c1664, %c0_129] : memref<1920x128xbf16, #tpu.memory_space<vmem>>, vector<128x128xbf16>
    %cst_130 = arith.constant dense<0.000000e+00> : vector<128x128xf32>
    %316 = tpu.matmul %314, %315, %cst_130 {dimension_numbers = #tpu.dot_dimension_numbers<[1], [0], [0], [1], [0, 0, 1, 1], [], []>} : vector<128x128xbf16>, vector<128x128xbf16>, vector<128x128xf32> -> vector<128x128xf32>
    %317 = arith.addf %313, %316 : vector<128x128xf32>
    %c22 = arith.constant 22 : index
    %c0_131 = arith.constant 0 : index
    %318 = vector.load %arg3[%c22, %c0_131] : memref<26x128xf32, #tpu.memory_space<vmem>>, vector<1x128xf32>
    %319 = vector.broadcast %318 : vector<1x128xf32> to vector<128x128xf32>
    %320 = arith.addf %317, %319 : vector<128x128xf32>
    %cst_132 = arith.constant 0.000000e+00 : f32
    %321 = vector.broadcast %cst_132 : f32 to vector<128x128xf32>
    %322 = arith.maximumf %320, %321 : vector<128x128xf32>
    %cst_133 = arith.constant dense<0.000000e+00> : vector<128xf32>
    %323 = vector.multi_reduction <add>, %322, %cst_133 [0] : vector<128x128xf32> to vector<128xf32>
    %324 = vector.shape_cast %323 : vector<128xf32> to vector<1x128xf32>
    %cst_134 = arith.constant 1.280000e+02 : f32
    %325 = vector.broadcast %cst_134 : f32 to vector<1x128xf32>
    %326 = arith.divf %324, %325 : vector<1x128xf32>
    %327 = vector.broadcast %326 : vector<1x128xf32> to vector<128x128xf32>
    %328 = arith.subf %322, %327 : vector<128x128xf32>
    %329 = arith.mulf %328, %328 : vector<128x128xf32>
    %cst_135 = arith.constant dense<0.000000e+00> : vector<128xf32>
    %330 = vector.multi_reduction <add>, %329, %cst_135 [0] : vector<128x128xf32> to vector<128xf32>
    %331 = vector.shape_cast %330 : vector<128xf32> to vector<1x128xf32>
    %cst_136 = arith.constant 1.280000e+02 : f32
    %332 = vector.broadcast %cst_136 : f32 to vector<1x128xf32>
    %333 = arith.divf %331, %332 : vector<1x128xf32>
    %cst_137 = arith.constant 9.99999974E-6 : f32
    %334 = vector.broadcast %cst_137 : f32 to vector<1x128xf32>
    %335 = arith.addf %333, %334 : vector<1x128xf32>
    %336 = math.rsqrt %335 : vector<1x128xf32>
    %337 = vector.broadcast %336 : vector<1x128xf32> to vector<128x128xf32>
    %338 = arith.mulf %328, %337 : vector<128x128xf32>
    %c23 = arith.constant 23 : index
    %c0_138 = arith.constant 0 : index
    %339 = vector.load %arg3[%c23, %c0_138] : memref<26x128xf32, #tpu.memory_space<vmem>>, vector<1x128xf32>
    %340 = vector.broadcast %339 : vector<1x128xf32> to vector<128x128xf32>
    %341 = arith.mulf %338, %340 : vector<128x128xf32>
    %c24 = arith.constant 24 : index
    %c0_139 = arith.constant 0 : index
    %342 = vector.load %arg3[%c24, %c0_139] : memref<26x128xf32, #tpu.memory_space<vmem>>, vector<1x128xf32>
    %343 = vector.broadcast %342 : vector<1x128xf32> to vector<128x128xf32>
    %344 = arith.addf %341, %343 : vector<128x128xf32>
    %345 = arith.truncf %344 : vector<128x128xf32> to vector<128x128xbf16>
    %c1792 = arith.constant 1792 : index
    %c0_140 = arith.constant 0 : index
    %346 = vector.load %arg1[%c1792, %c0_140] : memref<1920x128xbf16, #tpu.memory_space<vmem>>, vector<128x128xbf16>
    %cst_141 = arith.constant dense<0.000000e+00> : vector<128x128xf32>
    %347 = tpu.matmul %345, %346, %cst_141 {dimension_numbers = #tpu.dot_dimension_numbers<[1], [0], [0], [1], [0, 0, 1, 1], [], []>} : vector<128x128xbf16>, vector<128x128xbf16>, vector<128x128xf32> -> vector<128x128xf32>
    %c25 = arith.constant 25 : index
    %c0_142 = arith.constant 0 : index
    %348 = vector.load %arg3[%c25, %c0_142] : memref<26x128xf32, #tpu.memory_space<vmem>>, vector<1x128xf32>
    %349 = vector.broadcast %348 : vector<1x128xf32> to vector<128x128xf32>
    %350 = arith.addf %347, %349 : vector<128x128xf32>
    %351 = vector.extract_strided_slice %350 {offsets = [0, 0], sizes = [128, 5], strides = [1, 1]} : vector<128x128xf32> to vector<128x5xf32>
    %c0_143 = arith.constant 0 : index
    %c0_144 = arith.constant 0 : index
    %352 = vector.load %arg5[%c0_143, %c0_144] : memref<128x5xf32, #tpu.memory_space<vmem>>, vector<128x5xf32>
    tpu.vector_store %arg5[%c0_143, %c0_144], %351 {strides = array<i32>} : memref<128x5xf32, #tpu.memory_space<vmem>>, vector<128x5xf32>,
    return
  }
}

</mosaic_0001>

<bundles_post_ra>
// kernel: tpu_custom_call.1
= control target key start
LH: loop header
LB: loop body
LE: loop exit
PB: predicated region body
PF: predicated region fallthrough
CT: control target
= control target key end

     0   :  { %11 = vsyncpa [#allocation3], 0  ;;  %s7104_s0 = inlined_call_operand.hbm [shape: f32[16,128], index: 0, kind: input, shape index: {}]   ;;  %s7105_s1 = inlined_call_operand.hbm [shape: bf16[1920,128], index: 1, kind: input, shape index: {}]   ;;  %s7106_s2 = inlined_call_operand.hbm [shape: bf16[384,256], index: 2, kind: input, shape index: {}]   ;;  %s7107_s3 = inlined_call_operand.hbm [shape: f32[26,128], index: 3, kind: input, shape index: {}]   ;;  %s7108_s4 = inlined_call_operand.vmem [shape: f32[16,3], index: 4, kind: output, shape index: {0}]   ;;  %s7109_s5 = inlined_call_operand.vmem [shape: f32[128,5], index: 5, kind: output, shape index: {1}]  }
   0x1   :  { %12 = vsyncpa [#allocation5], 0 }
   0x2   :  { %13 = vsyncpa [#allocation8], 0  ;;  %s5830_s18 = smov [#allocation4]   ;;  %s5736_s22 = scalar_lea.hbm %s7105_s1, 15360 }
   0x3   :  { %s31_s19 = sshll.u32 %s5830_s18, 4  ;;  %p5737_p0 = scmp.ne.s32.totalorder %s7105_s1, %s5736_s22  ;;  %s32_s19 = int_to_ptr.vmem [resolvable:$true] %s31_s19 }
   0x4   :  { %p5740_p1 = scmp.lt.u32.totalorder %s5736_s22, %s7105_s1 }
   0x6   :  { %p5742_p2 = pnand %p5740_p1, %p5737_p0 }
   0x8   :  { %5745 = shalt.err (!%p5742_p2)
}
   0x9   :  { %s5746_s27 = scalar_lea.vmem %s32_s19, 15360  ;;  %p5751_p4 = scmp.lt.s32.totalorder %s32_s19, %s32_s19 }
   0xa   :  { %p5747_p3 = scmp.ne.s32.totalorder %s32_s19, %s5746_s27  ;;  %p5752_p5 = scmp.lt.s32.totalorder %s5746_s27, %s5746_s27 }
   0xc   :  { %p5753_p6 = por %p5752_p5, %p5751_p4 }
   0xe   :  { %p5754_p7 = pnand %p5753_p6, %p5747_p3 }
  0x10   :  { %5757 = shalt.err (!%p5754_p7)
}
  0x11   :  { %s5831_s28 = smov 64   ;;  %s5832_s29 = smov 4  }
  0x12   :  { %37 = dma.hbm_to_vmem [thread:$0]  %s7105_s1, 15360, %s32_s19, [#allocation5], %s5831_s28, %s5831_s28, %s5832_s29  }
  0x13   :  { %s5833_s7 = smov [#allocation2]   ;;  %s5758_s11 = scalar_lea.hbm %s7104_s0, 256 }
  0x14   :  { %s19_s8 = sshll.u32 %s5833_s7, 4  ;;  %p5759_p8 = scmp.ne.s32.totalorder %s7104_s0, %s5758_s11  ;;  %s20_s8 = int_to_ptr.vmem [resolvable:$true] %s19_s8 }
  0x15   :  { %p5762_p9 = scmp.lt.u32.totalorder %s5758_s11, %s7104_s0 }
  0x17   :  { %p5764_p10 = pnand %p5762_p9, %p5759_p8 }
  0x19   :  { %5767 = shalt.err (!%p5764_p10)
}
  0x1a   :  { %s5768_s16 = scalar_lea.vmem %s20_s8, 256  ;;  %p5773_p12 = scmp.lt.s32.totalorder %s20_s8, %s20_s8 }
  0x1b   :  { %p5769_p11 = scmp.ne.s32.totalorder %s20_s8, %s5768_s16  ;;  %p5774_p13 = scmp.lt.s32.totalorder %s5768_s16, %s5768_s16 }
  0x1d   :  { %p5775_p0 = por %p5774_p13, %p5773_p12 }
  0x1f   :  { %p5776_p1 = pnand %p5775_p0, %p5769_p11 }
  0x21   :  { %5779 = shalt.err (!%p5776_p1)
}
  0x22   :  { %s5834_s1 = smov 128   ;;  %s5835_s17 = smov 8  }
  0x23   :  { %25 = dma.hbm_to_vmem [thread:$0]  %s7104_s0, 256, %s20_s8, [#allocation3], %s5834_s1, %s5834_s1, %s5835_s17  }
  0x24   :  { %s5836_s20 = smov [#allocation6]   ;;  %s5837_s22 = smov [#allocation7]  }
  0x25   :  { %s43_s21 = sshll.u32 %s5836_s20, 4  ;;  %s55_s23 = sshll.u32 %s5837_s22, 4  ;;  %s44_s21 = int_to_ptr.vmem [resolvable:$true] %s43_s21  ;;  %s5899_s23 = int_to_ptr.vmem [resolvable:$true] %s55_s23 }
  0x26   :  { %s5780_s26 = scalar_lea.hbm %s7106_s2, 6144 }
  0x27   :  { %p5781_p2 = scmp.ne.s32.totalorder %s7106_s2, %s5780_s26  ;;  %p5784_p3 = scmp.lt.u32.totalorder %s5780_s26, %s7106_s2 }
  0x29   :  { %p5786_p4 = pnand %p5784_p3, %p5781_p2 }
  0x2b   :  { %5789 = shalt.err (!%p5786_p4)
}
  0x2c   :  { %s5790_s0 = scalar_lea.vmem %s44_s21, 6144  ;;  %p5795_p6 = scmp.lt.s32.totalorder %s44_s21, %s44_s21 }
  0x2d   :  { %p5791_p5 = scmp.ne.s32.totalorder %s44_s21, %s5790_s0  ;;  %p5796_p7 = scmp.lt.s32.totalorder %s5790_s0, %s5790_s0 }
  0x2f   :  { %p5797_p8 = por %p5796_p7, %p5795_p6 }
  0x31   :  { %p5798_p9 = pnand %p5797_p8, %p5791_p5 }
  0x33   :  { %5801 = shalt.err (!%p5798_p9)
}
  0x34   :  { %49 = dma.hbm_to_vmem [thread:$0]  %s7106_s2, 6144, %s44_s21, [#allocation5], %s5834_s1, %s5834_s1, %s5835_s17  }
  0x35   :  { %s5802_s10 = scalar_lea.hbm %s7107_s3, 512 }
  0x36   :  { %p5803_p10 = scmp.ne.s32.totalorder %s7107_s3, %s5802_s10  ;;  %p5806_p11 = scmp.lt.u32.totalorder %s5802_s10, %s7107_s3 }
  0x38   :  { %p5808_p12 = pnand %p5806_p11, %p5803_p10 }
  0x3a   :  { %5811 = shalt.err (!%p5808_p12)
}
  0x3b   :  { %s5812_s15 = scalar_lea.vmem %s5899_s23, 512  ;;  %p5817_p0 = scmp.lt.s32.totalorder %s5899_s23, %s5899_s23 }
  0x3c   :  { %p5813_p13 = scmp.ne.s32.totalorder %s5899_s23, %s5812_s15  ;;  %p5818_p1 = scmp.lt.s32.totalorder %s5812_s15, %s5812_s15 }
  0x3e   :  { %p5819_p2 = por %p5818_p1, %p5817_p0 }
  0x40   :  { %p5820_p3 = pnand %p5819_p2, %p5813_p13 }
  0x42   :  { %5823 = shalt.err (!%p5820_p3)
}
  0x43   :  { %61 = dma.hbm_to_vmem [thread:$0]  %s7107_s3, 512, %s5899_s23, [#allocation8], %s5834_s1, %s5834_s1, %s5835_s17  }
  0x44   :  { %5824 = dma.done.wait [#allocation3], 256  }
  0x45   :  { %5825 = vsyncadd [#allocation3], 4294967040 }
  0x46   :  { %5826 = dma.done.wait [#allocation5], 21504  }
  0x47   :  { %5827 = vsyncadd [#allocation5], 4294945792 }
  0x48   :  { %5828 = dma.done.wait [#allocation8], 512  }
  0x49   :  { %5829 = vsyncadd [#allocation8], 4294966784  ;;  %v7110_v0 = vmov 0.0   ;;  %vm5839_vm0 = vmmov 0   ;;  %v7112_v1 = vmov 0   ;;  %v5494_v2 = vld [vmem:[#allocation4] sm:$0xff]   ;;  %v375_v55 = vlaneseq }
  0x4a   :  { %5002 = vmatprep.subr.bf16.mxu0 %v7110_v0  ;;  %5018 = vmatprep.mubr.msk.bf16.mxu0 %vm5839_vm0, %v7110_v0  ;;  %v5495_v3 = vld [vmem:[#allocation6 + $0x4] ss:$8 sps:$4 sm:$0xff]   ;;  %v5497_v4 = vld [vmem:[#allocation6] ss:$8 sps:$4 sm:$0xff]   ;;  %v5499_v6 = vld [vmem:[#allocation6 + $0x14] ss:$8 sps:$4 sm:$0xff]  }
  0x4b   :  { %358 = vmatprep.mubr.bf16.mxu1 %v7112_v1  ;;  %5003 = vmatpush3.bf16.msra.mxu0 %v5494_v2  ;;  %v5498_v5 = vld [vmem:[#allocation4 + $0x8] sm:$0xff]   ;;  %v5501_v7 = vld [vmem:[#allocation6 + $0x10] ss:$8 sps:$4 sm:$0xff]   ;;  %v5507_v11 = vld [vmem:[#allocation6 + $0x34] ss:$8 sps:$4 sm:$0xff]   ;;  %v376_v57 = vshrl.u32 %v375_v55, 7 }
  0x4c   :  { %326 = vmatprep.subr.bf16.mxu1 %v5495_v3  ;;  %5004 = vmatprep.subr.bf16.mxu0 %v7110_v0  ;;  %v5502_v8 = vld [vmem:[#allocation4 + $0x10] sm:$0xff]   ;;  %v5503_v9 = vld [vmem:[#allocation6 + $0x24] ss:$8 sps:$4 sm:$0xff]   ;;  %v5505_v10 = vld [vmem:[#allocation6 + $0x20] ss:$8 sps:$4 sm:$0xff]   ;;  %vm1992_vm1 = vcmask 1041409  }
  0x4d   :  { %327 = vmatpush1.bf16.msra.mxu1 %v5497_v4  ;;  %v5506_v12 = vld [vmem:[#allocation4 + $0x18] sm:$0xff]   ;;  %v5511_v14 = vld [vmem:[#allocation6 + $0x44] ss:$8 sps:$4 sm:$0xff]   ;;  %v5513_v16 = vld [vmem:[#allocation6 + $0x40] ss:$8 sps:$4 sm:$0xff]   ;;  %vm1994_vm2 = vcmask 1042434  }
  0x4e   :  { %328 = vmatprep.subr.bf16.mxu1 %v5499_v6  ;;  %v5509_v13 = vld [vmem:[#allocation6 + $0x30] ss:$8 sps:$4 sm:$0xff]   ;;  %v5510_v15 = vld [vmem:[#allocation4 + $0x20] sm:$0xff]   ;;  %v5515_v17 = vld [vmem:[#allocation6 + $0x54] ss:$8 sps:$4 sm:$0xff]   ;;  %vm1996_vm3 = vcmask 1043459  }
  0x4f   :  { %5005 = vmatpush3.bf16.msra.mxu0 %v5498_v5  ;;  %v5514_v18 = vld [vmem:[#allocation4 + $0x28] sm:$0xff]   ;;  %v5517_v19 = vld [vmem:[#allocation6 + $0x50] ss:$8 sps:$4 sm:$0xff]   ;;  %v5523_v23 = vld [vmem:[#allocation6 + $0x74] ss:$8 sps:$4 sm:$0xff]   ;;  %vm1998_vm4 = vcmask 1044484  }
  0x50   :  { %5006 = vmatprep.subr.bf16.mxu0 %v7110_v0  ;;  %v5519_v20 = vld [vmem:[#allocation6 + $0x64] ss:$8 sps:$4 sm:$0xff]   ;;  %v5518_v21 = vld [vmem:[#allocation4 + $0x30] sm:$0xff]   ;;  %v5521_v22 = vld [vmem:[#allocation6 + $0x60] ss:$8 sps:$4 sm:$0xff]   ;;  %vm2000_vm5 = vcmask 1045509  }
  0x51   :  { %329 = vmatpush1.bf16.msra.mxu1 %v5501_v7  ;;  %v5522_v24 = vld [vmem:[#allocation4 + $0x38] sm:$0xff]   ;;  %v75_v25 = vld [vmem:[#allocation2] sm:$0xff]  ;;  %v5528_v29 = vld [vmem:[#allocation6 + $0x84] ss:$8 sps:$4 sm:$0xff]   ;;  %v5841_v53 = vmov 1966171168  }
  0x52   :  { %330 = vmatprep.subr.bf16.mxu1 %v5503_v9  ;;  %v76_v26 = vld [vmem:[#allocation2 + $0x8] sm:$0xff]  ;;  %v5526_v30 = vld [vmem:[#allocation6 + $0x80] ss:$8 sps:$4 sm:$0xff]   ;;  %v5534_v33 = vld [vmem:[#allocation6 + $0xa4] ss:$8 sps:$4 sm:$0xff]   ;;  %v373_v54 = vunpack.c.l.s4 %v5841_v53  ;;  %vm2002_vm6 = vcmask 1046534  }
  0x53   :  { %5007 = vmatpush3.bf16.msra.mxu0 %v5502_v8  ;;  %v5525_v27 = vld [vmem:[#allocation6 + $0x70] ss:$8 sps:$4 sm:$0xff]   ;;  %v77_v28 = vpack.c.bf16 %v76_v26, %v75_v25  ;;  %v5531_v31 = vld [vmem:[#allocation6 + $0x94] ss:$8 sps:$4 sm:$0xff]   ;;  %v5532_v34 = vld [vmem:[#allocation6 + $0xa0] ss:$8 sps:$4 sm:$0xff]  }
  0x54   :  { %5008 = vmatprep.subr.bf16.mxu0 %v7110_v0  ;;  %v5529_v32 = vld [vmem:[#allocation6 + $0x90] ss:$8 sps:$4 sm:$0xff]   ;;  %v5537_v35 = vld [vmem:[#allocation6 + $0xb4] ss:$8 sps:$4 sm:$0xff]   ;;  %v5540_v37 = vld [vmem:[#allocation6 + $0xc4] ss:$8 sps:$4 sm:$0xff]   ;;  %v374_v56 = vunpack.c.0.s8 %v373_v54 }
  0x55   :  { %331 = vmatpush1.bf16.msra.mxu1 %v5505_v10  ;;  %v5535_v36 = vld [vmem:[#allocation6 + $0xb0] ss:$8 sps:$4 sm:$0xff]   ;;  %v5538_v38 = vld [vmem:[#allocation6 + $0xc0] ss:$8 sps:$4 sm:$0xff]   ;;  %v5543_v39 = vld [vmem:[#allocation6 + $0xd4] ss:$8 sps:$4 sm:$0xff]  }
  0x56   :  { %332 = vmatprep.subr.bf16.mxu1 %v5507_v11  ;;  %v5541_v40 = vld [vmem:[#allocation6 + $0xd0] ss:$8 sps:$4 sm:$0xff]   ;;  %v5546_v41 = vld [vmem:[#allocation6 + $0xe4] ss:$8 sps:$4 sm:$0xff]   ;;  %v5544_v42 = vld [vmem:[#allocation6 + $0xe0] ss:$8 sps:$4 sm:$0xff]   ;;  %v5949_v59 = vsub.s32 %v374_v56, %v376_v57 }
  0x57   :  { %5009 = vmatpush3.bf16.msra.mxu0 %v5506_v12  ;;  %v5550_v43 = vld [vmem:[#allocation4 + $0x140] sm:$0xff]   ;;  %v5551_v44 = vld [vmem:[#allocation4 + $0x148] sm:$0xff]   ;;  %v5549_v45 = vld [vmem:[#allocation6 + $0xf4] ss:$8 sps:$4 sm:$0xff]   ;;  %vm2004_vm7 = vcmask 1047559   ;;  %vm3880_vm8 = vcmask 23552  }
  0x58   :  { %5010 = vmatprep.subr.bf16.mxu0 %v7110_v0  ;;  %v5547_v46 = vld [vmem:[#allocation6 + $0xf0] ss:$8 sps:$4 sm:$0xff]   ;;  %v5554_v49 = vld [vmem:[#allocation4 + $0x160] sm:$0xff]   ;;  %v5555_v50 = vld [vmem:[#allocation4 + $0x168] sm:$0xff]   ;;  %vm4560_vm9 = vcmask 39936  }
  0x59   :  { %333 = vmatpush1.bf16.msra.mxu1 %v5509_v13  ;;  %v5552_v47 = vld [vmem:[#allocation4 + $0x150] sm:$0xff]   ;;  %v5553_v48 = vld [vmem:[#allocation4 + $0x158] sm:$0xff]   ;;  %v4588_v58 = vld [vmem:[#allocation7] ss:$0 sm:$0xff] }
  0x5a   :  { %334 = vmatprep.subr.bf16.mxu1 %v5511_v14  ;;  %v5556_v51 = vld [vmem:[#allocation4 + $0x170] sm:$0xff]   ;;  %v5557_v52 = vld [vmem:[#allocation4 + $0x178] sm:$0xff]  }
  0x5b   :  { %5011 = vmatpush3.bf16.msra.mxu0 %v5510_v15 }
  0x5c   :  { %5012 = vmatprep.subr.bf16.mxu0 %v7110_v0 }
  0x5d   :  { %335 = vmatpush1.bf16.msra.mxu1 %v5513_v16 }
  0x5e   :  { %336 = vmatprep.subr.bf16.mxu1 %v5515_v17 }
  0x5f   :  { %5013 = vmatpush3.bf16.msra.mxu0 %v5514_v18 }
  0x60   :  { %5014 = vmatprep.subr.bf16.mxu0 %v7110_v0 }
  0x61   :  { %337 = vmatpush1.bf16.msra.mxu1 %v5517_v19 }
  0x62   :  { %338 = vmatprep.subr.bf16.mxu1 %v5519_v20 }
  0x63   :  { %5015 = vmatpush3.bf16.msra.mxu0 %v5518_v21  ;;  %v5971_v21 = vsub.s32 0, %v376_v57 }
  0x64   :  { %5016 = vmatprep.subr.bf16.mxu0 %v7110_v0 }
  0x65   :  { %339 = vmatpush1.bf16.msra.mxu1 %v5521_v22 }
  0x66   :  { %340 = vmatprep.subr.bf16.mxu1 %v5523_v23 }
  0x67   :  { %5017 = vmatpush3.bf16.msra.mxu0 %v5522_v24 }
  0x68   :  { %843 = vmatprep.subr.bf16.mxu0 %v5528_v29 }
  0x69   :  { %341 = vmatpush1.bf16.msra.mxu1 %v5525_v27 }
  0x6a   :  { %5019 = vmatmul.mubr.bf16.vlgmr.msra.gmra.mrb[0].mxu0 %v77_v28  ;;  %5022 = vmatprep.subr.bf16.mxu1 %v5550_v43 }
  0x6b   :  { %875 = vmatprep.mubr.bf16.mxu0 %v7112_v1  ;;  %844 = vmatpush1.bf16.msra.mxu0 %v5526_v30 }
  0x6c   :  { %359 = vmatmul.mubr.bf16.vlgmr.msra.gmra.mrb[0].mxu1 %v77_v28  ;;  %845 = vmatprep.subr.bf16.mxu0 %v5531_v31 }
  0x6d   :  { %5023 = vmatpush3.bf16.msra.mxu1 %v5550_v43 }
  0x6e   :  { %5024 = vmatprep.subr.bf16.mxu1 %v5551_v44 }
  0x6f   :  { %846 = vmatpush1.bf16.msra.mxu0 %v5529_v32 }
  0x70   :  { %847 = vmatprep.subr.bf16.mxu0 %v5534_v33 }
  0x71   :  { %5025 = vmatpush3.bf16.msra.mxu1 %v5551_v44 }
  0x72   :  { %5026 = vmatprep.subr.bf16.mxu1 %v5552_v47 }
  0x73   :  { %848 = vmatpush1.bf16.msra.mxu0 %v5532_v34 }
  0x74   :  { %849 = vmatprep.subr.bf16.mxu0 %v5537_v35 }
  0x75   :  { %5027 = vmatpush3.bf16.msra.mxu1 %v5552_v47 }
  0x76   :  { %5028 = vmatprep.subr.bf16.mxu1 %v5553_v48 }
  0x77   :  { %850 = vmatpush1.bf16.msra.mxu0 %v5535_v36 }
  0x78   :  { %851 = vmatprep.subr.bf16.mxu0 %v5540_v37 }
  0x79   :  { %5029 = vmatpush3.bf16.msra.mxu1 %v5553_v48 }
  0x7a   :  { %5030 = vmatprep.subr.bf16.mxu1 %v5554_v49 }
  0x7b   :  { %852 = vmatpush1.bf16.msra.mxu0 %v5538_v38 }
  0x7c   :  { %853 = vmatprep.subr.bf16.mxu0 %v5543_v39 }
  0x7d   :  { %5031 = vmatpush3.bf16.msra.mxu1 %v5554_v49 }
  0x7e   :  { %5032 = vmatprep.subr.bf16.mxu1 %v5555_v50 }
  0x7f   :  { %854 = vmatpush1.bf16.msra.mxu0 %v5541_v40 }
  0x80   :  { %855 = vmatprep.subr.bf16.mxu0 %v5546_v41 }
  0x81   :  { %5033 = vmatpush3.bf16.msra.mxu1 %v5555_v50 }
  0x82   :  { %5034 = vmatprep.subr.bf16.mxu1 %v5556_v51 }
  0x83   :  { %856 = vmatpush1.bf16.msra.mxu0 %v5544_v42 }
  0x84   :  { %857 = vmatprep.subr.bf16.mxu0 %v5549_v45 }
  0x85   :  { %5035 = vmatpush3.bf16.msra.mxu1 %v5556_v51 }
  0x86   :  { %5036 = vmatprep.subr.bf16.mxu1 %v5557_v52 }
  0x87   :  { %858 = vmatpush1.bf16.msra.mxu0 %v5547_v46 }
  0x89   :  { %5037 = vmatpush3.bf16.msra.mxu1 %v5557_v52 }
  0x8a   :  { %5086 = vmatprep.subr.bf16.mxu1 %v7110_v0 }
 0x13d   :  { %v181_v60 = vpop.f32.mrb[0].mxu0 }
 0x13e   :  { %v5951_v61 = vadd.f32 %v4588_v58, %v181_v60  ;;  %v5020_v62 = vpop.f32.mrb[1].mxu0 }
 0x13f   :  { %v360_v63 = vpop.f32.mrb[0].mxu1  ;;  %v184_v2 = vpop.f32.mrb[2].mxu0 }
 0x140   :  { %v371_v3 = vcombine.high %v360_v63, %v360_v63  ;;  %v378_v4 = vrot.slane %v360_v63, %v5949_v59  ;;  %v5954_v5 = vadd.f32 %v4588_v58, %v184_v2  ;;  %v5956_v6 = vpop.f32.mrb[1].mxu1  ;;  %v5021_v7 = vpop.f32.mrb[3].mxu0  ;;  %v188_v8 = vmax.f32 %v5951_v61, 0.0 }
 0x141   :  { %v364_v9 = vpop.f32.mrb[2].mxu1 }
 0x142   :  { %v385_v10 = vrot.slane %v371_v3, %v5949_v59  ;;  %v386_v11 = vcombine.high %v378_v4, %v378_v4  ;;  %v5961_v12 = vrot.slane %v378_v4, %v5949_v59  ;;  %v189_v13 = vmax.f32 %v5954_v5, 0.0  ;;  %v366_v14 = vpop.f32.mrb[3].mxu1 }
 0x143   :  { %v420_v15 = vcombine.high %v364_v9, %v364_v9  ;;  %v427_v16 = vrot.slane %v364_v9, %v5949_v59 }
 0x144   :  { %v387_v17 = vcombine.high %v385_v10, %v385_v10  ;;  %v401_v18 = vrot.slane %v385_v10, %v5949_v59  ;;  %v5967_v19 = vrot.slane %v386_v11, %v5949_v59  ;;  %v416_v20 = vcombine.high %v5961_v12, %v5961_v12 }
 0x145   :  { %v190_v22 = vadd.f32 %v189_v13, %v188_v8  ;;  %v434_v23 = vrot.slane %v420_v15, %v5949_v59  ;;  %v435_v27 = vcombine.high %v427_v16, %v427_v16  ;;  %v443_v39 = vrot.slane %v427_v16, %v5949_v59 }
 0x146   :  { %v415_v24 = vrot.slane %v387_v17, %v5949_v59  ;;  %v417_v25 = vcombine.high %v401_v18, %v401_v18  ;;  %v418_v26 = vcombine.high %v5967_v19, %v5967_v19  ;;  %v480_v28 = vrot.slane %v416_v20, %v5971_v21 }
 0x147   :  { %v488_v29 = vrot.slane %v401_v18, %v5971_v21  ;;  %v191_v30 = vrot.slane %v190_v22, 4  ;;  %v436_v31 = vcombine.high %v434_v23, %v434_v23  ;;  %v450_v45 = vrot.slane %v434_v23, %v5949_v59 }
 0x148   :  { %v419_v32 = vcombine.high %v415_v24, %v415_v24  ;;  %v484_v33 = vrot.slane %v418_v26, %v5971_v21  ;;  %v492_v34 = vrot.slane %v415_v24, %v5971_v21  ;;  %v496_v35 = vrot.slane %v417_v25, %v5971_v21  ;;  %v4615_v26 = vld [vmem:[#allocation7 + $0x3] ss:$0 sm:$0xff] }
 0x149   :  { %v192_v36 = vadd.f32 %v191_v30, %v190_v22  ;;  %v551_v37 = vadd.f32 %v480_v28, %v5956_v6  ;;  %v553_v38 = vadd.f32 %v488_v29, %v5956_v6  ;;  %v457_v46 = vrot.slane %v435_v27, %v5949_v59 }
 0x14a   :  { %v500_v40 = vrot.slane %v419_v32, %v5971_v21  ;;  %v552_v41 = vadd.f32 %v484_v33, %v5956_v6  ;;  %v554_v42 = vadd.f32 %v492_v34, %v5956_v6  ;;  %v555_v43 = vadd.f32 %v496_v35, %v5956_v6 }
 0x14b   :  { %v193_v44 = vrot.slane %v192_v36, 2  ;;  %v464_v49 = vrot.slane %v436_v31, %v5949_v59  ;;  %v465_v50 = vcombine.high %v443_v39, %v443_v39  ;;  %v466_v51 = vcombine.high %v450_v45, %v450_v45 }
 0x14c   :  { %v556_v47 = vadd.f32 %v500_v40, %v5956_v6  ;;  %v467_v53 = vcombine.high %v457_v46, %v457_v46  ;;  %v504_v55 = vrot.slane %v443_v39, %v5971_v21  ;;  %v508_v56 = vrot.slane %v457_v46, %v5971_v21 }
 0x14d   :  { %v194_v48 = vadd.f32 %v193_v44, %v192_v36  ;;  %v468_v54 = vcombine.high %v464_v49, %v464_v49  ;;  %v512_v57 = vrot.slane %v465_v50, %v5971_v21  ;;  %v520_v58 = vrot.slane %v450_v45, %v5971_v21 }
 0x14e   :  { %v516_v62 = vrot.slane %v467_v53, %v5971_v21  ;;  %v524_v63 = vrot.slane %v464_v49, %v5971_v21  ;;  %v528_v2 = vrot.slane %v466_v51, %v5971_v21  ;;  %v557_v4 = vadd.f32 %v504_v55, %v366_v14 }
 0x14f   :  { %v195_v52 = vrot.slane %v194_v48, 1  ;;  %v532_v3 = vrot.slane %v468_v54, %v5971_v21  ;;  %v558_v5 = vadd.f32 %v508_v56, %v366_v14  ;;  %v559_v7 = vadd.f32 %v512_v57, %v366_v14 }
 0x150   :  { %v560_v10 = vadd.f32 %v516_v62, %v366_v14  ;;  %v561_v11 = vadd.f32 %v520_v58, %v366_v14  ;;  %v562_v15 = vadd.f32 %v524_v63, %v366_v14  ;;  %v563_v16 = vadd.f32 %v528_v2, %v366_v14 }
 0x151   :  { %v196_v60 = vadd.f32 %v195_v52, %v194_v48  ;;  %v564_v17 = vadd.f32 %v532_v3, %v366_v14  ;;  %v472_v18 = vrot.slane %v5961_v12, %v5971_v21  ;;  %v476_v23 = vrot.slane %v5967_v19, %v5971_v21 }
 0x152   :  { %v6015_v12 = vadd.f32 %v4615_v26, %v551_v37  ;;  %v6021_v33 = vadd.f32 %v4615_v26, %v553_v38  ;;  %v6028_v36 = vadd.f32 %v4615_v26, %v554_v42  ;;  %v577_v46 = vadd.f32 %v4615_v26, %v556_v47 }
 0x153   :  { %v198_v9 = vmul.f32 0.0625, %v196_v60  ;;  %v549_v28 = vadd.f32 %v472_v18, %v5956_v6  ;;  %v550_v29 = vadd.f32 %v476_v23, %v5956_v6  ;;  %v578_v51 = vadd.f32 %v4615_v26, %v557_v4 }
 0x154   :  { %v588_v34 = vmax.f32 %v6015_v12, 0.0  ;;  %v590_v38 = vmax.f32 %v6021_v33, 0.0  ;;  %v591_v48 = vmax.f32 %v6028_v36, 0.0  ;;  %v593_v54 = vmax.f32 %v577_v46, 0.0 }
 0x155   :  { %v199_v20 = vsub.f32 %v188_v8, %v198_v9  ;;  %v200_v22 = vsub.f32 %v189_v13, %v198_v9  ;;  %v6011_v14 = vadd.f32 %v4615_v26, %v549_v28  ;;  %v6013_v31 = vadd.f32 %v4615_v26, %v550_v29  ;;  %v4597_v28 = vld [vmem:[#allocation7 + $0x1] ss:$0 sm:$0xff] }
 0x156   :  { %v6017_v8 = vadd.f32 %v4615_v26, %v552_v41  ;;  %v6033_v41 = vadd.f32 %v4615_v26, %v555_v43  ;;  %v579_v55 = vadd.f32 %v4615_v26, %v558_v5  ;;  %v580_v56 = vadd.f32 %v4615_v26, %v559_v7 }
 0x157   :  { %v201_v24 = vmul.f32 %v199_v20, %v199_v20  ;;  %v202_v25 = vmul.f32 %v200_v22, %v200_v22  ;;  %v586_v13 = vmax.f32 %v6011_v14, 0.0  ;;  %v587_v19 = vmax.f32 %v6013_v31, 0.0 }
 0x158   :  { %v589_v37 = vmax.f32 %v6017_v8, 0.0  ;;  %v592_v50 = vmax.f32 %v6033_v41, 0.0  ;;  %v594_v57 = vmax.f32 %v578_v51, 0.0  ;;  %v581_v60 = vadd.f32 %v4615_v26, %v560_v10 }
 0x159   :  { %v203_v27 = vadd.f32 %v202_v25, %v201_v24  ;;  %v602_v6 = vadd.f32 %v587_v19, %v586_v13  ;;  %v595_v62 = vmax.f32 %v579_v55, 0.0  ;;  %v582_v47 = vadd.f32 %v4615_v26, %v561_v11 }
 0x15a   :  { %v596_v2 = vmax.f32 %v580_v56, 0.0  ;;  %v583_v9 = vadd.f32 %v4615_v26, %v562_v15  ;;  %v597_v18 = vmax.f32 %v581_v60, 0.0  ;;  %v584_v24 = vadd.f32 %v4615_v26, %v563_v16 }
 0x15b   :  { %v204_v30 = vrot.slane %v203_v27, 4  ;;  %v603_v39 = vadd.f32 %v602_v6, %v588_v34  ;;  %v598_v4 = vmax.f32 %v582_v47, 0.0  ;;  %v585_v5 = vadd.f32 %v4615_v26, %v564_v17 }
 0x15c   :  { %v599_v7 = vmax.f32 %v583_v9, 0.0  ;;  %v600_v6 = vmax.f32 %v584_v24, 0.0 }
 0x15d   :  { %v205_v61 = vadd.f32 %v204_v30, %v203_v27  ;;  %v604_v44 = vadd.f32 %v603_v39, %v589_v37  ;;  %v601_v15 = vmax.f32 %v585_v5, 0.0 }
 0x15f   :  { %v206_v32 = vrot.slane %v205_v61, 2  ;;  %v605_v49 = vadd.f32 %v604_v44, %v590_v38 }
 0x161   :  { %v207_v35 = vadd.f32 %v206_v32, %v205_v61  ;;  %v606_v52 = vadd.f32 %v605_v49, %v591_v48  ;;  %v4598_v32 = vld [vmem:[#allocation7 + $0x2] ss:$0 sm:$0xff] }
 0x163   :  { %v208_v40 = vrot.slane %v207_v35, 1  ;;  %v607_v43 = vadd.f32 %v606_v52, %v592_v50 }
 0x165   :  { %v209_v45 = vadd.f32 %v208_v40, %v207_v35  ;;  %v608_v58 = vadd.f32 %v607_v43, %v593_v54 }
 0x167   :  { %v210_v42 = vmul.f32 0.0625, %v209_v45  ;;  %v609_v63 = vadd.f32 %v608_v58, %v594_v57 }
 0x169   :  { %v211_v53 = vadd.f32 1e-05, %v210_v42  ;;  %v610_v3 = vadd.f32 %v609_v63, %v595_v62 }
 0x16b   :  { %5686 = vrsqrt.f32 %v211_v53  ;;  %v611_v23 = vadd.f32 %v610_v3, %v596_v2 }
 0x16d   :  { %v612_v25 = vadd.f32 %v611_v23, %v597_v18 }
 0x16f   :  { %v613_v61 = vadd.f32 %v612_v25, %v598_v4 }
 0x171   :  { %v614_v11 = vadd.f32 %v613_v61, %v599_v7 }
 0x173   :  { %v615_v39 = vadd.f32 %v614_v11, %v600_v6 }
 0x175   :  { %v5687_v27 = vpop.eup %5686  ;;  %v616_v16 = vadd.f32 %v615_v39, %v601_v15 }
 0x176   :  { %v213_v29 = vmul.f32 %v5687_v27, %v199_v20  ;;  %v214_v30 = vmul.f32 %v5687_v27, %v200_v22 }
 0x177   :  { %v617_v41 = vrot.slane %v616_v16, 4 }
 0x178   :  { %v220_v10 = vmul.f32 %v4597_v28, %v213_v29  ;;  %v221_v33 = vmul.f32 %v4597_v28, %v214_v30 }
 0x179   :  { %v618_v17 = vadd.f32 %v617_v41, %v616_v16 }
 0x17a   :  { %v227_v35 = vadd.f32 %v4598_v32, %v220_v10  ;;  %v228_v36 = vadd.f32 %v4598_v32, %v221_v33 }
 0x17b   :  { %v619_v20 = vrot.slane %v618_v17, 2 }
 0x17c   :  { %v6040_v40 = vpack.c.bf16 %v228_v36, %v227_v35 }
 0x17d   :  { %v620_v22 = vadd.f32 %v619_v20, %v618_v17 }
 0x17e   :  { %876 = vmatmul.mubr.bf16.vlgmr.msra.gmra.mrb[4].mxu0 %v6040_v40 }
 0x17f   :  { %v621_v26 = vrot.slane %v620_v22, 1 }
 0x181   :  { %v622_v44 = vadd.f32 %v621_v26, %v620_v22  ;;  %v4616_v26 = vld [vmem:[#allocation7 + $0x4] ss:$0 sm:$0xff] }
 0x183   :  { %v624_v45 = vmul.f32 0.0078125, %v622_v44 }
 0x185   :  { %v625_v46 = vsub.f32 %v586_v13, %v624_v45  ;;  %v626_v49 = vsub.f32 %v587_v19, %v624_v45  ;;  %v627_v42 = vsub.f32 %v588_v34, %v624_v45  ;;  %v628_v51 = vsub.f32 %v589_v37, %v624_v45 }
 0x186   :  { %v629_v52 = vsub.f32 %v590_v38, %v624_v45  ;;  %v630_v53 = vsub.f32 %v591_v48, %v624_v45  ;;  %v631_v55 = vsub.f32 %v592_v50, %v624_v45  ;;  %v632_v43 = vsub.f32 %v593_v54, %v624_v45 }
 0x187   :  { %v6051_v56 = vsub.f32 %v594_v57, %v624_v45  ;;  %v6053_v58 = vsub.f32 %v595_v62, %v624_v45  ;;  %v6055_v60 = vsub.f32 %v596_v2, %v624_v45  ;;  %v6057_v14 = vsub.f32 %v597_v18, %v624_v45 }
 0x188   :  { %v6059_v31 = vsub.f32 %v598_v4, %v624_v45  ;;  %v6061_v13 = vsub.f32 %v599_v7, %v624_v45  ;;  %v6063_v12 = vsub.f32 %v600_v6, %v624_v45  ;;  %v6065_v8 = vsub.f32 %v601_v15, %v624_v45 }
 0x189   :  { %v641_v19 = vmul.f32 %v625_v46, %v625_v46  ;;  %v642_v34 = vmul.f32 %v626_v49, %v626_v49  ;;  %v643_v37 = vmul.f32 %v627_v42, %v627_v42  ;;  %v644_v48 = vmul.f32 %v628_v51, %v628_v51 }
 0x18a   :  { %v645_v54 = vmul.f32 %v629_v52, %v629_v52  ;;  %v646_v62 = vmul.f32 %v630_v53, %v630_v53  ;;  %v647_v47 = vmul.f32 %v631_v55, %v631_v55  ;;  %v648_v3 = vmul.f32 %v632_v43, %v632_v43 }
 0x18b   :  { %v657_v38 = vadd.f32 %v642_v34, %v641_v19  ;;  %v649_v18 = vmul.f32 %v6051_v56, %v6051_v56  ;;  %v650_v24 = vmul.f32 %v6053_v58, %v6053_v58  ;;  %v651_v25 = vmul.f32 %v6055_v60, %v6055_v60 }
 0x18c   :  { %v652_v28 = vmul.f32 %v6057_v14, %v6057_v14  ;;  %v653_v29 = vmul.f32 %v6059_v31, %v6059_v31  ;;  %v654_v7 = vmul.f32 %v6061_v13, %v6061_v13  ;;  %v655_v32 = vmul.f32 %v6063_v12, %v6063_v12 }
 0x18d   :  { %v658_v50 = vadd.f32 %v657_v38, %v643_v37  ;;  %v656_v33 = vmul.f32 %v6065_v8, %v6065_v8  ;;  %v4617_v37 = vld [vmem:[#allocation7 + $0x5] ss:$0 sm:$0xff] }
 0x18f   :  { %v659_v57 = vadd.f32 %v658_v50, %v644_v48 }
 0x191   :  { %v660_v63 = vadd.f32 %v659_v57, %v645_v54 }
 0x193   :  { %v661_v2 = vadd.f32 %v660_v63, %v646_v62 }
 0x195   :  { %v662_v9 = vadd.f32 %v661_v2, %v647_v47 }
 0x197   :  { %v663_v23 = vadd.f32 %v662_v9, %v648_v3 }
 0x199   :  { %v664_v4 = vadd.f32 %v663_v23, %v649_v18 }
 0x19b   :  { %v665_v27 = vadd.f32 %v664_v4, %v650_v24 }
 0x19d   :  { %v666_v5 = vadd.f32 %v665_v27, %v651_v25 }
 0x19f   :  { %v667_v30 = vadd.f32 %v666_v5, %v652_v28 }
 0x1a1   :  { %v668_v61 = vadd.f32 %v667_v30, %v653_v29 }
 0x1a3   :  { %v669_v10 = vadd.f32 %v668_v61, %v654_v7 }
 0x1a5   :  { %v670_v6 = vadd.f32 %v669_v10, %v655_v32 }
 0x1a7   :  { %v671_v11 = vadd.f32 %v670_v6, %v656_v33 }
 0x1a9   :  { %v672_v35 = vrot.slane %v671_v11, 4 }
 0x1ab   :  { %v673_v36 = vadd.f32 %v672_v35, %v671_v11 }
 0x1ad   :  { %v674_v15 = vrot.slane %v673_v36, 2 }
 0x1af   :  { %v675_v39 = vadd.f32 %v674_v15, %v673_v36 }
 0x1b1   :  { %v676_v16 = vrot.slane %v675_v39, 1 }
 0x1b3   :  { %v677_v41 = vadd.f32 %v676_v16, %v675_v39 }
 0x1b5   :  { %v678_v17 = vmul.f32 0.0078125, %v677_v41 }
 0x1b7   :  { %v679_v20 = vadd.f32 1e-05, %v678_v17 }
 0x1b9   :  { %5688 = vrsqrt.f32 %v679_v20  ;;  %v5560_v20 = vld [vmem:[#allocation4 + $0x90] sm:$0xff]  }
 0x1c3   :  { %v5689_v22 = vpop.eup %5688 }
 0x1c4   :  { %v681_v44 = vmul.f32 %v5689_v22, %v625_v46  ;;  %v682_v45 = vmul.f32 %v5689_v22, %v626_v49  ;;  %v683_v19 = vmul.f32 %v5689_v22, %v627_v42  ;;  %v684_v34 = vmul.f32 %v5689_v22, %v628_v51 }
 0x1c5   :  { %v685_v38 = vmul.f32 %v5689_v22, %v629_v52  ;;  %v686_v48 = vmul.f32 %v5689_v22, %v630_v53  ;;  %v687_v50 = vmul.f32 %v5689_v22, %v631_v55  ;;  %v688_v54 = vmul.f32 %v5689_v22, %v632_v43  ;;  %v5558_v55 = vld [vmem:[#allocation4 + $0x80] sm:$0xff]  }
 0x1c6   :  { %v702_v57 = vmul.f32 %v4616_v26, %v681_v44  ;;  %v703_v62 = vmul.f32 %v4616_v26, %v682_v45  ;;  %v704_v63 = vmul.f32 %v4616_v26, %v683_v19  ;;  %v705_v47 = vmul.f32 %v4616_v26, %v684_v34  ;;  %v5566_v44 = vld [vmem:[#allocation4 + $0x180] sm:$0xff]   ;;  %v5567_v19 = vld [vmem:[#allocation4 + $0x188] sm:$0xff]  }
 0x1c7   :  { %v706_v2 = vmul.f32 %v4616_v26, %v685_v38  ;;  %v707_v3 = vmul.f32 %v4616_v26, %v686_v48  ;;  %v708_v9 = vmul.f32 %v4616_v26, %v687_v50  ;;  %v709_v18 = vmul.f32 %v4616_v26, %v688_v54  ;;  %5054 = vmatprep.subr.bf16.mxu0 %v5566_v44  ;;  %v5568_v38 = vld [vmem:[#allocation4 + $0x190] sm:$0xff]   ;;  %v5569_v48 = vld [vmem:[#allocation4 + $0x198] sm:$0xff]   ;;  %v5563_v50 = vld [vmem:[#allocation4 + $0xa8] sm:$0xff]  }
 0x1c8   :  { %v723_v23 = vadd.f32 %v4617_v37, %v702_v57  ;;  %v724_v24 = vadd.f32 %v4617_v37, %v703_v62  ;;  %v725_v4 = vadd.f32 %v4617_v37, %v704_v63  ;;  %v726_v46 = vadd.f32 %v4617_v37, %v705_v47  ;;  %5055 = vmatpush3.bf16.msra.mxu0 %v5566_v44  ;;  %v5570_v54 = vld [vmem:[#allocation4 + $0x1a0] sm:$0xff]   ;;  %v5564_v57 = vld [vmem:[#allocation4 + $0xb0] sm:$0xff]   ;;  %v5565_v62 = vld [vmem:[#allocation4 + $0xb8] sm:$0xff]  }
 0x1c9   :  { %v727_v49 = vadd.f32 %v4617_v37, %v706_v2  ;;  %v728_v42 = vadd.f32 %v4617_v37, %v707_v3  ;;  %v729_v51 = vadd.f32 %v4617_v37, %v708_v9  ;;  %v730_v25 = vadd.f32 %v4617_v37, %v709_v18  ;;  %5056 = vmatprep.subr.bf16.mxu0 %v5567_v19  ;;  %v5571_v63 = vld [vmem:[#allocation4 + $0x1a8] sm:$0xff]   ;;  %v5572_v47 = vld [vmem:[#allocation4 + $0x1b0] sm:$0xff]   ;;  %v5573_v2 = vld [vmem:[#allocation4 + $0x1b8] sm:$0xff]  }
 0x1ca   :  { %v6083_v52 = vpack.c.bf16 %v724_v24, %v723_v23  ;;  %v6085_v53 = vpack.c.bf16 %v726_v46, %v725_v4  ;;  %v689_v43 = vmul.f32 %v5689_v22, %v6051_v56  ;;  %v690_v27 = vmul.f32 %v5689_v22, %v6053_v58 }
 0x1cb   :  { %v6089_v28 = vpack.c.bf16 %v728_v42, %v727_v49  ;;  %v6091_v5 = vpack.c.bf16 %v730_v25, %v729_v51  ;;  %v691_v29 = vmul.f32 %v5689_v22, %v6055_v60  ;;  %v692_v30 = vmul.f32 %v5689_v22, %v6057_v14  ;;  %v5559_v60 = vld [vmem:[#allocation4 + $0x88] sm:$0xff]  }
 0x1cc   :  { %7121 = vst [vmem:[#allocation12_spill] sm:$0xff] %v6083_v52  ;;  %7122 = vst [vmem:[#allocation13_spill] sm:$0xff] %v6085_v53  ;;  %5038 = vmatprep.mubr.bf16.mxu1 %v6083_v52  ;;  %v710_v7 = vmul.f32 %v4616_v26, %v689_v43  ;;  %v711_v61 = vmul.f32 %v4616_v26, %v690_v27  ;;  %v693_v32 = vmul.f32 %v5689_v22, %v6059_v31 }
 0x1cd   :  { %7123 = vst [vmem:[#allocation14_spill] sm:$0xff] %v6089_v28  ;;  %7124 = vst [vmem:[#allocation15_spill] sm:$0xff] %v6091_v5  ;;  %v694_v10 = vmul.f32 %v5689_v22, %v6061_v13  ;;  %5039 = vmatmul.mubr.bf16.vlgmr.msra.gmra.mrb[4].mxu1 %v6085_v53  ;;  %v712_v56 = vmul.f32 %v4616_v26, %v691_v29  ;;  %v713_v58 = vmul.f32 %v4616_v26, %v692_v30 }
 0x1ce   :  { %v695_v33 = vmul.f32 %v5689_v22, %v6063_v12  ;;  %v696_v6 = vmul.f32 %v5689_v22, %v6065_v8  ;;  %5042 = vmatprep.mubr.bf16.mxu1 %v6089_v28  ;;  %5087 = vmatpush3.bf16.msra.mxu1 %v5558_v55  ;;  %v731_v14 = vadd.f32 %v4617_v37, %v710_v7 }
 0x1cf   :  { %v732_v11 = vadd.f32 %v4617_v37, %v711_v61  ;;  %v714_v35 = vmul.f32 %v4616_v26, %v693_v32  ;;  %5088 = vmatprep.subr.bf16.mxu1 %v7110_v0  ;;  %v733_v31 = vadd.f32 %v4617_v37, %v712_v56  ;;  %v734_v36 = vadd.f32 %v4617_v37, %v713_v58 }
 0x1d0   :  { %v715_v13 = vmul.f32 %v4616_v26, %v694_v10  ;;  %v716_v15 = vmul.f32 %v4616_v26, %v695_v33  ;;  %v717_v41 = vmul.f32 %v4616_v26, %v696_v6  ;;  %v5561_v26 = vld [vmem:[#allocation4 + $0x98] sm:$0xff]   ;;  %5057 = vmatpush3.bf16.msra.mxu0 %v5567_v19 }
 0x1d1   :  { %v6103_v39 = vpack.c.bf16 %v732_v11, %v731_v14  ;;  %v735_v16 = vadd.f32 %v4617_v37, %v714_v35  ;;  %v6105_v12 = vpack.c.bf16 %v734_v36, %v733_v31  ;;  %5058 = vmatprep.subr.bf16.mxu0 %v5568_v38 }
 0x1d2   :  { %v736_v8 = vadd.f32 %v4617_v37, %v715_v13  ;;  %v737_v17 = vadd.f32 %v4617_v37, %v716_v15  ;;  %5089 = vmatpush3.bf16.msra.mxu1 %v5559_v60  ;;  %v738_v22 = vadd.f32 %v4617_v37, %v717_v41  ;;  %v5562_v37 = vld [vmem:[#allocation4 + $0xa0] sm:$0xff]  }
 0x1d3   :  { %7125 = vst [vmem:[#allocation16_spill] sm:$0xff] %v6103_v39  ;;  %7126 = vst [vmem:[#allocation17_spill] sm:$0xff] %v6105_v12  ;;  %5090 = vmatprep.subr.bf16.mxu1 %v7110_v0 }
 0x1d4   :  { %v6108_v45 = vpack.c.bf16 %v736_v8, %v735_v16  ;;  %v6110_v34 = vpack.c.bf16 %v738_v22, %v737_v17  ;;  %5059 = vmatpush3.bf16.msra.mxu0 %v5568_v38 }
 0x1d5   :  { %5043 = vmatmul.mubr.bf16.gmra.mrb[8].mxu1 %v6091_v5  ;;  %5060 = vmatprep.subr.bf16.mxu0 %v5569_v48 }
 0x1d6   :  { %7127 = vst [vmem:[#allocation18_spill] sm:$0xff] %v6108_v45  ;;  %7128 = vst [vmem:[#allocation19_spill] sm:$0xff] %v6110_v34  ;;  %5046 = vmatprep.mubr.bf16.mxu1 %v6103_v39  ;;  %5091 = vmatpush3.bf16.msra.mxu1 %v5560_v20 }
 0x1d7   :  { %5092 = vmatprep.subr.bf16.mxu1 %v7110_v0 }
 0x1d8   :  { %5061 = vmatpush3.bf16.msra.mxu0 %v5569_v48 }
 0x1d9   :  { %5062 = vmatprep.subr.bf16.mxu0 %v5570_v54 }
 0x1da   :  { %5093 = vmatpush3.bf16.msra.mxu1 %v5561_v26 }
 0x1db   :  { %5094 = vmatprep.subr.bf16.mxu1 %v7110_v0 }
 0x1dc   :  { %5063 = vmatpush3.bf16.msra.mxu0 %v5570_v54 }
 0x1dd   :  { %5047 = vmatmul.mubr.bf16.gmra.mrb[12].mxu1 %v6105_v12  ;;  %5064 = vmatprep.subr.bf16.mxu0 %v5571_v63 }
 0x1de   :  { %5050 = vmatprep.mubr.bf16.mxu1 %v6108_v45  ;;  %5095 = vmatpush3.bf16.msra.mxu1 %v5562_v37 }
 0x1df   :  { %5096 = vmatprep.subr.bf16.mxu1 %v7110_v0 }
 0x1e0   :  { %5065 = vmatpush3.bf16.msra.mxu0 %v5571_v63 }
 0x1e1   :  { %5066 = vmatprep.subr.bf16.mxu0 %v5572_v47 }
 0x1e2   :  { %5097 = vmatpush3.bf16.msra.mxu1 %v5563_v50 }
 0x1e3   :  { %5098 = vmatprep.subr.bf16.mxu1 %v7110_v0 }
 0x1e4   :  { %5067 = vmatpush3.bf16.msra.mxu0 %v5572_v47 }
 0x1e5   :  { %5051 = vmatmul.mubr.bf16.gmra.mrb[16].mxu1 %v6110_v34  ;;  %5068 = vmatprep.subr.bf16.mxu0 %v5573_v2 }
 0x1e6   :  { %5099 = vmatpush3.bf16.msra.mxu1 %v5564_v57  ;;  %5102 = vmatprep.mubr.msk.bf16.mxu1 %vm5839_vm0, %v7110_v0 }
 0x1e7   :  { %5100 = vmatprep.subr.bf16.mxu1 %v7110_v0 }
 0x1e8   :  { %5069 = vmatpush3.bf16.msra.mxu0 %v5573_v2 }
 0x1e9   :  { %5106 = vmatprep.subr.bf16.mxu0 %v7110_v0 }
 0x1ea   :  { %5101 = vmatpush3.bf16.msra.mxu1 %v5565_v62 }
 0x1eb   :  { %5126 = vmatprep.subr.bf16.mxu1 %v7110_v0 }
 0x1ed   :  { %5103 = vmatmul.mubr.bf16.vlgmr.msra.gmra.mrb[20].mxu1 %v6040_v40 }
 0x1ee   :  { %5142 = vmatprep.mubr.msk.bf16.mxu1 %vm5839_vm0, %v7110_v0 }
 0x251   :  { %v877_v3 = vpop.f32.mrb[4].mxu0 }
 0x252   :  { %v888_v9 = vcombine.high %v877_v3, %v877_v3  ;;  %v895_v18 = vrot.slane %v877_v3, %v5949_v59  ;;  %v879_v23 = vpop.f32.mrb[5].mxu0 }
 0x253   :  { %v881_v24 = vpop.f32.mrb[6].mxu0 }
 0x254   :  { %v902_v4 = vrot.slane %v888_v9, %v5949_v59  ;;  %v903_v46 = vcombine.high %v895_v18, %v895_v18  ;;  %v911_v49 = vrot.slane %v895_v18, %v5949_v59  ;;  %v937_v42 = vcombine.high %v881_v24, %v881_v24  ;;  %v883_v51 = vpop.f32.mrb[7].mxu0 }
 0x255   :  { %v944_v25 = vrot.slane %v881_v24, %v5949_v59 }
 0x256   :  { %v904_v55 = vcombine.high %v902_v4, %v902_v4  ;;  %v918_v43 = vrot.slane %v902_v4, %v5949_v59  ;;  %v925_v27 = vrot.slane %v903_v46, %v5949_v59  ;;  %v933_v29 = vcombine.high %v911_v49, %v911_v49 }
 0x257   :  { %v951_v30 = vrot.slane %v937_v42, %v5949_v59  ;;  %v952_v7 = vcombine.high %v944_v25, %v944_v25  ;;  %v960_v61 = vrot.slane %v944_v25, %v5949_v59  ;;  %v989_v32 = vrot.slane %v911_v49, %v5971_v21 }
 0x258   :  { %v932_v10 = vrot.slane %v904_v55, %v5949_v59  ;;  %v997_v56 = vrot.slane %v933_v29, %v5971_v21  ;;  %v935_v58 = vcombine.high %v925_v27, %v925_v27  ;;  %v993_v33 = vrot.slane %v925_v27, %v5971_v21  ;;  %v6167_v27 = vld [vmem:[#allocation7 + $0xa] ss:$0 sm:$0xff] }
 0x259   :  { %v953_v6 = vcombine.high %v951_v30, %v951_v30  ;;  %v967_v60 = vrot.slane %v951_v30, %v5949_v59  ;;  %v974_v14 = vrot.slane %v952_v7, %v5949_v59  ;;  %v982_v11 = vcombine.high %v960_v61, %v960_v61 }
 0x25a   :  { %v1068_v35 = vadd.f32 %v997_v56, %v879_v23  ;;  %v1066_v31 = vadd.f32 %v989_v32, %v879_v23  ;;  %v1001_v36 = vrot.slane %v935_v58, %v5971_v21  ;;  %v1067_v13 = vadd.f32 %v993_v33, %v879_v23 }
 0x25b   :  { %v981_v15 = vrot.slane %v953_v6, %v5949_v59  ;;  %v934_v16 = vcombine.high %v918_v43, %v918_v43  ;;  %v1005_v41 = vrot.slane %v918_v43, %v5971_v21  ;;  %v936_v8 = vcombine.high %v932_v10, %v932_v10 }
 0x25c   :  { %v1069_v17 = vadd.f32 %v1001_v36, %v879_v23  ;;  %v1009_v20 = vrot.slane %v932_v10, %v5971_v21  ;;  %v1029_v22 = vrot.slane %v982_v11, %v5971_v21  ;;  %v1021_v44 = vrot.slane %v960_v61, %v5971_v21 }
 0x25d   :  { %v1013_v19 = vrot.slane %v934_v16, %v5971_v21  ;;  %v1070_v26 = vadd.f32 %v1005_v41, %v879_v23  ;;  %v1017_v38 = vrot.slane %v936_v8, %v5971_v21  ;;  %v984_v37 = vcombine.high %v974_v14, %v974_v14 }
 0x25e   :  { %v1071_v48 = vadd.f32 %v1009_v20, %v879_v23  ;;  %v1076_v50 = vadd.f32 %v1029_v22, %v883_v51  ;;  %v1074_v54 = vadd.f32 %v1021_v44, %v883_v51  ;;  %v1025_v57 = vrot.slane %v974_v14, %v5971_v21 }
 0x25f   :  { %v1072_v62 = vadd.f32 %v1013_v19, %v879_v23  ;;  %v1073_v63 = vadd.f32 %v1017_v38, %v879_v23  ;;  %v1033_v47 = vrot.slane %v984_v37, %v5971_v21  ;;  %v983_v2 = vcombine.high %v967_v60, %v967_v60 }
 0x260   :  { %v6153_v3 = vadd.f32 %v1025_v57, %v883_v51  ;;  %v1037_v9 = vrot.slane %v967_v60, %v5971_v21  ;;  %v985_v18 = vcombine.high %v981_v15, %v981_v15  ;;  %v1041_v24 = vrot.slane %v981_v15, %v5971_v21 }
 0x261   :  { %v1077_v4 = vadd.f32 %v1033_v47, %v883_v51  ;;  %v1045_v46 = vrot.slane %v983_v2, %v5971_v21 }
 0x262   :  { %v6158_v49 = vadd.f32 %v1037_v9, %v883_v51  ;;  %v1049_v42 = vrot.slane %v985_v18, %v5971_v21  ;;  %v6161_v25 = vadd.f32 %v1041_v24, %v883_v51 }
 0x263   :  { %v6163_v23 = vadd.f32 %v1045_v46, %v883_v51 }
 0x264   :  { %v6165_v55 = vadd.f32 %v1049_v42, %v883_v51 }
 0x2a0   :  { %v5040_v43 = vpop.f32.mrb[4].mxu1 }
 0x2a1   :  { %v1245_v29 = vadd.f32 %v5040_v43, %v1068_v35  ;;  %v1180_v30 = vpop.f32.mrb[5].mxu1 }
 0x2a2   :  { %v1243_v7 = vadd.f32 %v1180_v30, %v1066_v31  ;;  %v5041_v61 = vpop.f32.mrb[6].mxu1 }
 0x2a3   :  { %v1266_v32 = vadd.f32 %v6167_v27, %v1245_v29  ;;  %v1246_v10 = vadd.f32 %v5041_v61, %v1069_v17  ;;  %v1183_v56 = vpop.f32.mrb[7].mxu1  ;;  %v5574_v17 = vld [vmem:[#allocation4 + $0x40] sm:$0xff]   ;;  %v5576_v29 = vld [vmem:[#allocation4 + $0x50] sm:$0xff]  }
 0x2a4   :  { %v1264_v58 = vadd.f32 %v6167_v27, %v1243_v7  ;;  %v1244_v33 = vadd.f32 %v1183_v56, %v1067_v13  ;;  %v5577_v56 = vld [vmem:[#allocation4 + $0x58] sm:$0xff]  }
 0x2a5   :  { %v1267_v6 = vadd.f32 %v6167_v27, %v1246_v10  ;;  %v1282_v51 = vmax.f32 %v1266_v32, 0.0 }
 0x2a6   :  { %v1265_v60 = vadd.f32 %v6167_v27, %v1244_v33  ;;  %v1280_v11 = vmax.f32 %v1264_v58, 0.0 }
 0x2a7   :  { %v1283_v14 = vmax.f32 %v1267_v6, 0.0 }
 0x2a8   :  { %v1281_v36 = vmax.f32 %v1265_v60, 0.0  ;;  %v5044_v15 = vpop.f32.mrb[8].mxu1 }
 0x2a9   :  { %v1297_v35 = vpack.c.bf16 %v1283_v14, %v1282_v51  ;;  %v1249_v16 = vadd.f32 %v5044_v15, %v1072_v62  ;;  %v1196_v31 = vpop.f32.mrb[9].mxu1  ;;  %v5575_v62 = vld [vmem:[#allocation4 + $0x48] sm:$0xff]  }
 0x2aa   :  { %v1247_v41 = vadd.f32 %v1196_v31, %v1070_v26  ;;  %v5045_v8 = vpop.f32.mrb[10].mxu1  ;;  %v1296_v20 = vpack.c.bf16 %v1281_v36, %v1280_v11 }
 0x2ab   :  { %v1270_v22 = vadd.f32 %v6167_v27, %v1249_v16  ;;  %v1250_v44 = vadd.f32 %v5045_v8, %v1073_v63  ;;  %v1199_v13 = vpop.f32.mrb[11].mxu1 }
 0x2ac   :  { %v1268_v19 = vadd.f32 %v6167_v27, %v1247_v41  ;;  %v1248_v38 = vadd.f32 %v1199_v13, %v1071_v48  ;;  %5070 = vmatprep.mubr.bf16.mxu0 %v1296_v20 }
 0x2ad   :  { %v1271_v37 = vadd.f32 %v6167_v27, %v1250_v44  ;;  %5071 = vmatmul.mubr.bf16.vlgmr.msra.gmra.mrb[8].mxu0 %v1297_v35  ;;  %v1286_v47 = vmax.f32 %v1270_v22, 0.0  ;;  %v5578_v35 = vld [vmem:[#allocation4 + $0x60] sm:$0xff]  }
 0x2ae   :  { %v1269_v57 = vadd.f32 %v6167_v27, %v1248_v38  ;;  %5107 = vmatpush3.bf16.msra.mxu0 %v5574_v17  ;;  %v1284_v2 = vmax.f32 %v1268_v19, 0.0  ;;  %v5579_v17 = vld [vmem:[#allocation4 + $0x68] sm:$0xff]  }
 0x2af   :  { %v1287_v26 = vmax.f32 %v1271_v37, 0.0  ;;  %5108 = vmatprep.subr.bf16.mxu0 %v7110_v0 }
 0x2b0   :  { %v1285_v9 = vmax.f32 %v1269_v57, 0.0  ;;  %v5048_v18 = vpop.f32.mrb[12].mxu1 }
 0x2b1   :  { %v1253_v63 = vadd.f32 %v5048_v18, %v1076_v50  ;;  %v1212_v24 = vpop.f32.mrb[13].mxu1  ;;  %v1299_v46 = vpack.c.bf16 %v1287_v26, %v1286_v47  ;;  %v5582_v26 = vld [vmem:[#allocation4 + $0xc0] sm:$0xff]  }
 0x2b2   :  { %v1251_v42 = vadd.f32 %v1212_v24, %v1074_v54  ;;  %v5049_v48 = vpop.f32.mrb[14].mxu1  ;;  %5109 = vmatpush3.bf16.msra.mxu0 %v5575_v62  ;;  %v1298_v43 = vpack.c.bf16 %v1285_v9, %v1284_v2  ;;  %v5580_v62 = vld [vmem:[#allocation4 + $0x70] sm:$0xff]   ;;  %5127 = vmatpush3.bf16.msra.mxu1 %v5582_v26  ;;  %v5583_v2 = vld [vmem:[#allocation4 + $0xc8] sm:$0xff]  }
 0x2b3   :  { %v1274_v30 = vadd.f32 %v6167_v27, %v1253_v63  ;;  %v1254_v7 = vadd.f32 %v5049_v48, %v1077_v4  ;;  %v1215_v61 = vpop.f32.mrb[15].mxu1  ;;  %5110 = vmatprep.subr.bf16.mxu0 %v7110_v0  ;;  %5128 = vmatprep.subr.bf16.mxu1 %v7110_v0  ;;  %v6208_v9 = vld [vmem:[#allocation7 + $0xb] ss:$0 sm:$0xff]  ;;  %v5584_v24 = vld [vmem:[#allocation4 + $0xd0] sm:$0xff]  }
 0x2b4   :  { %v1272_v32 = vadd.f32 %v6167_v27, %v1251_v42  ;;  %v1252_v10 = vadd.f32 %v1215_v61, %v6153_v3  ;;  %5074 = vmatprep.mubr.bf16.mxu0 %v1298_v43 }
 0x2b5   :  { %v1275_v50 = vadd.f32 %v6167_v27, %v1254_v7  ;;  %5075 = vmatmul.mubr.bf16.gmra.mrb[12].mxu0 %v1299_v46  ;;  %v1290_v58 = vmax.f32 %v1274_v30, 0.0  ;;  %v5585_v30 = vld [vmem:[#allocation4 + $0xd8] sm:$0xff]  }
 0x2b6   :  { %v1273_v54 = vadd.f32 %v6167_v27, %v1252_v10  ;;  %5111 = vmatpush3.bf16.msra.mxu0 %v5576_v29  ;;  %v1288_v4 = vmax.f32 %v1272_v32, 0.0  ;;  %5129 = vmatpush3.bf16.msra.mxu1 %v5583_v2 }
 0x2b7   :  { %v1291_v33 = vmax.f32 %v1275_v50, 0.0  ;;  %5112 = vmatprep.subr.bf16.mxu0 %v7110_v0  ;;  %5130 = vmatprep.subr.bf16.mxu1 %v7110_v0 }
 0x2b8   :  { %v1289_v6 = vmax.f32 %v1273_v54, 0.0  ;;  %v5052_v60 = vpop.f32.mrb[16].mxu1 }
 0x2b9   :  { %v1257_v51 = vadd.f32 %v5052_v60, %v6163_v23  ;;  %v1228_v14 = vpop.f32.mrb[17].mxu1  ;;  %v1301_v11 = vpack.c.bf16 %v1291_v33, %v1290_v58 }
 0x2ba   :  { %v1255_v3 = vadd.f32 %v1228_v14, %v6158_v49  ;;  %v5053_v36 = vpop.f32.mrb[18].mxu1  ;;  %5113 = vmatpush3.bf16.msra.mxu0 %v5577_v56  ;;  %v1300_v15 = vpack.c.bf16 %v1289_v6, %v1288_v4  ;;  %5131 = vmatpush3.bf16.msra.mxu1 %v5584_v24  ;;  %v5586_v56 = vld [vmem:[#allocation4 + $0xe0] sm:$0xff]   ;;  %v5587_v14 = vld [vmem:[#allocation4 + $0xe8] sm:$0xff]  }
 0x2bb   :  { %v1278_v16 = vadd.f32 %v6167_v27, %v1257_v51  ;;  %v1258_v31 = vadd.f32 %v5053_v36, %v6165_v55  ;;  %v1231_v41 = vpop.f32.mrb[19].mxu1  ;;  %5114 = vmatprep.subr.bf16.mxu0 %v7110_v0  ;;  %5132 = vmatprep.subr.bf16.mxu1 %v7110_v0 }
 0x2bc   :  { %v1276_v8 = vadd.f32 %v6167_v27, %v1255_v3  ;;  %v1256_v20 = vadd.f32 %v1231_v41, %v6161_v25  ;;  %5078 = vmatprep.mubr.bf16.mxu0 %v1300_v15  ;;  %v5588_v41 = vld [vmem:[#allocation4 + $0xf0] sm:$0xff]  }
 0x2bd   :  { %v1279_v23 = vadd.f32 %v6167_v27, %v1258_v31  ;;  %5079 = vmatmul.mubr.bf16.gmra.mrb[16].mxu0 %v1301_v11  ;;  %v1294_v22 = vmax.f32 %v1278_v16, 0.0 }
 0x2be   :  { %v1277_v49 = vadd.f32 %v6167_v27, %v1256_v20  ;;  %5115 = vmatpush3.bf16.msra.mxu0 %v5578_v35  ;;  %v1292_v55 = vmax.f32 %v1276_v8, 0.0  ;;  %v5581_v27 = vld [vmem:[#allocation4 + $0x78] sm:$0xff]   ;;  %5133 = vmatpush3.bf16.msra.mxu1 %v5585_v30 }
 0x2bf   :  { %v1295_v44 = vmax.f32 %v1279_v23, 0.0  ;;  %5116 = vmatprep.subr.bf16.mxu0 %v7110_v0  ;;  %5134 = vmatprep.subr.bf16.mxu1 %v7110_v0 }
 0x2c0   :  { %v1293_v13 = vmax.f32 %v1277_v49, 0.0  ;;  %v6195_v19 = vpop.f32.mrb[20].mxu1 }
 0x2c1   :  { %v5104_v38 = vpop.f32.mrb[21].mxu1  ;;  %v1303_v37 = vpack.c.bf16 %v1295_v44, %v1294_v22 }
 0x2c2   :  { %v6197_v57 = vpop.f32.mrb[22].mxu1  ;;  %5117 = vmatpush3.bf16.msra.mxu0 %v5579_v17  ;;  %v1302_v25 = vpack.c.bf16 %v1293_v13, %v1292_v55  ;;  %5135 = vmatpush3.bf16.msra.mxu1 %v5586_v56  ;;  %v5589_v38 = vld [vmem:[#allocation4 + $0xf8] sm:$0xff]  }
 0x2c3   :  { %v5105_v47 = vpop.f32.mrb[23].mxu1  ;;  %5118 = vmatprep.subr.bf16.mxu0 %v7110_v0  ;;  %5136 = vmatprep.subr.bf16.mxu1 %v7110_v0 }
 0x2c4   :  { %5082 = vmatprep.mubr.bf16.mxu0 %v1302_v25 }
 0x2c5   :  { %5083 = vmatmul.mubr.bf16.gmra.mrb[20].mxu0 %v1303_v37 }
 0x2c6   :  { %5119 = vmatpush3.bf16.msra.mxu0 %v5580_v62  ;;  %5122 = vmatprep.mubr.msk.bf16.mxu0 %vm5839_vm0, %v7110_v0 }
 0x2c7   :  { %5120 = vmatprep.subr.bf16.mxu0 %v7110_v0  ;;  %5137 = vmatpush3.bf16.msra.mxu1 %v5587_v14 }
 0x2c8   :  { %5138 = vmatprep.subr.bf16.mxu1 %v7110_v0 }
 0x2ca   :  { %5121 = vmatpush3.bf16.msra.mxu0 %v5581_v27 }
 0x2cb   :  { %5146 = vmatprep.subr.bf16.mxu0 %v7110_v0  ;;  %5139 = vmatpush3.bf16.msra.mxu1 %v5588_v41 }
 0x2cc   :  { %5140 = vmatprep.subr.bf16.mxu1 %v7110_v0 }
 0x2cd   :  { %5123 = vmatmul.mubr.bf16.vlgmr.msra.gmra.mrb[24].mxu0 %v6040_v40 }
 0x2ce   :  { %5162 = vmatprep.mubr.msk.bf16.mxu0 %vm5839_vm0, %v7110_v0 }
 0x2cf   :  { %5141 = vmatpush3.bf16.msra.mxu1 %v5589_v38 }
 0x380   :  { %v5072_v18 = vpop.f32.mrb[8].mxu0 }
 0x381   :  { %v1407_v63 = vpop.f32.mrb[9].mxu0  ;;  %v6215_v43 = vadd.f32 %v5072_v18, %v6208_v9 }
 0x382   :  { %v6212_v46 = vadd.f32 %v6208_v9, %v1407_v63  ;;  %v5073_v42 = vpop.f32.mrb[10].mxu0 }
 0x383   :  { %v1410_v48 = vpop.f32.mrb[11].mxu0  ;;  %v6223_v61 = vadd.f32 %v5073_v42, %v6208_v9  ;;  %v1472_v10 = vmax.f32 %v6215_v43, 0.0 }
 0x384   :  { %v6218_v29 = vadd.f32 %v6208_v9, %v1410_v48  ;;  %v1470_v7 = vmax.f32 %v6212_v46, 0.0 }
 0x385   :  { %v1473_v33 = vmax.f32 %v6223_v61, 0.0 }
 0x386   :  { %v1471_v32 = vmax.f32 %v6218_v29, 0.0 }
 0x388   :  { %v1486_v50 = vadd.f32 %v1471_v32, %v1470_v7  ;;  %v5076_v54 = vpop.f32.mrb[12].mxu0 }
 0x389   :  { %v1423_v58 = vpop.f32.mrb[13].mxu0  ;;  %v6239_v11 = vadd.f32 %v5076_v54, %v6208_v9 }
 0x38a   :  { %v1487_v4 = vadd.f32 %v1486_v50, %v1472_v10  ;;  %v6236_v6 = vadd.f32 %v6208_v9, %v1423_v58  ;;  %v5077_v60 = vpop.f32.mrb[14].mxu0 }
 0x38b   :  { %v1426_v51 = vpop.f32.mrb[15].mxu0  ;;  %v6251_v16 = vadd.f32 %v5077_v60, %v6208_v9  ;;  %v1476_v8 = vmax.f32 %v6239_v11, 0.0 }
 0x38c   :  { %v1474_v3 = vmax.f32 %v6236_v6, 0.0  ;;  %v1488_v36 = vadd.f32 %v1487_v4, %v1473_v33  ;;  %v6245_v15 = vadd.f32 %v6208_v9, %v1426_v51 }
 0x38d   :  { %v1477_v17 = vmax.f32 %v6251_v16, 0.0 }
 0x38e   :  { %v1489_v35 = vadd.f32 %v1488_v36, %v1474_v3  ;;  %v1475_v31 = vmax.f32 %v6245_v15, 0.0 }
 0x390   :  { %v1490_v20 = vadd.f32 %v1489_v35, %v1475_v31  ;;  %v5080_v23 = vpop.f32.mrb[16].mxu0 }
 0x391   :  { %v1439_v49 = vpop.f32.mrb[17].mxu0  ;;  %v6265_v37 = vadd.f32 %v5080_v23, %v6208_v9 }
 0x392   :  { %v1491_v22 = vadd.f32 %v1490_v20, %v1476_v8  ;;  %v6262_v44 = vadd.f32 %v6208_v9, %v1439_v49  ;;  %v5081_v55 = vpop.f32.mrb[18].mxu0 }
 0x393   :  { %v1442_v13 = vpop.f32.mrb[19].mxu0  ;;  %v1451_v26 = vadd.f32 %v5081_v55, %v6208_v9  ;;  %v1480_v18 = vmax.f32 %v6265_v37, 0.0 }
 0x394   :  { %v1478_v25 = vmax.f32 %v6262_v44, 0.0  ;;  %v1492_v62 = vadd.f32 %v1491_v22, %v1477_v17  ;;  %v1443_v47 = vadd.f32 %v6208_v9, %v1442_v13 }
 0x395   :  { %v1481_v48 = vmax.f32 %v1451_v26, 0.0 }
 0x396   :  { %v1493_v27 = vadd.f32 %v1492_v62, %v1478_v25  ;;  %v1479_v2 = vmax.f32 %v1443_v47, 0.0 }
 0x398   :  { %v1494_v63 = vadd.f32 %v1493_v27, %v1479_v2  ;;  %v5084_v24 = vpop.f32.mrb[20].mxu0 }
 0x399   :  { %v1455_v42 = vpop.f32.mrb[21].mxu0  ;;  %v1464_v58 = vadd.f32 %v5084_v24, %v6208_v9  ;;  %v5591_v24 = vld [vmem:[#allocation4 + $0x108] sm:$0xff]  }
 0x39a   :  { %v1495_v30 = vadd.f32 %v1494_v63, %v1480_v18  ;;  %v1456_v50 = vadd.f32 %v6208_v9, %v1455_v42  ;;  %v5085_v54 = vpop.f32.mrb[22].mxu0 }
 0x39b   :  { %v1458_v56 = vpop.f32.mrb[23].mxu0  ;;  %v1467_v36 = vadd.f32 %v5085_v54, %v6208_v9  ;;  %v1484_v41 = vmax.f32 %v1464_v58, 0.0 }
 0x39c   :  { %v1482_v4 = vmax.f32 %v1456_v50, 0.0  ;;  %v1496_v60 = vadd.f32 %v1495_v30, %v1481_v48  ;;  %v1459_v51 = vadd.f32 %v6208_v9, %v1458_v56  ;;  %v5590_v9 = vld [vmem:[#allocation4 + $0x100] sm:$0xff]   ;;  %v5592_v30 = vld [vmem:[#allocation4 + $0x110] sm:$0xff]  }
 0x39d   :  { %v1485_v44 = vmax.f32 %v1467_v36, 0.0  ;;  %5147 = vmatpush3.bf16.msra.mxu0 %v5590_v9 }
 0x39e   :  { %v1497_v14 = vadd.f32 %v1496_v60, %v1482_v4  ;;  %v1483_v35 = vmax.f32 %v1459_v51, 0.0  ;;  %5148 = vmatprep.subr.bf16.mxu0 %v7110_v0  ;;  %v5593_v60 = vld [vmem:[#allocation4 + $0x118] sm:$0xff]  }
 0x3a0   :  { %v1498_v20 = vadd.f32 %v1497_v14, %v1483_v35  ;;  %v1921_v23 = vpop.f32.mrb[24].mxu0 }
 0x3a1   :  { %v6279_v49 = vadd.f32 %v1921_v23, %v6195_v19  ;;  %v5124_v22 = vpop.f32.mrb[25].mxu0  ;;  %5149 = vmatpush3.bf16.msra.mxu0 %v5591_v24 }
 0x3a2   :  { %v1499_v55 = vadd.f32 %v1498_v20, %v1484_v41  ;;  %v1924_v13 = vpop.f32.mrb[26].mxu0  ;;  %5150 = vmatprep.subr.bf16.mxu0 %v7110_v0 }
 0x3a3   :  { %v6282_v38 = vadd.f32 %v1924_v13, %v6197_v57  ;;  %v5125_v37 = vpop.f32.mrb[27].mxu0 }
 0x3a4   :  { %v1500_v62 = vadd.f32 %v1499_v55, %v1485_v44 }
 0x3a5   :  { %5151 = vmatpush3.bf16.msra.mxu0 %v5592_v30 }
 0x3a6   :  { %v1501_v47 = vrot.slane %v1500_v62, 4  ;;  %5152 = vmatprep.subr.bf16.mxu0 %v7110_v0 }
 0x3a8   :  { %v1502_v27 = vadd.f32 %v1501_v47, %v1500_v62 }
 0x3a9   :  { %5153 = vmatpush3.bf16.msra.mxu0 %v5593_v60 }
 0x3aa   :  { %v1503_v26 = vrot.slane %v1502_v27, 2  ;;  %5154 = vmatprep.subr.bf16.mxu0 %v7110_v0 }
 0x3ac   :  { %v1504_v63 = vadd.f32 %v1503_v26, %v1502_v27 }
 0x3ae   :  { %v1505_v19 = vrot.slane %v1504_v63, 1 }
 0x3b0   :  { %v1506_v42 = vadd.f32 %v1505_v19, %v1504_v63 }
 0x3b2   :  { %v1507_v50 = vmul.f32 0.0078125, %v1506_v42 }
 0x3b4   :  { %v6288_v57 = vsub.f32 %v1470_v7, %v1507_v50  ;;  %v6292_v54 = vsub.f32 %v1471_v32, %v1507_v50  ;;  %v6296_v56 = vsub.f32 %v1472_v10, %v1507_v50  ;;  %v6300_v58 = vsub.f32 %v1473_v33, %v1507_v50 }
 0x3b5   :  { %v6304_v51 = vsub.f32 %v1474_v3, %v1507_v50  ;;  %v6308_v46 = vsub.f32 %v1475_v31, %v1507_v50  ;;  %v6312_v29 = vsub.f32 %v1476_v8, %v1507_v50  ;;  %v6316_v43 = vsub.f32 %v1477_v17, %v1507_v50  ;;  %v5594_v31 = vld [vmem:[#allocation4 + $0x120] sm:$0xff]  }
 0x3b6   :  { %v6319_v7 = vsub.f32 %v1478_v25, %v1507_v50  ;;  %v6321_v61 = vsub.f32 %v1479_v2, %v1507_v50  ;;  %v6323_v32 = vsub.f32 %v1480_v18, %v1507_v50  ;;  %v6325_v10 = vsub.f32 %v1481_v48, %v1507_v50  ;;  %5155 = vmatpush3.bf16.msra.mxu0 %v5594_v31  ;;  %v5595_v25 = vld [vmem:[#allocation4 + $0x128] sm:$0xff]  }
 0x3b7   :  { %v6327_v33 = vsub.f32 %v1482_v4, %v1507_v50  ;;  %v6329_v6 = vsub.f32 %v1483_v35, %v1507_v50  ;;  %v6331_v11 = vsub.f32 %v1484_v41, %v1507_v50  ;;  %v6333_v3 = vsub.f32 %v1485_v44, %v1507_v50  ;;  %5156 = vmatprep.subr.bf16.mxu0 %v7110_v0 }
 0x3b8   :  { %v1524_v15 = vmul.f32 %v6288_v57, %v6288_v57  ;;  %v1525_v16 = vmul.f32 %v6292_v54, %v6292_v54  ;;  %v1526_v8 = vmul.f32 %v6296_v56, %v6296_v56  ;;  %v1527_v2 = vmul.f32 %v6300_v58, %v6300_v58 }
 0x3b9   :  { %v1528_v48 = vmul.f32 %v6304_v51, %v6304_v51  ;;  %v1529_v14 = vmul.f32 %v6308_v46, %v6308_v46  ;;  %v1530_v35 = vmul.f32 %v6312_v29, %v6312_v29  ;;  %v1531_v20 = vmul.f32 %v6316_v43, %v6316_v43 }
 0x3ba   :  { %v1540_v17 = vadd.f32 %v1525_v16, %v1524_v15  ;;  %5157 = vmatpush3.bf16.msra.mxu0 %v5595_v25  ;;  %v1532_v22 = vmul.f32 %v6319_v7, %v6319_v7  ;;  %v1533_v55 = vmul.f32 %v6321_v61, %v6321_v61  ;;  %v1534_v37 = vmul.f32 %v6323_v32, %v6323_v32 }
 0x3bb   :  { %5158 = vmatprep.subr.bf16.mxu0 %v7110_v0  ;;  %v1535_v47 = vmul.f32 %v6325_v10, %v6325_v10  ;;  %v1536_v26 = vmul.f32 %v6327_v33, %v6327_v33  ;;  %v1537_v63 = vmul.f32 %v6329_v6, %v6329_v6  ;;  %v1538_v19 = vmul.f32 %v6331_v11, %v6331_v11 }
 0x3bc   :  { %v1541_v18 = vadd.f32 %v1540_v17, %v1526_v8  ;;  %v1539_v30 = vmul.f32 %v6333_v3, %v6333_v3 }
 0x3be   :  { %v1542_v4 = vadd.f32 %v1541_v18, %v1527_v2 }
 0x3c0   :  { %v1543_v36 = vadd.f32 %v1542_v4, %v1528_v48 }
 0x3c2   :  { %v1544_v41 = vadd.f32 %v1543_v36, %v1529_v14 }
 0x3c4   :  { %v1545_v23 = vadd.f32 %v1544_v41, %v1530_v35 }
 0x3c6   :  { %v1546_v44 = vadd.f32 %v1545_v23, %v1531_v20 }
 0x3c8   :  { %v1547_v13 = vadd.f32 %v1546_v44, %v1532_v22  ;;  %v4652_v44 = vld [vmem:[#allocation7 + $0xc] ss:$0 sm:$0xff] }
 0x3ca   :  { %v1548_v62 = vadd.f32 %v1547_v13, %v1533_v55 }
 0x3cc   :  { %v1549_v27 = vadd.f32 %v1548_v62, %v1534_v37 }
 0x3ce   :  { %v1550_v9 = vadd.f32 %v1549_v27, %v1535_v47 }
 0x3d0   :  { %v1551_v24 = vadd.f32 %v1550_v9, %v1536_v26 }
 0x3d2   :  { %v1552_v42 = vadd.f32 %v1551_v24, %v1537_v63 }
 0x3d4   :  { %v1553_v50 = vadd.f32 %v1552_v42, %v1538_v19 }
 0x3d6   :  { %v1554_v60 = vadd.f32 %v1553_v50, %v1539_v30 }
 0x3d8   :  { %v1555_v15 = vrot.slane %v1554_v60, 4 }
 0x3da   :  { %v1556_v16 = vadd.f32 %v1555_v15, %v1554_v60 }
 0x3dc   :  { %v1557_v31 = vrot.slane %v1556_v16, 2 }
 0x3de   :  { %v1558_v8 = vadd.f32 %v1557_v31, %v1556_v16 }
 0x3e0   :  { %v1559_v17 = vrot.slane %v1558_v8, 1 }
 0x3e2   :  { %v1560_v25 = vadd.f32 %v1559_v17, %v1558_v8 }
 0x3e4   :  { %v1561_v2 = vmul.f32 0.0078125, %v1560_v25 }
 0x3e6   :  { %v1562_v18 = vadd.f32 1e-05, %v1561_v2 }
 0x3e8   :  { %5690 = vrsqrt.f32 %v1562_v18 }
 0x3f2   :  { %v5691_v48 = vpop.eup %5690 }
 0x3f3   :  { %v1564_v4 = vmul.f32 %v5691_v48, %v6288_v57  ;;  %v1565_v14 = vmul.f32 %v5691_v48, %v6292_v54  ;;  %v1566_v36 = vmul.f32 %v5691_v48, %v6296_v56  ;;  %v1567_v35 = vmul.f32 %v5691_v48, %v6300_v58 }
 0x3f4   :  { %v1568_v41 = vmul.f32 %v5691_v48, %v6304_v51  ;;  %v1569_v20 = vmul.f32 %v5691_v48, %v6308_v46  ;;  %v1570_v23 = vmul.f32 %v5691_v48, %v6312_v29  ;;  %v1571_v22 = vmul.f32 %v5691_v48, %v6316_v43  ;;  %v4653_v29 = vld [vmem:[#allocation7 + $0xd] ss:$0 sm:$0xff] }
 0x3f5   :  { %v1572_v55 = vmul.f32 %v5691_v48, %v6319_v7  ;;  %v1573_v13 = vmul.f32 %v5691_v48, %v6321_v61  ;;  %v1574_v57 = vmul.f32 %v5691_v48, %v6323_v32  ;;  %v1575_v54 = vmul.f32 %v5691_v48, %v6325_v10 }
 0x3f6   :  { %v1576_v56 = vmul.f32 %v5691_v48, %v6327_v33  ;;  %v1577_v58 = vmul.f32 %v5691_v48, %v6329_v6  ;;  %v1578_v51 = vmul.f32 %v5691_v48, %v6331_v11  ;;  %v1579_v46 = vmul.f32 %v5691_v48, %v6333_v3 }
 0x3f7   :  { %v1593_v37 = vmul.f32 %v4652_v44, %v1572_v55  ;;  %v1594_v43 = vmul.f32 %v4652_v44, %v1573_v13  ;;  %v1595_v62 = vmul.f32 %v4652_v44, %v1574_v57  ;;  %v1596_v47 = vmul.f32 %v4652_v44, %v1575_v54 }
 0x3f8   :  { %v1597_v7 = vmul.f32 %v4652_v44, %v1576_v56  ;;  %v1598_v27 = vmul.f32 %v4652_v44, %v1577_v58  ;;  %v1599_v61 = vmul.f32 %v4652_v44, %v1578_v51  ;;  %v1600_v26 = vmul.f32 %v4652_v44, %v1579_v46 }
 0x3f9   :  { %v6386_v32 = vadd.f32 %v4653_v29, %v1593_v37  ;;  %v6388_v10 = vadd.f32 %v4653_v29, %v1594_v43  ;;  %v6390_v33 = vadd.f32 %v4653_v29, %v1595_v62  ;;  %v6392_v6 = vadd.f32 %v4653_v29, %v1596_v47 }
 0x3fa   :  { %v6394_v11 = vadd.f32 %v4653_v29, %v1597_v7  ;;  %v6396_v3 = vadd.f32 %v4653_v29, %v1598_v27  ;;  %v6398_v9 = vadd.f32 %v4653_v29, %v1599_v61  ;;  %v6400_v63 = vadd.f32 %v4653_v29, %v1600_v26 }
 0x3fb   :  { %v1676_v24 = vrot.slane %v6388_v10, 4  ;;  %v1682_v19 = vrot.slane %v6390_v33, 4  ;;  %v1585_v50 = vmul.f32 %v4652_v44, %v1564_v4  ;;  %v1586_v60 = vmul.f32 %v4652_v44, %v1565_v14 }
 0x3fc   :  { %v1700_v30 = vrot.slane %v6396_v3, 4  ;;  %v1688_v16 = vrot.slane %v6392_v6, 4  ;;  %v1694_v31 = vrot.slane %v6394_v11, 4  ;;  %v1587_v8 = vmul.f32 %v4652_v44, %v1566_v36 }
 0x3fd   :  { %v6407_v15 = vadd.f32 %v1676_v24, %v6388_v10  ;;  %v6412_v17 = vadd.f32 %v1682_v19, %v6390_v33  ;;  %v1588_v2 = vmul.f32 %v4652_v44, %v1567_v35  ;;  %v1589_v18 = vmul.f32 %v4652_v44, %v1568_v41 }
 0x3fe   :  { %v1701_v25 = vadd.f32 %v1700_v30, %v6396_v3  ;;  %v1590_v48 = vmul.f32 %v4652_v44, %v1569_v20  ;;  %v1591_v55 = vmul.f32 %v4652_v44, %v1570_v23  ;;  %v1592_v13 = vmul.f32 %v4652_v44, %v1571_v22 }
 0x3ff   :  { %v6415_v4 = vadd.f32 %v4653_v29, %v1585_v50  ;;  %v6417_v57 = vadd.f32 %v4653_v29, %v1586_v60  ;;  %v6419_v54 = vadd.f32 %v4653_v29, %v1587_v8  ;;  %v6421_v56 = vadd.f32 %v4653_v29, %v1588_v2 }
 0x400   :  { %v1702_v14 = vrot.slane %v1701_v25, 2  ;;  %v6424_v36 = vadd.f32 %v1688_v16, %v6392_v6  ;;  %v6426_v58 = vadd.f32 %v4653_v29, %v1589_v18  ;;  %v6428_v51 = vadd.f32 %v4653_v29, %v1590_v48 }
 0x401   :  { %v6430_v35 = vadd.f32 %v4653_v29, %v1591_v55  ;;  %v1622_v20 = vrot.slane %v6415_v4, 4  ;;  %v1628_v23 = vrot.slane %v6417_v57, 4  ;;  %v1634_v22 = vrot.slane %v6419_v54, 4 }
 0x402   :  { %v1703_v41 = vadd.f32 %v1702_v14, %v1701_v25  ;;  %v1640_v44 = vrot.slane %v6421_v56, 4  ;;  %v1646_v46 = vrot.slane %v6426_v58, 4  ;;  %v1652_v37 = vrot.slane %v6428_v51, 4 }
 0x403   :  { %v1658_v43 = vrot.slane %v6430_v35, 4  ;;  %v6439_v62 = vadd.f32 %v4653_v29, %v1592_v13  ;;  %v1623_v47 = vadd.f32 %v1622_v20, %v6415_v4  ;;  %v1629_v7 = vadd.f32 %v1628_v23, %v6417_v57 }
 0x404   :  { %v1635_v27 = vadd.f32 %v1634_v22, %v6419_v54  ;;  %v1641_v61 = vadd.f32 %v1640_v44, %v6421_v56  ;;  %v1647_v26 = vadd.f32 %v1646_v46, %v6426_v58  ;;  %v1653_v24 = vadd.f32 %v1652_v37, %v6428_v51 }
 0x405   :  { %v1659_v19 = vadd.f32 %v1658_v43, %v6430_v35  ;;  %v1704_v30 = vrot.slane %v1703_v41, 1  ;;  %v1624_v50 = vrot.slane %v1623_v47, 2  ;;  %v1630_v60 = vrot.slane %v1629_v7, 2 }
 0x406   :  { %v1636_v16 = vrot.slane %v1635_v27, 2  ;;  %v1642_v29 = vrot.slane %v1641_v61, 2  ;;  %v1648_v8 = vrot.slane %v1647_v26, 2  ;;  %v1654_v25 = vrot.slane %v1653_v24, 2 }
 0x407   :  { %v1660_v2 = vrot.slane %v1659_v19, 2  ;;  %v1625_v18 = vadd.f32 %v1624_v50, %v1623_v47  ;;  %v1631_v48 = vadd.f32 %v1630_v60, %v1629_v7  ;;  %v1664_v13 = vrot.slane %v6439_v62, 4 }
 0x408   :  { %v1637_v55 = vadd.f32 %v1636_v16, %v1635_v27  ;;  %v1643_v14 = vadd.f32 %v1642_v29, %v1641_v61  ;;  %v1649_v20 = vadd.f32 %v1648_v8, %v1647_v26  ;;  %v1655_v23 = vadd.f32 %v1654_v25, %v1653_v24 }
 0x409   :  { %v1661_v22 = vadd.f32 %v1660_v2, %v1659_v19  ;;  %v1626_v44 = vrot.slane %v1625_v18, 1  ;;  %v1632_v46 = vrot.slane %v1631_v48, 1  ;;  %v1665_v43 = vadd.f32 %v1664_v13, %v6439_v62 }
 0x40a   :  { %v1638_v37 = vrot.slane %v1637_v55, 1  ;;  %v1695_v0 = vadd.f32 %v1694_v31, %v6394_v11  ;;  %v6451_v1 = vadd.f32 %v1704_v30, %v1703_v41  ;;  %v1644_v42 = vrot.slane %v1643_v14, 1 }
 0x40b   :  { %v1650_v34 = vrot.slane %v1649_v20, 1  ;;  %v6453_v47 = vadd.f32 %v1626_v44, %v1625_v18  ;;  %v1656_v7 = vrot.slane %v1655_v23, 1  ;;  %v1662_v27 = vrot.slane %v1661_v22, 1 }
 0x40c   :  { %v1666_v50 = vrot.slane %v1665_v43, 2  ;;  %v6455_v61 = vadd.f32 %v1632_v46, %v1631_v48  ;;  %v6457_v26 = vadd.f32 %v1638_v37, %v1637_v55  ;;  %v6459_v24 = vadd.f32 %v1644_v42, %v1643_v14 }
 0x40d   :  { %v6461_v19 = vadd.f32 %v1650_v34, %v1649_v20  ;;  %v7129_v31 = vrot.slane %v6386_v32, 4  ;;  %v1678_v30 = vrot.slane %v6407_v15, 2  ;;  %v1684_v16 = vrot.slane %v6412_v17, 2 }
 0x40e   :  { %v1667_v60 = vadd.f32 %v1666_v50, %v1665_v43  ;;  %v1690_v29 = vrot.slane %v6424_v36, 2  ;;  %v1696_v8 = vrot.slane %v1695_v0, 2  ;;  %v1706_v25 = vrot.slane %v6398_v9, 4 }
 0x40f   :  { %v1671_v41 = vadd.f32 %v7129_v31, %v6386_v32  ;;  %v1712_v2 = vrot.slane %v6400_v63, 4  ;;  %v1679_v34 = vadd.f32 %v1678_v30, %v6407_v15  ;;  %v1685_v48 = vadd.f32 %v1684_v16, %v6412_v17 }
 0x410   :  { %v1668_v42 = vrot.slane %v1667_v60, 1  ;;  %v1691_v55 = vadd.f32 %v1690_v29, %v6424_v36  ;;  %v1697_v13 = vadd.f32 %v1696_v8, %v1695_v0  ;;  %v1707_v14 = vadd.f32 %v1706_v25, %v6398_v9 }
 0x411   :  { %v1672_v18 = vrot.slane %v1671_v41, 2  ;;  %v1713_v20 = vadd.f32 %v1712_v2, %v6400_v63  ;;  %v1657_v44 = vadd.f32 %v1656_v7, %v1655_v23  ;;  %v1680_v37 = vrot.slane %v1679_v34, 1 }
 0x412   :  { %v1686_v43 = vrot.slane %v1685_v48, 1  ;;  %v1692_v50 = vrot.slane %v1691_v55, 1  ;;  %v1698_v31 = vrot.slane %v1697_v13, 1  ;;  %v1708_v45 = vrot.slane %v1707_v14, 2 }
 0x413   :  { %v1673_v46 = vadd.f32 %v1672_v18, %v1671_v41  ;;  %v1714_v12 = vrot.slane %v1713_v20, 2  ;;  %v1663_v39 = vadd.f32 %v1662_v27, %v1661_v22  ;;  %v6476_v5 = vadd.f32 %v1668_v42, %v1667_v60 }
 0x414   :  { %v1681_v17 = vadd.f32 %v1680_v37, %v1679_v34  ;;  %v1687_v36 = vadd.f32 %v1686_v43, %v1685_v48  ;;  %v1709_v0 = vadd.f32 %v1708_v45, %v1707_v14  ;;  %v1928_v16 = vpack.c.bf16 %v6453_v47, %v6453_v47 }
 0x415   :  { %v1674_v15 = vrot.slane %v1673_v46, 1  ;;  %v1715_v30 = vadd.f32 %v1714_v12, %v1713_v20  ;;  %v1693_v7 = vadd.f32 %v1692_v50, %v1691_v55  ;;  %v1699_v41 = vadd.f32 %v1698_v31, %v1697_v13 }
 0x416   :  { %v1929_v29 = vpack.c.bf16 %v6455_v61, %v6455_v61  ;;  %v1710_v22 = vrot.slane %v1709_v0, 1  ;;  %v1930_v60 = vpack.c.bf16 %v6457_v26, %v6457_v26  ;;  %v1931_v45 = vpack.c.bf16 %v6459_v24, %v6459_v24 }
 0x417   :  { %v1675_v23 = vadd.f32 %v1674_v15, %v1673_v46  ;;  %v1716_v27 = vrot.slane %v1715_v30, 1  ;;  %v1932_v12 = vpack.c.bf16 %v6461_v19, %v6461_v19  ;;  %v1933_v47 = vpack.c.bf16 %v1657_v44, %v1657_v44 }
 0x418   :  { %v1934_v8 = vpack.c.bf16 %v1663_v39, %v1663_v39  ;;  %v1711_v2 = vadd.f32 %v1710_v22, %v1709_v0  ;;  %v1937_v61 = vpack.c.bf16 %v1681_v17, %v1681_v17  ;;  %v1938_v18 = vpack.c.bf16 %v1687_v36, %v1687_v36 }
 0x419   :  { %v1936_v25 = vpack.c.bf16 %v1675_v23, %v1675_v23  ;;  %v1717_v42 = vadd.f32 %v1716_v27, %v1715_v30  ;;  %v1935_v34 = vpack.c.bf16 %v6476_v5, %v6476_v5  ;;  %v1939_v26 = vpack.c.bf16 %v1693_v7, %v1693_v7 }
 0x41a   :  { %v1940_v48 = vpack.c.bf16 %v1699_v41, %v1699_v41  ;;  %v1941_v24 = vpack.c.bf16 %v6451_v1, %v6451_v1  ;;  %v1942_v55 = vpack.c.bf16 %v1711_v2, %v1711_v2  ;;  %v1976_v13 = vunpack.c.l.b16 %v1928_v16 }
 0x41b   :  { %v1943_v19 = vpack.c.bf16 %v1717_v42, %v1717_v42  ;;  %v1977_v39 = vunpack.c.l.b16 %v1929_v29  ;;  %v1978_v14 = vunpack.c.l.b16 %v1930_v60  ;;  %v1979_v20 = vunpack.c.l.b16 %v1931_v45 }
 0x41c   :  { %v1980_v44 = vunpack.c.l.b16 %v1932_v12  ;;  %v1981_v46 = vunpack.c.l.b16 %v1933_v47  ;;  %v1982_v37 = vunpack.c.l.b16 %v1934_v8  ;;  %v1984_v43 = vunpack.c.l.b16 %v1936_v25 }
 0x41d   :  { %v1985_v50 = vunpack.c.l.b16 %v1937_v61  ;;  %v1986_v31 = vunpack.c.l.b16 %v1938_v18  ;;  %v1987_v15 = vunpack.c.l.b16 %v1939_v26  ;;  %v1988_v5 = vunpack.c.l.b16 %v1940_v48 }
 0x41e   :  { %v1989_v17 = vunpack.c.l.b16 %v1941_v24  ;;  %v1990_v36 = vunpack.c.l.b16 %v1942_v55  ;;  %v1993_v0 = vsel %vm1992_vm1, %v1977_v39, %v1976_v13  ;;  %v2267_v30 = vpack.c.bf16 %v6417_v57, %v6415_v4  ;;  %v6523_v13 = vld [vmem:[#allocation4 + $0x130] sm:$0xff]   ;;  %v5598_v39 = vld [vmem:[#allocation4 + $0x1c0] sm:$0xff]  }
 0x41f   :  { %v2006_v1 = vsel %vm1992_vm1, %v1985_v50, %v1984_v43  ;;  %v2268_v16 = vpack.c.bf16 %v6421_v56, %v6419_v54  ;;  %v1995_v23 = vsel %vm1994_vm2, %v1978_v14, %v1993_v0  ;;  %v2269_v41 = vpack.c.bf16 %v6428_v51, %v6426_v58  ;;  %5159 = vmatpush3.bf16.msra.mxu0 %v6523_v13  ;;  %v5599_v0 = vld [vmem:[#allocation4 + $0x1c8] sm:$0xff]   ;;  %v5704_v54 = vld [vmem:[#allocation4 + $0x90] sm:$0xff]   ;;  %v5705_v56 = vld [vmem:[#allocation4 + $0x98] sm:$0xff]  }
 0x420   :  { %v2007_v7 = vsel %vm1994_vm2, %v1986_v31, %v2006_v1  ;;  %v2270_v29 = vpack.c.bf16 %v6439_v62, %v6430_v35  ;;  %v1997_v22 = vsel %vm1996_vm3, %v1979_v20, %v1995_v23  ;;  %v2271_v4 = vpack.c.bf16 %v6388_v10, %v6386_v32  ;;  %v4678_v20 = vld [vmem:[#allocation7 + $0x6] ss:$0 sm:$0xff]  ;;  %v5600_v1 = vld [vmem:[#allocation4 + $0x1d0] sm:$0xff]   ;;  %v5601_v23 = vld [vmem:[#allocation4 + $0x1d8] sm:$0xff]  }
 0x421   :  { %v2008_v27 = vsel %vm1996_vm3, %v1987_v15, %v2007_v7  ;;  %v2272_v57 = vpack.c.bf16 %v6392_v6, %v6390_v33  ;;  %v1999_v60 = vsel %vm1998_vm4, %v1980_v44, %v1997_v22  ;;  %v2273_v12 = vpack.c.bf16 %v6396_v3, %v6394_v11  ;;  %v5604_v7 = vld [vmem:[#allocation4 + $0x1f0] sm:$0xff]   ;;  %v5605_v22 = vld [vmem:[#allocation4 + $0x1f8] sm:$0xff]   ;;  %v5706_v58 = vld [vmem:[#allocation4 + $0xa0] sm:$0xff]  }
 0x422   :  { %v2009_v45 = vsel %vm1998_vm4, %v1988_v5, %v2008_v27  ;;  %v2274_v47 = vpack.c.bf16 %v6400_v63, %v6398_v9  ;;  %v1983_v8 = vunpack.c.l.b16 %v1935_v34  ;;  %v1991_v25 = vunpack.c.l.b16 %v1943_v19  ;;  %v6527_v19 = vld [vmem:[#allocation4 + $0x138] sm:$0xff]   ;;  %v5703_v27 = vld [vmem:[#allocation4 + $0x88] sm:$0xff]   ;;  %v5708_v10 = vld [vmem:[#allocation4 + $0xb0] sm:$0xff]  }
 0x423   :  { %v2001_v2 = vsel %vm2000_vm5, %v1981_v46, %v1999_v60  ;;  %v2010_v42 = vsel %vm2000_vm5, %v1989_v17, %v2009_v45  ;;  %v7130_v55 = vmov 0   ;;  %v7131_v34 = vmov 0.0   ;;  %v5707_v32 = vld [vmem:[#allocation4 + $0xa8] sm:$0xff]   ;;  %v5709_v33 = vld [vmem:[#allocation4 + $0xb8] sm:$0xff]  }
 0x424   :  { %v2003_v61 = vsel %vm2002_vm6, %v1982_v37, %v2001_v2  ;;  %v2011_v18 = vsel %vm2002_vm6, %v1990_v36, %v2010_v42  ;;  %5160 = vmatprep.subr.bf16.mxu0 %v7131_v34  ;;  %v5608_v6 = vld [vmem:[#allocation6 + $0x104] ss:$8 sps:$4 sm:$0xff]   ;;  %v5606_v11 = vld [vmem:[#allocation6 + $0x100] ss:$8 sps:$4 sm:$0xff]   ;;  %v5611_v3 = vld [vmem:[#allocation6 + $0x114] ss:$8 sps:$4 sm:$0xff]  }
 0x425   :  { %v2005_v26 = vsel %vm2004_vm7, %v1983_v8, %v2003_v61  ;;  %v2012_v48 = vsel %vm2004_vm7, %v1991_v25, %v2011_v18  ;;  %5161 = vmatpush3.bf16.msra.mxu0 %v6527_v19  ;;  %2371 = vmatprep.subr.bf16.mxu1 %v5608_v6  ;;  %v5609_v51 = vld [vmem:[#allocation6 + $0x110] ss:$8 sps:$4 sm:$0xff]   ;;  %v5614_v9 = vld [vmem:[#allocation6 + $0x124] ss:$8 sps:$4 sm:$0xff]   ;;  %v5612_v63 = vld [vmem:[#allocation6 + $0x120] ss:$8 sps:$4 sm:$0xff]  }
 0x426   :  { %v2013_v24 = vpack.c.b16 %v2012_v48, %v2005_v26  ;;  %5166 = vmatprep.subr.bf16.mxu0 %v5598_v39  ;;  %v5615_v35 = vld [vmem:[#allocation6 + $0x130] ss:$8 sps:$4 sm:$0xff]   ;;  %v5617_v62 = vld [vmem:[#allocation6 + $0x134] ss:$8 sps:$4 sm:$0xff]   ;;  %v5624_v60 = vld [vmem:[#allocation6 + $0x160] ss:$8 sps:$4 sm:$0xff]  }
 0x427   :  { %v5629_v45 = vld [vmem:[#allocation6 + $0x174] ss:$8 sps:$4 sm:$0xff]   ;;  %v4679_v8 = vld [vmem:[#allocation7 + $0x7] ss:$0 sm:$0xff] }
 0x428   :  { %5143 = vmatmul.mubr.bf16.vlgmr.msra.gmra.mrb[24].mxu1 %v2013_v24 }
 0x429   :  { %2403 = vmatprep.mubr.bf16.mxu1 %v7130_v55  ;;  %2372 = vmatpush1.bf16.msra.mxu1 %v5606_v11 }
 0x42a   :  { %2373 = vmatprep.subr.bf16.mxu1 %v5611_v3 }
 0x42d   :  { %2374 = vmatpush1.bf16.msra.mxu1 %v5609_v51 }
 0x42e   :  { %2375 = vmatprep.subr.bf16.mxu1 %v5614_v9 }
 0x431   :  { %2376 = vmatpush1.bf16.msra.mxu1 %v5612_v63  ;;  %v4688_v63 = vld [vmem:[#allocation7 + $0x8] ss:$0 sm:$0xff] }
 0x432   :  { %2377 = vmatprep.subr.bf16.mxu1 %v5617_v62 }
 0x435   :  { %2378 = vmatpush1.bf16.msra.mxu1 %v5615_v35 }
 0x4fb   :  { %v2097_v14 = vpop.f32.mrb[24].mxu1 }
 0x4fc   :  { %v2104_v44 = vadd.f32 %v2097_v14, %v6279_v49  ;;  %v5144_v46 = vpop.f32.mrb[25].mxu1  ;;  %v5602_v49 = vld [vmem:[#allocation4 + $0x1e0] sm:$0xff]  }
 0x4fd   :  { %v2100_v37 = vpop.f32.mrb[26].mxu1 }
 0x4fe   :  { %v2111_v43 = vadd.f32 %v4678_v20, %v2104_v44  ;;  %v2105_v50 = vadd.f32 %v2100_v37, %v6282_v38  ;;  %v5145_v31 = vpop.f32.mrb[27].mxu1  ;;  %v5603_v38 = vld [vmem:[#allocation4 + $0x1e8] sm:$0xff]  }
 0x500   :  { %v2112_v15 = vadd.f32 %v4678_v20, %v2105_v50  ;;  %v2113_v5 = vmax.f32 %v2111_v43, 0.0 }
 0x502   :  { %v2114_v17 = vmax.f32 %v2112_v15, 0.0 }
 0x504   :  { %v2115_v36 = vpack.c.bf16 %v2114_v17, %v2113_v5 }
 0x506   :  { %5163 = vmatmul.mubr.bf16.vlgmr.msra.gmra.mrb[28].mxu0 %v2115_v36 }
 0x507   :  { %5167 = vmatpush3.bf16.msra.mxu0 %v5598_v39  ;;  %5182 = vmatprep.mubr.bf16.mxu0 %v2267_v30  ;;  %v5702_v30 = vld [vmem:[#allocation4 + $0x80] sm:$0xff]  }
 0x508   :  { %5168 = vmatprep.subr.bf16.mxu0 %v5599_v0 }
 0x50b   :  { %5169 = vmatpush3.bf16.msra.mxu0 %v5599_v0 }
 0x50c   :  { %5170 = vmatprep.subr.bf16.mxu0 %v5600_v1 }
 0x50f   :  { %5171 = vmatpush3.bf16.msra.mxu0 %v5600_v1 }
 0x510   :  { %5172 = vmatprep.subr.bf16.mxu0 %v5601_v23 }
 0x513   :  { %5173 = vmatpush3.bf16.msra.mxu0 %v5601_v23 }
 0x514   :  { %5174 = vmatprep.subr.bf16.mxu0 %v5602_v49 }
 0x517   :  { %5175 = vmatpush3.bf16.msra.mxu0 %v5602_v49 }
 0x518   :  { %5176 = vmatprep.subr.bf16.mxu0 %v5603_v38 }
 0x51b   :  { %5177 = vmatpush3.bf16.msra.mxu0 %v5603_v38 }
 0x51c   :  { %5178 = vmatprep.subr.bf16.mxu0 %v5604_v7 }
 0x51f   :  { %5179 = vmatpush3.bf16.msra.mxu0 %v5604_v7 }
 0x520   :  { %5180 = vmatprep.subr.bf16.mxu0 %v5605_v22 }
 0x523   :  { %5181 = vmatpush3.bf16.msra.mxu0 %v5605_v22 }
 0x524   :  { %5230 = vmatprep.subr.bf16.mxu0 %v7131_v34 }
 0x526   :  { %5183 = vmatmul.mubr.bf16.vlgmr.msra.gmra.mrb[32].mxu0 %v2268_v16  ;;  %v5620_v16 = vld [vmem:[#allocation6 + $0x144] ss:$8 sps:$4 sm:$0xff]  }
 0x527   :  { %5186 = vmatprep.mubr.bf16.mxu0 %v2269_v41  ;;  %5231 = vmatpush3.bf16.msra.mxu0 %v5702_v30  ;;  %v5618_v41 = vld [vmem:[#allocation6 + $0x140] ss:$8 sps:$4 sm:$0xff]  }
 0x528   :  { %5232 = vmatprep.subr.bf16.mxu0 %v7131_v34  ;;  %2379 = vmatprep.subr.bf16.mxu1 %v5620_v16 }
 0x529   :  { %2380 = vmatpush1.bf16.msra.mxu1 %v5618_v41  ;;  %v4689_v41 = vld [vmem:[#allocation7 + $0x9] ss:$0 sm:$0xff] }
 0x52b   :  { %5233 = vmatpush3.bf16.msra.mxu0 %v5703_v27 }
 0x52c   :  { %5234 = vmatprep.subr.bf16.mxu0 %v7131_v34 }
 0x52e   :  { %5187 = vmatmul.mubr.bf16.gmra.mrb[36].mxu0 %v2270_v29  ;;  %v5623_v29 = vld [vmem:[#allocation6 + $0x154] ss:$8 sps:$4 sm:$0xff]  }
 0x52f   :  { %5190 = vmatprep.mubr.bf16.mxu0 %v2271_v4  ;;  %5235 = vmatpush3.bf16.msra.mxu0 %v5704_v54  ;;  %v5621_v4 = vld [vmem:[#allocation6 + $0x150] ss:$8 sps:$4 sm:$0xff]  }
 0x530   :  { %5236 = vmatprep.subr.bf16.mxu0 %v7131_v34  ;;  %2381 = vmatprep.subr.bf16.mxu1 %v5623_v29 }
 0x531   :  { %2382 = vmatpush1.bf16.msra.mxu1 %v5621_v4 }
 0x533   :  { %5237 = vmatpush3.bf16.msra.mxu0 %v5705_v56 }
 0x534   :  { %5238 = vmatprep.subr.bf16.mxu0 %v7131_v34 }
 0x536   :  { %5191 = vmatmul.mubr.bf16.gmra.mrb[40].mxu0 %v2272_v57  ;;  %v5626_v57 = vld [vmem:[#allocation6 + $0x164] ss:$8 sps:$4 sm:$0xff]  }
 0x537   :  { %5194 = vmatprep.mubr.bf16.mxu0 %v2273_v12  ;;  %5239 = vmatpush3.bf16.msra.mxu0 %v5706_v58  ;;  %v5627_v12 = vld [vmem:[#allocation6 + $0x170] ss:$8 sps:$4 sm:$0xff]  }
 0x538   :  { %5240 = vmatprep.subr.bf16.mxu0 %v7131_v34  ;;  %2383 = vmatprep.subr.bf16.mxu1 %v5626_v57 }
 0x539   :  { %2384 = vmatpush1.bf16.msra.mxu1 %v5624_v60 }
 0x53a   :  { %2385 = vmatprep.subr.bf16.mxu1 %v5629_v45 }
 0x53b   :  { %5241 = vmatpush3.bf16.msra.mxu0 %v5707_v32 }
 0x53c   :  { %5242 = vmatprep.subr.bf16.mxu0 %v7131_v34 }
 0x53d   :  { %2386 = vmatpush1.bf16.msra.mxu1 %v5627_v12 }
 0x53e   :  { %5195 = vmatmul.mubr.bf16.gmra.mrb[44].mxu0 %v2274_v47  ;;  %v5630_v47 = vld [vmem:[#allocation4 + $0x200] sm:$0xff]  }
 0x53f   :  { %5243 = vmatpush3.bf16.msra.mxu0 %v5708_v10  ;;  %5246 = vmatprep.mubr.msk.bf16.mxu0 %vm5839_vm0, %v7131_v34 }
 0x540   :  { %5244 = vmatprep.subr.bf16.mxu0 %v7131_v34  ;;  %5198 = vmatprep.subr.bf16.mxu1 %v5630_v47 }
 0x543   :  { %5245 = vmatpush3.bf16.msra.mxu0 %v5709_v33 }
 0x544   :  { %5270 = vmatprep.subr.bf16.mxu0 %v7131_v34 }
 0x5d9   :  { %v2219_v25 = vpop.f32.mrb[28].mxu0 }
 0x5da   :  { %v2220_v2 = vadd.f32 %v4679_v8, %v2219_v25  ;;  %v5164_v42 = vpop.f32.mrb[29].mxu0 }
 0x5db   :  { %v2222_v61 = vpop.f32.mrb[30].mxu0  ;;  %v5710_v42 = vld [vmem:[#allocation4 + $0xc0] sm:$0xff]  }
 0x5dc   :  { %v2223_v18 = vadd.f32 %v4679_v8, %v2222_v61  ;;  %v5165_v26 = vpop.f32.mrb[31].mxu0  ;;  %v2226_v48 = vmax.f32 %v2220_v2, 0.0  ;;  %v5631_v2 = vld [vmem:[#allocation4 + $0x208] sm:$0xff]   ;;  %v5632_v61 = vld [vmem:[#allocation4 + $0x210] sm:$0xff]  }
 0x5dd   :  { %v5712_v26 = vld [vmem:[#allocation4 + $0xd0] sm:$0xff]  }
 0x5de   :  { %v2227_v24 = vmax.f32 %v2223_v18, 0.0  ;;  %v5711_v18 = vld [vmem:[#allocation4 + $0xc8] sm:$0xff]  }
 0x5e0   :  { %v2228_v55 = vadd.f32 %v2227_v24, %v2226_v48 }
 0x5e2   :  { %v2229_v39 = vrot.slane %v2228_v55, 4 }
 0x5e4   :  { %v2230_v14 = vadd.f32 %v2229_v39, %v2228_v55  ;;  %v5716_v55 = vld [vmem:[#allocation4 + $0xf0] sm:$0xff]   ;;  %v5717_v39 = vld [vmem:[#allocation4 + $0xf8] sm:$0xff]  }
 0x5e6   :  { %v2231_v20 = vrot.slane %v2230_v14, 2 }
 0x5e8   :  { %v2232_v44 = vadd.f32 %v2231_v20, %v2230_v14  ;;  %v5633_v14 = vld [vmem:[#allocation4 + $0x218] sm:$0xff]   ;;  %v5634_v20 = vld [vmem:[#allocation4 + $0x220] sm:$0xff]  }
 0x5ea   :  { %v2233_v46 = vrot.slane %v2232_v44, 1 }
 0x5ec   :  { %v2234_v37 = vadd.f32 %v2233_v46, %v2232_v44  ;;  %v5635_v44 = vld [vmem:[#allocation4 + $0x228] sm:$0xff]   ;;  %v5636_v46 = vld [vmem:[#allocation4 + $0x230] sm:$0xff]  }
 0x5ee   :  { %v2235_v43 = vmul.f32 0.0625, %v2234_v37  ;;  %v5637_v37 = vld [vmem:[#allocation4 + $0x238] sm:$0xff]  }
 0x5f0   :  { %v2236_v50 = vsub.f32 %v2226_v48, %v2235_v43  ;;  %v2237_v31 = vsub.f32 %v2227_v24, %v2235_v43  ;;  %v5714_v48 = vld [vmem:[#allocation4 + $0xe0] sm:$0xff]   ;;  %v5715_v24 = vld [vmem:[#allocation4 + $0xe8] sm:$0xff]  }
 0x5f2   :  { %v2238_v15 = vmul.f32 %v2236_v50, %v2236_v50  ;;  %v2239_v5 = vmul.f32 %v2237_v31, %v2237_v31 }
 0x5f4   :  { %v2240_v17 = vadd.f32 %v2239_v5, %v2238_v15 }
 0x5f6   :  { %v2241_v36 = vrot.slane %v2240_v17, 4 }
 0x5f8   :  { %v2242_v0 = vadd.f32 %v2241_v36, %v2240_v17 }
 0x5f9   :  { %v6564_v1 = vpop.f32.mrb[32].mxu0 }
 0x5fa   :  { %v2243_v23 = vrot.slane %v2242_v0, 2  ;;  %v6566_v49 = vpop.f32.mrb[33].mxu0 }
 0x5fb   :  { %v6568_v38 = vpop.f32.mrb[34].mxu0 }
 0x5fc   :  { %v2244_v7 = vadd.f32 %v2243_v23, %v2242_v0  ;;  %v6570_v22 = vpop.f32.mrb[35].mxu0 }
 0x5fe   :  { %v2245_v30 = vrot.slane %v2244_v7, 1 }
 0x600   :  { %v2246_v27 = vadd.f32 %v2245_v30, %v2244_v7 }
 0x601   :  { %v6572_v54 = vpop.f32.mrb[36].mxu0 }
 0x602   :  { %v2247_v56 = vmul.f32 0.0625, %v2246_v27  ;;  %v6574_v58 = vpop.f32.mrb[37].mxu0 }
 0x603   :  { %v6576_v32 = vpop.f32.mrb[38].mxu0 }
 0x604   :  { %v2248_v10 = vadd.f32 1e-05, %v2247_v56  ;;  %v6578_v33 = vpop.f32.mrb[39].mxu0 }
 0x606   :  { %5692 = vrsqrt.f32 %v2248_v10 }
 0x609   :  { %v6580_v6 = vpop.f32.mrb[40].mxu0 }
 0x60a   :  { %v6582_v11 = vpop.f32.mrb[41].mxu0 }
 0x60b   :  { %v6584_v3 = vpop.f32.mrb[42].mxu0 }
 0x60c   :  { %v6586_v51 = vpop.f32.mrb[43].mxu0 }
 0x610   :  { %v5693_v9 = vpop.eup %5692 }
 0x611   :  { %v2250_v35 = vmul.f32 %v5693_v9, %v2236_v50  ;;  %v2251_v62 = vmul.f32 %v5693_v9, %v2237_v31  ;;  %v6588_v16 = vpop.f32.mrb[44].mxu0 }
 0x612   :  { %v6590_v29 = vpop.f32.mrb[45].mxu0 }
 0x613   :  { %v2257_v4 = vmul.f32 %v4688_v63, %v2250_v35  ;;  %v2258_v57 = vmul.f32 %v4688_v63, %v2251_v62  ;;  %v6592_v60 = vpop.f32.mrb[46].mxu0 }
 0x614   :  { %v6594_v45 = vpop.f32.mrb[47].mxu0 }
 0x615   :  { %v2265_v12 = vadd.f32 %v4689_v41, %v2258_v57  ;;  %v2264_v8 = vadd.f32 %v4689_v41, %v2257_v4 }
 0x617   :  { %v2266_v25 = vpack.c.bf16 %v2265_v12, %v2264_v8 }
 0x619   :  { %2404 = vmatmul.mubr.bf16.vlgmr.msra.gmra.mrb[28].mxu1 %v2266_v25  ;;  %5247 = vmatmul.mubr.bf16.vlgmr.msra.gmra.mrb[48].mxu0 %v2266_v25 }
 0x61a   :  { %5199 = vmatpush3.bf16.msra.mxu1 %v5630_v47  ;;  %5271 = vmatpush3.bf16.msra.mxu0 %v5710_v42  ;;  %v5713_v47 = vld [vmem:[#allocation4 + $0xd8] sm:$0xff]  }
 0x61b   :  { %5200 = vmatprep.subr.bf16.mxu1 %v5631_v2  ;;  %5272 = vmatprep.subr.bf16.mxu0 %v7131_v34 }
 0x61c   :  { %5286 = vmatprep.mubr.msk.bf16.mxu0 %vm5839_vm0, %v7131_v34 }
 0x61e   :  { %5201 = vmatpush3.bf16.msra.mxu1 %v5631_v2  ;;  %5273 = vmatpush3.bf16.msra.mxu0 %v5711_v18 }
 0x61f   :  { %5202 = vmatprep.subr.bf16.mxu1 %v5632_v61  ;;  %5274 = vmatprep.subr.bf16.mxu0 %v7131_v34 }
 0x622   :  { %5203 = vmatpush3.bf16.msra.mxu1 %v5632_v61  ;;  %5275 = vmatpush3.bf16.msra.mxu0 %v5712_v26 }
 0x623   :  { %5276 = vmatprep.subr.bf16.mxu0 %v7131_v34  ;;  %5204 = vmatprep.subr.bf16.mxu1 %v5633_v14 }
 0x626   :  { %5277 = vmatpush3.bf16.msra.mxu0 %v5713_v47  ;;  %5205 = vmatpush3.bf16.msra.mxu1 %v5633_v14 }
 0x627   :  { %5278 = vmatprep.subr.bf16.mxu0 %v7131_v34  ;;  %5206 = vmatprep.subr.bf16.mxu1 %v5634_v20 }
 0x62a   :  { %5279 = vmatpush3.bf16.msra.mxu0 %v5714_v48  ;;  %5207 = vmatpush3.bf16.msra.mxu1 %v5634_v20 }
 0x62b   :  { %5280 = vmatprep.subr.bf16.mxu0 %v7131_v34  ;;  %5208 = vmatprep.subr.bf16.mxu1 %v5635_v44 }
 0x62e   :  { %5281 = vmatpush3.bf16.msra.mxu0 %v5715_v24  ;;  %5209 = vmatpush3.bf16.msra.mxu1 %v5635_v44 }
 0x62f   :  { %5282 = vmatprep.subr.bf16.mxu0 %v7131_v34  ;;  %5210 = vmatprep.subr.bf16.mxu1 %v5636_v46 }
 0x632   :  { %5283 = vmatpush3.bf16.msra.mxu0 %v5716_v55  ;;  %5211 = vmatpush3.bf16.msra.mxu1 %v5636_v46 }
 0x633   :  { %5284 = vmatprep.subr.bf16.mxu0 %v7131_v34  ;;  %5212 = vmatprep.subr.bf16.mxu1 %v5637_v37 }
 0x636   :  { %5285 = vmatpush3.bf16.msra.mxu0 %v5717_v39  ;;  %5213 = vmatpush3.bf16.msra.mxu1 %v5637_v37 }
 0x637   :  { %5310 = vmatprep.subr.bf16.mxu0 %v7131_v34  ;;  %5250 = vmatprep.subr.bf16.mxu1 %v7131_v34 }
 0x6ec   :  { %v2405_v43 = vpop.f32.mrb[28].mxu1  ;;  %v6607_v50 = vpop.f32.mrb[48].mxu0 }
 0x6ed   :  { %v2416_v31 = vcombine.high %v2405_v43, %v2405_v43  ;;  %v2423_v15 = vrot.slane %v2405_v43, %v5949_v59  ;;  %v2407_v5 = vpop.f32.mrb[29].mxu1  ;;  %v5248_v17 = vpop.f32.mrb[49].mxu0 }
 0x6ee   :  { %v2409_v36 = vpop.f32.mrb[30].mxu1  ;;  %v6610_v0 = vpop.f32.mrb[50].mxu0 }
 0x6ef   :  { %v2430_v23 = vrot.slane %v2416_v31, %v5949_v59  ;;  %v2431_v7 = vcombine.high %v2423_v15, %v2423_v15  ;;  %v2439_v30 = vrot.slane %v2423_v15, %v5949_v59  ;;  %v2465_v27 = vcombine.high %v2409_v36, %v2409_v36  ;;  %v6614_v56 = vpop.f32.mrb[31].mxu1  ;;  %v5249_v10 = vpop.f32.mrb[51].mxu0 }
 0x6f0   :  { %v2472_v9 = vrot.slane %v2409_v36, %v5949_v59 }
 0x6f1   :  { %v2432_v63 = vcombine.high %v2430_v23, %v2430_v23  ;;  %v2446_v35 = vrot.slane %v2430_v23, %v5949_v59  ;;  %v2453_v62 = vrot.slane %v2431_v7, %v5949_v59  ;;  %v2461_v41 = vcombine.high %v2439_v30, %v2439_v30 }
 0x6f2   :  { %v2517_v4 = vrot.slane %v2439_v30, %v5971_v21  ;;  %v2479_v57 = vrot.slane %v2465_v27, %v5949_v59  ;;  %v2480_v12 = vcombine.high %v2472_v9, %v2472_v9  ;;  %v2488_v8 = vrot.slane %v2472_v9, %v5949_v59  ;;  %v6642_v27 = vld [vmem:[#allocation7 + $0xe] ss:$0 sm:$0xff] }
 0x6f3   :  { %v2460_v25 = vrot.slane %v2432_v63, %v5949_v59  ;;  %v2462_v2 = vcombine.high %v2446_v35, %v2446_v35  ;;  %v2463_v42 = vcombine.high %v2453_v62, %v2453_v62  ;;  %v2521_v61 = vrot.slane %v2453_v62, %v5971_v21 }
 0x6f4   :  { %v2525_v18 = vrot.slane %v2461_v41, %v5971_v21  ;;  %v2533_v26 = vrot.slane %v2446_v35, %v5971_v21  ;;  %v2481_v47 = vcombine.high %v2479_v57, %v2479_v57  ;;  %v6627_v48 = vrot.slane %v2479_v57, %v5949_v59 }
 0x6f5   :  { %v2464_v24 = vcombine.high %v2460_v25, %v2460_v25  ;;  %v2529_v55 = vrot.slane %v2463_v42, %v5971_v21  ;;  %v2537_v39 = vrot.slane %v2460_v25, %v5971_v21  ;;  %v2541_v14 = vrot.slane %v2462_v2, %v5971_v21 }
 0x6f6   :  { %v2502_v20 = vrot.slane %v2480_v12, %v5949_v59  ;;  %v2509_v44 = vrot.slane %v2481_v47, %v5949_v59  ;;  %v2510_v46 = vcombine.high %v2488_v8, %v2488_v8  ;;  %v2511_v37 = vcombine.high %v6627_v48, %v6627_v48 }
 0x6f7   :  { %v2545_v43 = vrot.slane %v2464_v24, %v5971_v21  ;;  %v2549_v31 = vrot.slane %v2488_v8, %v5971_v21  ;;  %v2565_v15 = vrot.slane %v6627_v48, %v5971_v21  ;;  %v2594_v17 = vadd.f32 %v2517_v4, %v2407_v5 }
 0x6f8   :  { %v2512_v36 = vcombine.high %v2502_v20, %v2502_v20  ;;  %v2513_v23 = vcombine.high %v2509_v44, %v2509_v44  ;;  %v2553_v7 = vrot.slane %v2502_v20, %v5971_v21  ;;  %v2557_v30 = vrot.slane %v2510_v46, %v5971_v21 }
 0x6f9   :  { %v2569_v59 = vrot.slane %v2509_v44, %v5971_v21  ;;  %v2573_v10 = vrot.slane %v2511_v37, %v5971_v21  ;;  %v2595_v9 = vadd.f32 %v2521_v61, %v2407_v5  ;;  %v2771_v63 = vadd.f32 %v6566_v49, %v2594_v17 }
 0x6fa   :  { %v2561_v35 = vrot.slane %v2512_v36, %v5971_v21  ;;  %v2577_v62 = vrot.slane %v2513_v23, %v5971_v21  ;;  %v2596_v41 = vadd.f32 %v2525_v18, %v2407_v5  ;;  %v2597_v4 = vadd.f32 %v2529_v55, %v2407_v5 }
 0x6fb   :  { %v2772_v57 = vadd.f32 %v6570_v22, %v2595_v9  ;;  %v2792_v12 = vadd.f32 %v6642_v27, %v2771_v63  ;;  %v2598_v8 = vadd.f32 %v2533_v26, %v2407_v5  ;;  %v2599_v25 = vadd.f32 %v2537_v39, %v2407_v5 }
 0x6fc   :  { %v2773_v2 = vadd.f32 %v6564_v1, %v2596_v41  ;;  %v2774_v42 = vadd.f32 %v6568_v38, %v2597_v4  ;;  %v2600_v47 = vadd.f32 %v2541_v14, %v2407_v5  ;;  %v2601_v61 = vadd.f32 %v2545_v43, %v2407_v5 }
 0x6fd   :  { %v2793_v49 = vadd.f32 %v6642_v27, %v2772_v57  ;;  %v2808_v48 = vmax.f32 %v2792_v12, 0.0  ;;  %v2775_v24 = vadd.f32 %v6574_v58, %v2598_v8  ;;  %v2776_v21 = vadd.f32 %v6578_v33, %v2599_v25  ;;  %v5718_v12 = vld [vmem:[#allocation4 + $0x40] sm:$0xff]  }
 0x6fe   :  { %v2794_v18 = vadd.f32 %v6642_v27, %v2773_v2  ;;  %v2795_v22 = vadd.f32 %v6642_v27, %v2774_v42  ;;  %v2777_v26 = vadd.f32 %v6572_v54, %v2600_v47  ;;  %v2778_v55 = vadd.f32 %v6576_v32, %v2601_v61 }
 0x6ff   :  { %v2809_v1 = vmax.f32 %v2793_v49, 0.0  ;;  %v2796_v38 = vadd.f32 %v6642_v27, %v2775_v24  ;;  %v2797_v5 = vadd.f32 %v6642_v27, %v2776_v21  ;;  %v2602_v39 = vadd.f32 %v2549_v31, %v6614_v56  ;;  %v5719_v49 = vld [vmem:[#allocation4 + $0x48] sm:$0xff]  }
 0x700   :  { %v2810_v14 = vmax.f32 %v2794_v18, 0.0  ;;  %v2811_v20 = vmax.f32 %v2795_v22, 0.0  ;;  %v2798_v58 = vadd.f32 %v6642_v27, %v2777_v26  ;;  %v2799_v33 = vadd.f32 %v6642_v27, %v2778_v55 }
 0x701   :  { %v2824_v44 = vpack.c.bf16 %v2809_v1, %v2808_v48  ;;  %v2812_v46 = vmax.f32 %v2796_v38, 0.0  ;;  %v2813_v37 = vmax.f32 %v2797_v5, 0.0  ;;  %v2603_v54 = vadd.f32 %v2553_v7, %v6614_v56  ;;  %v5722_v38 = vld [vmem:[#allocation4 + $0x60] sm:$0xff]   ;;  %v5724_v5 = vld [vmem:[#allocation4 + $0x70] sm:$0xff]  }
 0x702   :  { %v2825_v43 = vpack.c.bf16 %v2811_v20, %v2810_v14  ;;  %v2814_v32 = vmax.f32 %v2798_v58, 0.0  ;;  %v2815_v17 = vmax.f32 %v2799_v33, 0.0  ;;  %v2779_v36 = vadd.f32 %v6582_v11, %v2602_v39  ;;  %v5725_v39 = vld [vmem:[#allocation4 + $0x78] sm:$0xff]   ;;  %v5726_v14 = vld [vmem:[#allocation4 + $0x100] sm:$0xff]   ;;  %v5727_v20 = vld [vmem:[#allocation4 + $0x108] sm:$0xff]  }
 0x703   :  { %5214 = vmatprep.mubr.bf16.mxu1 %v2824_v44  ;;  %v2826_v23 = vpack.c.bf16 %v2813_v37, %v2812_v46  ;;  %v2780_v31 = vadd.f32 %v6586_v51, %v2603_v54  ;;  %v2604_v9 = vadd.f32 %v2557_v30, %v6614_v56  ;;  %v2605_v63 = vadd.f32 %v2561_v35, %v6614_v56  ;;  %v5728_v58 = vld [vmem:[#allocation4 + $0x110] sm:$0xff]   ;;  %v5729_v33 = vld [vmem:[#allocation4 + $0x118] sm:$0xff]   ;;  %v5730_v44 = vld [vmem:[#allocation4 + $0x120] sm:$0xff]  }
 0x704   :  { %5215 = vmatmul.mubr.bf16.vlgmr.msra.gmra.mrb[32].mxu1 %v2825_v43  ;;  %v2827_v41 = vpack.c.bf16 %v2815_v17, %v2814_v32  ;;  %v2800_v4 = vadd.f32 %v6642_v27, %v2779_v36  ;;  %v2606_v57 = vadd.f32 %v2565_v15, %v6614_v56  ;;  %v2607_v7 = vadd.f32 %v2569_v59, %v6614_v56  ;;  %v5731_v46 = vld [vmem:[#allocation4 + $0x128] sm:$0xff]  }
 0x705   :  { %5218 = vmatprep.mubr.bf16.mxu1 %v2826_v23  ;;  %5251 = vmatpush3.bf16.msra.mxu1 %v5718_v12  ;;  %v2801_v11 = vadd.f32 %v6642_v27, %v2780_v31  ;;  %v2781_v8 = vadd.f32 %v6580_v6, %v2604_v9  ;;  %v2782_v51 = vadd.f32 %v6584_v3, %v2605_v63  ;;  %v4715_v37 = vld [vmem:[#allocation7 + $0xf] ss:$0 sm:$0xff] }
 0x706   :  { %5252 = vmatprep.subr.bf16.mxu1 %v7131_v34  ;;  %v2816_v30 = vmax.f32 %v2800_v4, 0.0  ;;  %v2783_v35 = vadd.f32 %v6590_v29, %v2606_v57  ;;  %v2784_v25 = vadd.f32 %v6594_v45, %v2607_v7  ;;  %v2608_v15 = vadd.f32 %v2573_v10, %v6614_v56 }
 0x707   :  { %v2817_v2 = vmax.f32 %v2801_v11, 0.0  ;;  %v2802_v59 = vadd.f32 %v6642_v27, %v2781_v8  ;;  %v2803_v42 = vadd.f32 %v6642_v27, %v2782_v51  ;;  %v2609_v47 = vadd.f32 %v2577_v62, %v6614_v56 }
 0x708   :  { %v2804_v6 = vadd.f32 %v6642_v27, %v2783_v35  ;;  %v2805_v3 = vadd.f32 %v6642_v27, %v2784_v25  ;;  %v2785_v61 = vadd.f32 %v6588_v16, %v2608_v15  ;;  %v5720_v16 = vld [vmem:[#allocation4 + $0x50] sm:$0xff]  }
 0x709   :  { %5253 = vmatpush3.bf16.msra.mxu1 %v5719_v49  ;;  %v2828_v29 = vpack.c.bf16 %v2817_v2, %v2816_v30  ;;  %v2818_v48 = vmax.f32 %v2802_v59, 0.0  ;;  %v2819_v45 = vmax.f32 %v2803_v42, 0.0  ;;  %v2786_v10 = vadd.f32 %v6592_v60, %v2609_v47  ;;  %v5721_v60 = vld [vmem:[#allocation4 + $0x58] sm:$0xff]  }
 0x70a   :  { %5254 = vmatprep.subr.bf16.mxu1 %v7131_v34  ;;  %v2820_v24 = vmax.f32 %v2804_v6, 0.0  ;;  %v2821_v21 = vmax.f32 %v2805_v3, 0.0  ;;  %v2806_v18 = vadd.f32 %v6642_v27, %v2785_v61 }
 0x70b   :  { %v2829_v56 = vpack.c.bf16 %v2819_v45, %v2818_v48  ;;  %v2807_v62 = vadd.f32 %v6642_v27, %v2786_v10  ;;  %v5723_v27 = vld [vmem:[#allocation4 + $0x68] sm:$0xff]  }
 0x70c   :  { %5219 = vmatmul.mubr.bf16.gmra.mrb[36].mxu1 %v2827_v41  ;;  %v2830_v22 = vpack.c.bf16 %v2821_v21, %v2820_v24  ;;  %v2822_v26 = vmax.f32 %v2806_v18, 0.0 }
 0x70d   :  { %5222 = vmatprep.mubr.bf16.mxu1 %v2828_v29  ;;  %5255 = vmatpush3.bf16.msra.mxu1 %v5720_v16  ;;  %v2823_v55 = vmax.f32 %v2807_v62, 0.0 }
 0x70e   :  { %5256 = vmatprep.subr.bf16.mxu1 %v7131_v34 }
 0x70f   :  { %v2831_v1 = vpack.c.bf16 %v2823_v55, %v2822_v26 }
 0x711   :  { %5257 = vmatpush3.bf16.msra.mxu1 %v5721_v60 }
 0x712   :  { %5258 = vmatprep.subr.bf16.mxu1 %v7131_v34 }
 0x714   :  { %5223 = vmatmul.mubr.bf16.gmra.mrb[40].mxu1 %v2829_v56 }
 0x715   :  { %5226 = vmatprep.mubr.bf16.mxu1 %v2830_v22  ;;  %5259 = vmatpush3.bf16.msra.mxu1 %v5722_v38 }
 0x716   :  { %5260 = vmatprep.subr.bf16.mxu1 %v7131_v34 }
 0x719   :  { %5261 = vmatpush3.bf16.msra.mxu1 %v5723_v27 }
 0x71a   :  { %5262 = vmatprep.subr.bf16.mxu1 %v7131_v34 }
 0x71c   :  { %5227 = vmatmul.mubr.bf16.gmra.mrb[44].mxu1 %v2831_v1 }
 0x71d   :  { %5263 = vmatpush3.bf16.msra.mxu1 %v5724_v5  ;;  %5266 = vmatprep.mubr.msk.bf16.mxu1 %vm5839_vm0, %v7131_v34 }
 0x71e   :  { %5264 = vmatprep.subr.bf16.mxu1 %v7131_v34 }
 0x721   :  { %5265 = vmatpush3.bf16.msra.mxu1 %v5725_v39 }
 0x722   :  { %5290 = vmatprep.subr.bf16.mxu1 %v7131_v34 }
 0x724   :  { %5267 = vmatmul.mubr.bf16.vlgmr.msra.gmra.mrb[48].mxu1 %v6040_v40 }
 0x725   :  { %5291 = vmatpush3.bf16.msra.mxu1 %v5726_v14  ;;  %5306 = vmatprep.mubr.msk.bf16.mxu1 %vm5839_vm0, %v7131_v34 }
 0x726   :  { %5292 = vmatprep.subr.bf16.mxu1 %v7131_v34 }
 0x729   :  { %5293 = vmatpush3.bf16.msra.mxu1 %v5727_v20 }
 0x72a   :  { %5294 = vmatprep.subr.bf16.mxu1 %v7131_v34 }
 0x72d   :  { %5295 = vmatpush3.bf16.msra.mxu1 %v5728_v58 }
 0x72e   :  { %5296 = vmatprep.subr.bf16.mxu1 %v7131_v34 }
 0x731   :  { %5297 = vmatpush3.bf16.msra.mxu1 %v5729_v33 }
 0x732   :  { %5298 = vmatprep.subr.bf16.mxu1 %v7131_v34 }
 0x735   :  { %5299 = vmatpush3.bf16.msra.mxu1 %v5730_v44 }
 0x736   :  { %5300 = vmatprep.subr.bf16.mxu1 %v7131_v34 }
 0x739   :  { %5301 = vmatpush3.bf16.msra.mxu1 %v5731_v46 }
 0x73a   :  { %5302 = vmatprep.subr.bf16.mxu1 %v7131_v34 }
 0x73d   :  { %5303 = vmatpush3.bf16.msra.mxu1 %v6523_v13 }
 0x73e   :  { %5304 = vmatprep.subr.bf16.mxu1 %v7131_v34 }
 0x741   :  { %5305 = vmatpush3.bf16.msra.mxu1 %v6527_v19 }
 0x742   :  { %5330 = vmatprep.subr.bf16.mxu1 %v7131_v34 }
 0x7d7   :  { %v5216_v54 = vpop.f32.mrb[32].mxu1 }
 0x7d8   :  { %v2935_v43 = vpop.f32.mrb[33].mxu1  ;;  %v6713_v23 = vadd.f32 %v5216_v54, %v4715_v37 }
 0x7d9   :  { %v6711_v32 = vadd.f32 %v4715_v37, %v2935_v43  ;;  %v5217_v17 = vpop.f32.mrb[34].mxu1 }
 0x7da   :  { %v2938_v36 = vpop.f32.mrb[35].mxu1  ;;  %v6718_v13 = vadd.f32 %v5217_v17, %v4715_v37  ;;  %v3000_v19 = vmax.f32 %v6713_v23, 0.0 }
 0x7db   :  { %v6715_v31 = vadd.f32 %v4715_v37, %v2938_v36  ;;  %v2998_v9 = vmax.f32 %v6711_v32, 0.0 }
 0x7dc   :  { %v3001_v7 = vmax.f32 %v6718_v13, 0.0 }
 0x7dd   :  { %v2999_v63 = vmax.f32 %v6715_v31, 0.0 }
 0x7df   :  { %v3014_v41 = vadd.f32 %v2999_v63, %v2998_v9  ;;  %v5220_v4 = vpop.f32.mrb[36].mxu1 }
 0x7e0   :  { %v2951_v57 = vpop.f32.mrb[37].mxu1  ;;  %v6731_v30 = vadd.f32 %v5220_v4, %v4715_v37 }
 0x7e1   :  { %v3015_v12 = vadd.f32 %v3014_v41, %v3000_v19  ;;  %v6729_v11 = vadd.f32 %v4715_v37, %v2951_v57  ;;  %v5221_v8 = vpop.f32.mrb[38].mxu1 }
 0x7e2   :  { %v2954_v51 = vpop.f32.mrb[39].mxu1  ;;  %v2963_v59 = vadd.f32 %v5221_v8, %v4715_v37  ;;  %v3004_v47 = vmax.f32 %v6731_v30, 0.0 }
 0x7e3   :  { %v3002_v35 = vmax.f32 %v6729_v11, 0.0  ;;  %v3016_v25 = vadd.f32 %v3015_v12, %v3001_v7  ;;  %v2955_v15 = vadd.f32 %v4715_v37, %v2954_v51 }
 0x7e4   :  { %v3005_v49 = vmax.f32 %v2963_v59, 0.0 }
 0x7e5   :  { %v3017_v2 = vadd.f32 %v3016_v25, %v3002_v35  ;;  %v3003_v42 = vmax.f32 %v2955_v15, 0.0 }
 0x7e7   :  { %v3018_v6 = vadd.f32 %v3017_v2, %v3003_v42  ;;  %v5224_v3 = vpop.f32.mrb[40].mxu1 }
 0x7e8   :  { %v2967_v61 = vpop.f32.mrb[41].mxu1  ;;  %v2976_v24 = vadd.f32 %v5224_v3, %v4715_v37 }
 0x7e9   :  { %v3019_v29 = vadd.f32 %v3018_v6, %v3004_v47  ;;  %v2968_v48 = vadd.f32 %v4715_v37, %v2967_v61  ;;  %v5225_v45 = vpop.f32.mrb[42].mxu1 }
 0x7ea   :  { %v2970_v10 = vpop.f32.mrb[43].mxu1  ;;  %v2979_v22 = vadd.f32 %v5225_v45, %v4715_v37  ;;  %v3008_v26 = vmax.f32 %v2976_v24, 0.0 }
 0x7eb   :  { %v3006_v21 = vmax.f32 %v2968_v48, 0.0  ;;  %v3020_v18 = vadd.f32 %v3019_v29, %v3005_v49  ;;  %v2971_v56 = vadd.f32 %v4715_v37, %v2970_v10 }
 0x7ec   :  { %v3009_v38 = vmax.f32 %v2979_v22, 0.0 }
 0x7ed   :  { %v3021_v62 = vadd.f32 %v3020_v18, %v3006_v21  ;;  %v3007_v16 = vmax.f32 %v2971_v56, 0.0 }
 0x7ef   :  { %v3022_v55 = vadd.f32 %v3021_v62, %v3007_v16  ;;  %v5228_v1 = vpop.f32.mrb[44].mxu1 }
 0x7f0   :  { %v2983_v60 = vpop.f32.mrb[45].mxu1  ;;  %v2992_v20 = vadd.f32 %v5228_v1, %v4715_v37 }
 0x7f1   :  { %v3023_v27 = vadd.f32 %v3022_v55, %v3008_v26  ;;  %v2984_v5 = vadd.f32 %v4715_v37, %v2983_v60  ;;  %v5229_v39 = vpop.f32.mrb[46].mxu1 }
 0x7f2   :  { %v2986_v14 = vpop.f32.mrb[47].mxu1  ;;  %v2995_v54 = vadd.f32 %v5229_v39, %v4715_v37  ;;  %v3012_v17 = vmax.f32 %v2992_v20, 0.0 }
 0x7f3   :  { %v3010_v58 = vmax.f32 %v2984_v5, 0.0  ;;  %v3024_v33 = vadd.f32 %v3023_v27, %v3009_v38  ;;  %v2987_v44 = vadd.f32 %v4715_v37, %v2986_v14 }
 0x7f4   :  { %v3013_v12 = vmax.f32 %v2995_v54, 0.0 }
 0x7f5   :  { %v3025_v46 = vadd.f32 %v3024_v33, %v3010_v58  ;;  %v3011_v43 = vmax.f32 %v2987_v44, 0.0 }
 0x7f7   :  { %v3026_v36 = vadd.f32 %v3025_v46, %v3011_v43  ;;  %v3321_v41 = vpop.f32.mrb[48].mxu1 }
 0x7f8   :  { %v6738_v4 = vadd.f32 %v3321_v41, %v6607_v50  ;;  %v5268_v57 = vpop.f32.mrb[49].mxu1 }
 0x7f9   :  { %v3027_v11 = vadd.f32 %v3026_v36, %v3012_v17  ;;  %v3324_v8 = vpop.f32.mrb[50].mxu1 }
 0x7fa   :  { %v6741_v51 = vadd.f32 %v3324_v8, %v6610_v0  ;;  %v5269_v30 = vpop.f32.mrb[51].mxu1 }
 0x7fb   :  { %v3028_v25 = vadd.f32 %v3027_v11, %v3013_v12 }
 0x7fd   :  { %v3029_v15 = vrot.slane %v3028_v25, 4 }
 0x7ff   :  { %v3030_v2 = vadd.f32 %v3029_v15, %v3028_v25 }
 0x801   :  { %v3031_v59 = vrot.slane %v3030_v2, 2 }
 0x803   :  { %v3032_v37 = vadd.f32 %v3031_v59, %v3030_v2 }
 0x805   :  { %v3033_v6 = vrot.slane %v3032_v37, 1 }
 0x807   :  { %v3034_v3 = vadd.f32 %v3033_v6, %v3032_v37 }
 0x809   :  { %v3035_v61 = vmul.f32 0.0078125, %v3034_v3 }
 0x80b   :  { %v3036_v50 = vsub.f32 %v2998_v9, %v3035_v61  ;;  %v3037_v29 = vsub.f32 %v2999_v63, %v3035_v61  ;;  %v3038_v48 = vsub.f32 %v3000_v19, %v3035_v61  ;;  %v3039_v0 = vsub.f32 %v3001_v7, %v3035_v61 }
 0x80c   :  { %v3040_v45 = vsub.f32 %v3002_v35, %v3035_v61  ;;  %v3041_v10 = vsub.f32 %v3003_v42, %v3035_v61  ;;  %v3042_v24 = vsub.f32 %v3004_v47, %v3035_v61  ;;  %v3043_v18 = vsub.f32 %v3005_v49, %v3035_v61 }
 0x80d   :  { %v3044_v56 = vsub.f32 %v3006_v21, %v3035_v61  ;;  %v3045_v62 = vsub.f32 %v3007_v16, %v3035_v61  ;;  %v3046_v22 = vsub.f32 %v3008_v26, %v3035_v61  ;;  %v3047_v55 = vsub.f32 %v3009_v38, %v3035_v61 }
 0x80e   :  { %v3048_v1 = vsub.f32 %v3010_v58, %v3035_v61  ;;  %v3049_v32 = vsub.f32 %v3011_v43, %v3035_v61  ;;  %v3050_v9 = vsub.f32 %v3012_v17, %v3035_v61  ;;  %v3051_v60 = vsub.f32 %v3013_v12, %v3035_v61 }
 0x80f   :  { %v3052_v31 = vmul.f32 %v3036_v50, %v3036_v50  ;;  %v3053_v63 = vmul.f32 %v3037_v29, %v3037_v29  ;;  %v3054_v27 = vmul.f32 %v3038_v48, %v3038_v48  ;;  %v3055_v19 = vmul.f32 %v3039_v0, %v3039_v0 }
 0x810   :  { %v3056_v13 = vmul.f32 %v3040_v45, %v3040_v45  ;;  %v3057_v35 = vmul.f32 %v3041_v10, %v3041_v10  ;;  %v3058_v47 = vmul.f32 %v3042_v24, %v3042_v24  ;;  %v3059_v21 = vmul.f32 %v3043_v18, %v3043_v18 }
 0x811   :  { %v3068_v23 = vadd.f32 %v3053_v63, %v3052_v31  ;;  %v3060_v26 = vmul.f32 %v3044_v56, %v3044_v56  ;;  %v3061_v39 = vmul.f32 %v3045_v62, %v3045_v62  ;;  %v3062_v20 = vmul.f32 %v3046_v22, %v3046_v22 }
 0x812   :  { %v3063_v33 = vmul.f32 %v3047_v55, %v3047_v55  ;;  %v3064_v46 = vmul.f32 %v3048_v1, %v3048_v1  ;;  %v3065_v43 = vmul.f32 %v3049_v32, %v3049_v32  ;;  %v3066_v36 = vmul.f32 %v3050_v9, %v3050_v9 }
 0x813   :  { %v3069_v5 = vadd.f32 %v3068_v23, %v3054_v27  ;;  %v3067_v57 = vmul.f32 %v3051_v60, %v3051_v60 }
 0x815   :  { %v3070_v7 = vadd.f32 %v3069_v5, %v3055_v19 }
 0x817   :  { %v3071_v42 = vadd.f32 %v3070_v7, %v3056_v13  ;;  %v4724_v7 = vld [vmem:[#allocation7 + $0x10] ss:$0 sm:$0xff] }
 0x819   :  { %v3072_v49 = vadd.f32 %v3071_v42, %v3057_v35 }
 0x81b   :  { %v3073_v16 = vadd.f32 %v3072_v49, %v3058_v47 }
 0x81d   :  { %v3074_v38 = vadd.f32 %v3073_v16, %v3059_v21 }
 0x81f   :  { %v3075_v14 = vadd.f32 %v3074_v38, %v3060_v26 }
 0x821   :  { %v3076_v58 = vadd.f32 %v3075_v14, %v3061_v39  ;;  %v4725_v39 = vld [vmem:[#allocation7 + $0x11] ss:$0 sm:$0xff] }
 0x823   :  { %v3077_v44 = vadd.f32 %v3076_v58, %v3062_v20 }
 0x825   :  { %v3078_v54 = vadd.f32 %v3077_v44, %v3063_v33 }
 0x827   :  { %v3079_v17 = vadd.f32 %v3078_v54, %v3064_v46 }
 0x829   :  { %v3080_v41 = vadd.f32 %v3079_v17, %v3065_v43 }
 0x82b   :  { %v3081_v12 = vadd.f32 %v3080_v41, %v3066_v36 }
 0x82d   :  { %v3082_v11 = vadd.f32 %v3081_v12, %v3067_v57 }
 0x82f   :  { %v3083_v8 = vrot.slane %v3082_v11, 4 }
 0x831   :  { %v3084_v30 = vadd.f32 %v3083_v8, %v3082_v11 }
 0x833   :  { %v3085_v25 = vrot.slane %v3084_v30, 2 }
 0x835   :  { %v3086_v15 = vadd.f32 %v3085_v25, %v3084_v30 }
 0x837   :  { %v3087_v2 = vrot.slane %v3086_v15, 1 }
 0x839   :  { %v3088_v59 = vadd.f32 %v3087_v2, %v3086_v15 }
 0x83b   :  { %v3089_v37 = vmul.f32 0.0078125, %v3088_v59 }
 0x83d   :  { %v3090_v6 = vadd.f32 1e-05, %v3089_v37 }
 0x83f   :  { %5694 = vrsqrt.f32 %v3090_v6 }
 0x849   :  { %v5695_v3 = vpop.eup %5694 }
 0x84a   :  { %v3092_v61 = vmul.f32 %v5695_v3, %v3036_v50  ;;  %v3093_v31 = vmul.f32 %v5695_v3, %v3037_v29  ;;  %v3094_v63 = vmul.f32 %v5695_v3, %v3038_v48  ;;  %v3095_v27 = vmul.f32 %v5695_v3, %v3039_v0 }
 0x84b   :  { %v3096_v23 = vmul.f32 %v5695_v3, %v3040_v45  ;;  %v3097_v19 = vmul.f32 %v5695_v3, %v3041_v10  ;;  %v3098_v5 = vmul.f32 %v5695_v3, %v3042_v24  ;;  %v3099_v13 = vmul.f32 %v5695_v3, %v3043_v18 }
 0x84c   :  { %v3100_v35 = vmul.f32 %v5695_v3, %v3044_v56  ;;  %v3101_v42 = vmul.f32 %v5695_v3, %v3045_v62  ;;  %v3102_v47 = vmul.f32 %v5695_v3, %v3046_v22  ;;  %v3103_v49 = vmul.f32 %v5695_v3, %v3047_v55 }
 0x84d   :  { %v3104_v21 = vmul.f32 %v5695_v3, %v3048_v1  ;;  %v3105_v16 = vmul.f32 %v5695_v3, %v3049_v32  ;;  %v3106_v26 = vmul.f32 %v5695_v3, %v3050_v9  ;;  %v3107_v38 = vmul.f32 %v5695_v3, %v3051_v60 }
 0x84e   :  { %v3121_v14 = vmul.f32 %v4724_v7, %v3100_v35  ;;  %v3122_v20 = vmul.f32 %v4724_v7, %v3101_v42  ;;  %v3123_v50 = vmul.f32 %v4724_v7, %v3102_v47  ;;  %v3124_v29 = vmul.f32 %v4724_v7, %v3103_v49 }
 0x84f   :  { %v3125_v48 = vmul.f32 %v4724_v7, %v3104_v21  ;;  %v3126_v0 = vmul.f32 %v4724_v7, %v3105_v16  ;;  %v3127_v45 = vmul.f32 %v4724_v7, %v3106_v26  ;;  %v3128_v10 = vmul.f32 %v4724_v7, %v3107_v38 }
 0x850   :  { %v6751_v24 = vadd.f32 %v4725_v39, %v3121_v14  ;;  %v6753_v18 = vadd.f32 %v4725_v39, %v3122_v20  ;;  %v6755_v56 = vadd.f32 %v4725_v39, %v3123_v50  ;;  %v6757_v62 = vadd.f32 %v4725_v39, %v3124_v29 }
 0x851   :  { %v6759_v22 = vadd.f32 %v4725_v39, %v3125_v48  ;;  %v6761_v55 = vadd.f32 %v4725_v39, %v3126_v0  ;;  %v6763_v1 = vadd.f32 %v4725_v39, %v3127_v45  ;;  %v6765_v32 = vadd.f32 %v4725_v39, %v3128_v10 }
 0x852   :  { %v3204_v9 = vrot.slane %v6753_v18, 4  ;;  %v3210_v60 = vrot.slane %v6755_v56, 4  ;;  %v3198_v58 = vrot.slane %v6751_v24, 4  ;;  %v3113_v44 = vmul.f32 %v4724_v7, %v3092_v61 }
 0x853   :  { %v3228_v33 = vrot.slane %v6761_v55, 4  ;;  %v3114_v46 = vmul.f32 %v4724_v7, %v3093_v31  ;;  %v3216_v43 = vrot.slane %v6757_v62, 4  ;;  %v3222_v17 = vrot.slane %v6759_v22, 4 }
 0x854   :  { %v6772_v54 = vadd.f32 %v3204_v9, %v6753_v18  ;;  %v3115_v36 = vmul.f32 %v4724_v7, %v3094_v63  ;;  %v6777_v41 = vadd.f32 %v3210_v60, %v6755_v56  ;;  %v3116_v12 = vmul.f32 %v4724_v7, %v3095_v27 }
 0x855   :  { %v3229_v57 = vadd.f32 %v3228_v33, %v6761_v55  ;;  %v3117_v11 = vmul.f32 %v4724_v7, %v3096_v23  ;;  %v3118_v8 = vmul.f32 %v4724_v7, %v3097_v19  ;;  %v3119_v30 = vmul.f32 %v4724_v7, %v3098_v5 }
 0x856   :  { %v3120_v25 = vmul.f32 %v4724_v7, %v3099_v13  ;;  %v6780_v15 = vadd.f32 %v4725_v39, %v3113_v44  ;;  %v6782_v59 = vadd.f32 %v4725_v39, %v3114_v46  ;;  %v6784_v37 = vadd.f32 %v4725_v39, %v3115_v36 }
 0x857   :  { %v3230_v2 = vrot.slane %v3229_v57, 2  ;;  %v6786_v6 = vadd.f32 %v4725_v39, %v3116_v12  ;;  %v6789_v3 = vadd.f32 %v3216_v43, %v6757_v62  ;;  %v6791_v61 = vadd.f32 %v4725_v39, %v3117_v11 }
 0x858   :  { %v6793_v31 = vadd.f32 %v4725_v39, %v3118_v8  ;;  %v6795_v63 = vadd.f32 %v4725_v39, %v3119_v30  ;;  %v3150_v23 = vrot.slane %v6780_v15, 4  ;;  %v3156_v19 = vrot.slane %v6782_v59, 4 }
 0x859   :  { %v3231_v27 = vadd.f32 %v3230_v2, %v3229_v57  ;;  %v3162_v5 = vrot.slane %v6784_v37, 4  ;;  %v3168_v13 = vrot.slane %v6786_v6, 4  ;;  %v3174_v7 = vrot.slane %v6791_v61, 4 }
 0x85a   :  { %v3180_v35 = vrot.slane %v6793_v31, 4  ;;  %v3186_v42 = vrot.slane %v6795_v63, 4  ;;  %v6804_v47 = vadd.f32 %v4725_v39, %v3120_v25  ;;  %v3151_v49 = vadd.f32 %v3150_v23, %v6780_v15 }
 0x85b   :  { %v3157_v21 = vadd.f32 %v3156_v19, %v6782_v59  ;;  %v3163_v16 = vadd.f32 %v3162_v5, %v6784_v37  ;;  %v3169_v26 = vadd.f32 %v3168_v13, %v6786_v6  ;;  %v3175_v38 = vadd.f32 %v3174_v7, %v6791_v61 }
 0x85c   :  { %v3181_v14 = vadd.f32 %v3180_v35, %v6793_v31  ;;  %v3187_v20 = vadd.f32 %v3186_v42, %v6795_v63  ;;  %v3232_v50 = vrot.slane %v3231_v27, 1  ;;  %v3152_v29 = vrot.slane %v3151_v49, 2 }
 0x85d   :  { %v3158_v48 = vrot.slane %v3157_v21, 2  ;;  %v3164_v0 = vrot.slane %v3163_v16, 2  ;;  %v3170_v39 = vrot.slane %v3169_v26, 2  ;;  %v3176_v45 = vrot.slane %v3175_v38, 2 }
 0x85e   :  { %v3182_v10 = vrot.slane %v3181_v14, 2  ;;  %v3188_v9 = vrot.slane %v3187_v20, 2  ;;  %v3153_v60 = vadd.f32 %v3152_v29, %v3151_v49  ;;  %v3192_v46 = vrot.slane %v6804_v47, 4 }
 0x85f   :  { %v3159_v33 = vadd.f32 %v3158_v48, %v3157_v21  ;;  %v3165_v44 = vadd.f32 %v3164_v0, %v3163_v16  ;;  %v3171_v43 = vadd.f32 %v3170_v39, %v3169_v26  ;;  %v3177_v36 = vadd.f32 %v3176_v45, %v3175_v38 }
 0x860   :  { %v3183_v57 = vadd.f32 %v3182_v10, %v3181_v14  ;;  %v3189_v12 = vadd.f32 %v3188_v9, %v3187_v20  ;;  %v3154_v11 = vrot.slane %v3153_v60, 1  ;;  %v3193_v25 = vadd.f32 %v3192_v46, %v6804_v47 }
 0x861   :  { %v3160_v8 = vrot.slane %v3159_v33, 1  ;;  %v3166_v30 = vrot.slane %v3165_v44, 1  ;;  %v3223_v2 = vadd.f32 %v3222_v17, %v6759_v22  ;;  %v6816_v23 = vadd.f32 %v3232_v50, %v3231_v27 }
 0x862   :  { %v3172_v19 = vrot.slane %v3171_v43, 1  ;;  %v3178_v5 = vrot.slane %v3177_v36, 1  ;;  %v3155_v13 = vadd.f32 %v3154_v11, %v3153_v60  ;;  %v3184_v7 = vrot.slane %v3183_v57, 1 }
 0x863   :  { %v3190_v35 = vrot.slane %v3189_v12, 1  ;;  %v3194_v42 = vrot.slane %v3193_v25, 2  ;;  %v3161_v49 = vadd.f32 %v3160_v8, %v3159_v33  ;;  %v3167_v21 = vadd.f32 %v3166_v30, %v3165_v44 }
 0x864   :  { %v3173_v16 = vadd.f32 %v3172_v19, %v3171_v43  ;;  %v3179_v26 = vadd.f32 %v3178_v5, %v3177_v36  ;;  %v3199_v14 = vadd.f32 %v3198_v58, %v6751_v24  ;;  %v3206_v20 = vrot.slane %v6772_v54, 2 }
 0x865   :  { %v3195_v38 = vadd.f32 %v3194_v42, %v3193_v25  ;;  %v3212_v17 = vrot.slane %v6777_v41, 2  ;;  %v3218_v27 = vrot.slane %v6789_v3, 2  ;;  %v3224_v50 = vrot.slane %v3223_v2, 2 }
 0x866   :  { %v3234_v29 = vrot.slane %v6763_v1, 4  ;;  %v3240_v48 = vrot.slane %v6765_v32, 4  ;;  %v3200_v39 = vrot.slane %v3199_v14, 2  ;;  %v3207_v45 = vadd.f32 %v3206_v20, %v6772_v54 }
 0x867   :  { %v3196_v0 = vrot.slane %v3195_v38, 1  ;;  %v3213_v10 = vadd.f32 %v3212_v17, %v6777_v41  ;;  %v3219_v9 = vadd.f32 %v3218_v27, %v6789_v3  ;;  %v3225_v58 = vadd.f32 %v3224_v50, %v3223_v2 }
 0x868   :  { %v3235_v60 = vadd.f32 %v3234_v29, %v6763_v1  ;;  %v3241_v33 = vadd.f32 %v3240_v48, %v6765_v32  ;;  %v3185_v44 = vadd.f32 %v3184_v7, %v3183_v57  ;;  %v3201_v46 = vadd.f32 %v3200_v39, %v3199_v14 }
 0x869   :  { %v3208_v43 = vrot.slane %v3207_v45, 1  ;;  %v3214_v36 = vrot.slane %v3213_v10, 1  ;;  %v3220_v11 = vrot.slane %v3219_v9, 1  ;;  %v3226_v8 = vrot.slane %v3225_v58, 1 }
 0x86a   :  { %v3236_v30 = vrot.slane %v3235_v60, 2  ;;  %v3242_v25 = vrot.slane %v3241_v33, 2  ;;  %v3191_v19 = vadd.f32 %v3190_v35, %v3189_v12  ;;  %v3197_v5 = vadd.f32 %v3196_v0, %v3195_v38 }
 0x86b   :  { %v3202_v54 = vrot.slane %v3201_v46, 1  ;;  %v3209_v42 = vadd.f32 %v3208_v43, %v3207_v45  ;;  %v3215_v41 = vadd.f32 %v3214_v36, %v3213_v10  ;;  %v3328_v2 = vpack.c.bf16 %v3155_v13, %v3155_v13 }
 0x86c   :  { %v3237_v20 = vadd.f32 %v3236_v30, %v3235_v60  ;;  %v3243_v3 = vadd.f32 %v3242_v25, %v3241_v33  ;;  %v3221_v27 = vadd.f32 %v3220_v11, %v3219_v9  ;;  %v3227_v50 = vadd.f32 %v3226_v8, %v3225_v58 }
 0x86d   :  { %v3203_v17 = vadd.f32 %v3202_v54, %v3201_v46  ;;  %v3329_v29 = vpack.c.bf16 %v3161_v49, %v3161_v49  ;;  %v3330_v14 = vpack.c.bf16 %v3167_v21, %v3167_v21  ;;  %v3331_v48 = vpack.c.bf16 %v3173_v16, %v3173_v16 }
 0x86e   :  { %v3238_v57 = vrot.slane %v3237_v20, 1  ;;  %v3244_v7 = vrot.slane %v3243_v3, 1  ;;  %v3332_v39 = vpack.c.bf16 %v3179_v26, %v3179_v26  ;;  %v3333_v28 = vpack.c.bf16 %v3185_v44, %v3185_v44 }
 0x86f   :  { %v3334_v53 = vpack.c.bf16 %v3191_v19, %v3191_v19  ;;  %v3336_v52 = vpack.c.bf16 %v3203_v17, %v3203_v17  ;;  %v3337_v38 = vpack.c.bf16 %v3209_v42, %v3209_v42  ;;  %v3338_v0 = vpack.c.bf16 %v3215_v41, %v3215_v41 }
 0x870   :  { %v3239_v12 = vadd.f32 %v3238_v57, %v3237_v20  ;;  %v3245_v35 = vadd.f32 %v3244_v7, %v3243_v3  ;;  %v3335_v45 = vpack.c.bf16 %v3197_v5, %v3197_v5  ;;  %v3339_v10 = vpack.c.bf16 %v3221_v27, %v3221_v27 }
 0x871   :  { %v3340_v60 = vpack.c.bf16 %v3227_v50, %v3227_v50  ;;  %v3341_v13 = vpack.c.bf16 %v6816_v23, %v6816_v23  ;;  %v3360_v58 = vunpack.c.l.b16 %v3328_v2  ;;  %v3361_v33 = vunpack.c.l.b16 %v3329_v29 }
 0x872   :  { %v3342_v9 = vpack.c.bf16 %v3239_v12, %v3239_v12  ;;  %v3343_v49 = vpack.c.bf16 %v3245_v35, %v3245_v35  ;;  %v3362_v21 = vunpack.c.l.b16 %v3330_v14  ;;  %v3363_v16 = vunpack.c.l.b16 %v3331_v48 }
 0x873   :  { %v3364_v26 = vunpack.c.l.b16 %v3332_v39  ;;  %v3365_v44 = vunpack.c.l.b16 %v3333_v28  ;;  %v3366_v46 = vunpack.c.l.b16 %v3334_v53  ;;  %v3368_v43 = vunpack.c.l.b16 %v3336_v52 }
 0x874   :  { %v3369_v36 = vunpack.c.l.b16 %v3337_v38  ;;  %v3370_v11 = vunpack.c.l.b16 %v3338_v0  ;;  %v3371_v8 = vunpack.c.l.b16 %v3339_v10  ;;  %v3372_v30 = vunpack.c.l.b16 %v3340_v60  ;;  %v5638_v10 = vld [vmem:[#allocation4 + $0x280] sm:$0xff]  }
 0x875   :  { %v3373_v25 = vunpack.c.l.b16 %v3341_v13  ;;  %v3374_v19 = vunpack.c.l.b16 %v3342_v9  ;;  %v3376_v5 = vsel %vm1992_vm1, %v3361_v33, %v3360_v58  ;;  %v3883_v54 = vpack.c.bf16 %v6782_v59, %v6780_v15  ;;  %v5639_v13 = vld [vmem:[#allocation4 + $0x288] sm:$0xff]   ;;  %v5641_v9 = vld [vmem:[#allocation4 + $0x298] sm:$0xff]   ;;  %v5644_v33 = vld [vmem:[#allocation4 + $0x2b0] sm:$0xff]  }
 0x876   :  { %v3383_v23 = vsel %vm1992_vm1, %v3369_v36, %v3368_v43  ;;  %v3884_v42 = vpack.c.bf16 %v6786_v6, %v6784_v37  ;;  %v3377_v28 = vsel %vm1994_vm2, %v3362_v21, %v3376_v5  ;;  %v3885_v53 = vpack.c.bf16 %v6793_v31, %v6791_v61  ;;  %v5643_v58 = vld [vmem:[#allocation4 + $0x2a8] sm:$0xff]   ;;  %v5645_v21 = vld [vmem:[#allocation4 + $0x2b8] sm:$0xff]   ;;  %v5732_v43 = vld [vmem:[#allocation7 + $0x6] ss:$0 sm:$0xff] }
 0x877   :  { %v3384_v52 = vsel %vm1994_vm2, %v3370_v11, %v3383_v23  ;;  %v3886_v41 = vpack.c.bf16 %v6804_v47, %v6795_v63  ;;  %v3378_v20 = vsel %vm1996_vm3, %v3363_v16, %v3377_v28  ;;  %v3887_v2 = vpack.c.bf16 %v6753_v18, %v6751_v24  ;;  %v5670_v15 = vld [vmem:[#allocation4 + $0x2c0] sm:$0xff]   ;;  %v5671_v59 = vld [vmem:[#allocation4 + $0x2c8] sm:$0xff]   ;;  %v5672_v24 = vld [vmem:[#allocation4 + $0x2d0] sm:$0xff]  }
 0x878   :  { %v3385_v3 = vsel %vm1996_vm3, %v3371_v8, %v3384_v52  ;;  %v3888_v17 = vpack.c.bf16 %v6757_v62, %v6755_v56  ;;  %v3379_v27 = vsel %vm1998_vm4, %v3364_v26, %v3378_v20  ;;  %v3889_v29 = vpack.c.bf16 %v6761_v55, %v6759_v22  ;;  %v5646_v52 = vld [vmem:[#allocation4 + $0x240] sm:$0xff]   ;;  %v5648_v20 = vld [vmem:[#allocation4 + $0x250] sm:$0xff]   ;;  %v5673_v18 = vld [vmem:[#allocation4 + $0x2d8] sm:$0xff]  }
 0x879   :  { %v3386_v50 = vsel %vm1998_vm4, %v3372_v30, %v3385_v3  ;;  %v3890_v57 = vpack.c.bf16 %v6765_v32, %v6763_v1  ;;  %v3367_v7 = vunpack.c.l.b16 %v3335_v45  ;;  %v3375_v14 = vunpack.c.l.b16 %v3343_v49  ;;  %v5640_v45 = vld [vmem:[#allocation4 + $0x290] sm:$0xff]   ;;  %v5642_v49 = vld [vmem:[#allocation4 + $0x2a0] sm:$0xff]   ;;  %v5649_v3 = vld [vmem:[#allocation4 + $0x258] sm:$0xff]  }
 0x87a   :  { %v3380_v48 = vsel %vm2000_vm5, %v3365_v44, %v3379_v27  ;;  %v3387_v39 = vsel %vm2000_vm5, %v3373_v25, %v3386_v50  ;;  %v5650_v27 = vld [vmem:[#allocation4 + $0x260] sm:$0xff]   ;;  %v5651_v50 = vld [vmem:[#allocation4 + $0x268] sm:$0xff]   ;;  %v5676_v22 = vld [vmem:[#allocation4 + $0x2f0] sm:$0xff]  }
 0x87b   :  { %v3381_v12 = vsel %vm2002_vm6, %v3366_v46, %v3380_v48  ;;  %v3388_v35 = vsel %vm2002_vm6, %v3374_v19, %v3387_v39  ;;  %v5654_v48 = vld [vmem:[#allocation4 + $0x340] sm:$0xff]   ;;  %v5675_v62 = vld [vmem:[#allocation4 + $0x2e8] sm:$0xff]   ;;  %v5677_v55 = vld [vmem:[#allocation4 + $0x2f8] sm:$0xff]  }
 0x87c   :  { %v3382_v38 = vsel %vm2004_vm7, %v3367_v7, %v3381_v12  ;;  %v3389_v0 = vsel %vm2004_vm7, %v3375_v14, %v3388_v35  ;;  %v5652_v7 = vld [vmem:[#allocation4 + $0x270] sm:$0xff]   ;;  %v5653_v14 = vld [vmem:[#allocation4 + $0x278] sm:$0xff]   ;;  %v5733_v12 = vld [vmem:[#allocation7 + $0x7] ss:$0 sm:$0xff] }
 0x87d   :  { %v3390_v60 = vpack.c.b16 %v3389_v0, %v3382_v38  ;;  %v5674_v56 = vld [vmem:[#allocation4 + $0x2e0] sm:$0xff]   ;;  %v4742_v32 = vld [vmem:[#allocation7 + $0x12] ss:$0 sm:$0xff] }
 0x87f   :  { %5287 = vmatmul.mubr.bf16.vlgmr.msra.gmra.mrb[52].mxu0 %v3390_v60 }
 0x880   :  { %5311 = vmatpush3.bf16.msra.mxu0 %v5638_v10  ;;  %5326 = vmatprep.mubr.msk.bf16.mxu0 %vm5839_vm0, %v7131_v34 }
 0x881   :  { %5312 = vmatprep.subr.bf16.mxu0 %v7131_v34 }
 0x884   :  { %5313 = vmatpush3.bf16.msra.mxu0 %v5639_v13 }
 0x885   :  { %5314 = vmatprep.subr.bf16.mxu0 %v7131_v34 }
 0x888   :  { %5315 = vmatpush3.bf16.msra.mxu0 %v5640_v45 }
 0x889   :  { %5316 = vmatprep.subr.bf16.mxu0 %v7131_v34 }
 0x88c   :  { %5317 = vmatpush3.bf16.msra.mxu0 %v5641_v9 }
 0x88d   :  { %5318 = vmatprep.subr.bf16.mxu0 %v7131_v34 }
 0x890   :  { %5319 = vmatpush3.bf16.msra.mxu0 %v5642_v49 }
 0x891   :  { %5320 = vmatprep.subr.bf16.mxu0 %v7131_v34 }
 0x894   :  { %5321 = vmatpush3.bf16.msra.mxu0 %v5643_v58 }
 0x895   :  { %5322 = vmatprep.subr.bf16.mxu0 %v7131_v34 }
 0x898   :  { %5323 = vmatpush3.bf16.msra.mxu0 %v5644_v33 }
 0x899   :  { %5324 = vmatprep.subr.bf16.mxu0 %v7131_v34 }
 0x89c   :  { %5325 = vmatpush3.bf16.msra.mxu0 %v5645_v21 }
 0x89d   :  { %5350 = vmatprep.subr.bf16.mxu0 %v7131_v34 }
 0x89f   :  { %5327 = vmatmul.mubr.bf16.vlgmr.msra.gmra.mrb[56].mxu0 %v6040_v40 }
 0x8a0   :  { %5366 = vmatprep.mubr.msk.bf16.mxu0 %vm5839_vm0, %v7131_v34  ;;  %5351 = vmatpush3.bf16.msra.mxu0 %v5670_v15 }
 0x8a1   :  { %5352 = vmatprep.subr.bf16.mxu0 %v7131_v34 }
 0x8a4   :  { %5353 = vmatpush3.bf16.msra.mxu0 %v5671_v59 }
 0x8a5   :  { %5354 = vmatprep.subr.bf16.mxu0 %v7131_v34 }
 0x8a8   :  { %5355 = vmatpush3.bf16.msra.mxu0 %v5672_v24 }
 0x8a9   :  { %5356 = vmatprep.subr.bf16.mxu0 %v7131_v34 }
 0x8ac   :  { %5357 = vmatpush3.bf16.msra.mxu0 %v5673_v18  ;;  %v5681_v18 = vld [vmem:[#allocation4 + $0x398] sm:$0xff]  }
 0x8ad   :  { %5358 = vmatprep.subr.bf16.mxu0 %v7131_v34 }
 0x8b0   :  { %5359 = vmatpush3.bf16.msra.mxu0 %v5674_v56 }
 0x8b1   :  { %5360 = vmatprep.subr.bf16.mxu0 %v7131_v34 }
 0x8b4   :  { %5361 = vmatpush3.bf16.msra.mxu0 %v5675_v62 }
 0x8b5   :  { %5362 = vmatprep.subr.bf16.mxu0 %v7131_v34 }
 0x8b8   :  { %5363 = vmatpush3.bf16.msra.mxu0 %v5676_v22 }
 0x8b9   :  { %5364 = vmatprep.subr.bf16.mxu0 %v7131_v34 }
 0x8bc   :  { %5365 = vmatpush3.bf16.msra.mxu0 %v5677_v55 }
 0x952   :  { %v3426_v16 = vpop.f32.mrb[52].mxu0 }
 0x953   :  { %v3433_v26 = vadd.f32 %v3426_v16, %v6738_v4  ;;  %v5288_v44 = vpop.f32.mrb[53].mxu0 }
 0x954   :  { %v3429_v46 = vpop.f32.mrb[54].mxu0 }
 0x955   :  { %v3435_v36 = vadd.f32 %v5732_v43, %v3433_v26  ;;  %v3434_v11 = vadd.f32 %v3429_v46, %v6741_v51  ;;  %v5289_v8 = vpop.f32.mrb[55].mxu0  ;;  %v5647_v51 = vld [vmem:[#allocation4 + $0x248] sm:$0xff]  }
 0x957   :  { %v3436_v30 = vadd.f32 %v5732_v43, %v3434_v11  ;;  %v3437_v25 = vmax.f32 %v3435_v36, 0.0 }
 0x959   :  { %v3438_v19 = vmax.f32 %v3436_v30, 0.0 }
 0x95b   :  { %v3439_v5 = vpack.c.bf16 %v3438_v19, %v3437_v25 }
 0x95d   :  { %5307 = vmatmul.mubr.bf16.vlgmr.msra.gmra.mrb[52].mxu1 %v3439_v5 }
 0x95e   :  { %5346 = vmatprep.mubr.msk.bf16.mxu1 %vm5839_vm0, %v7131_v34  ;;  %5331 = vmatpush3.bf16.msra.mxu1 %v5646_v52 }
 0x95f   :  { %5332 = vmatprep.subr.bf16.mxu1 %v7131_v34 }
 0x962   :  { %5333 = vmatpush3.bf16.msra.mxu1 %v5647_v51 }
 0x963   :  { %5334 = vmatprep.subr.bf16.mxu1 %v7131_v34 }
 0x966   :  { %5335 = vmatpush3.bf16.msra.mxu1 %v5648_v20 }
 0x967   :  { %5336 = vmatprep.subr.bf16.mxu1 %v7131_v34 }
 0x96a   :  { %5337 = vmatpush3.bf16.msra.mxu1 %v5649_v3 }
 0x96b   :  { %5338 = vmatprep.subr.bf16.mxu1 %v7131_v34 }
 0x96e   :  { %5339 = vmatpush3.bf16.msra.mxu1 %v5650_v27 }
 0x96f   :  { %5340 = vmatprep.subr.bf16.mxu1 %v7131_v34 }
 0x972   :  { %v6880_v40 = vpop.f32.mrb[56].mxu0  ;;  %5341 = vmatpush3.bf16.msra.mxu1 %v5651_v50  ;;  %v5734_v50 = vld [vmem:[#allocation7 + $0x8] ss:$0 sm:$0xff] }
 0x973   :  { %v5328_v23 = vpop.f32.mrb[57].mxu0  ;;  %5342 = vmatprep.subr.bf16.mxu1 %v7131_v34 }
 0x974   :  { %v6882_v28 = vpop.f32.mrb[58].mxu0 }
 0x975   :  { %v5329_v4 = vpop.f32.mrb[59].mxu0 }
 0x976   :  { %5343 = vmatpush3.bf16.msra.mxu1 %v5652_v7 }
 0x977   :  { %5344 = vmatprep.subr.bf16.mxu1 %v7131_v34 }
 0x97a   :  { %5345 = vmatpush3.bf16.msra.mxu1 %v5653_v14 }
 0x97b   :  { %5370 = vmatprep.subr.bf16.mxu1 %v5654_v48 }
 0xa30   :  { %v3474_v39 = vpop.f32.mrb[52].mxu1 }
 0xa31   :  { %v3475_v35 = vadd.f32 %v5733_v12, %v3474_v39  ;;  %v5308_v38 = vpop.f32.mrb[53].mxu1  ;;  %v5735_v39 = vld [vmem:[#allocation7 + $0x9] ss:$0 sm:$0xff] }
 0xa32   :  { %v3477_v0 = vpop.f32.mrb[54].mxu1 }
 0xa33   :  { %v3478_v10 = vadd.f32 %v5733_v12, %v3477_v0  ;;  %v5309_v60 = vpop.f32.mrb[55].mxu1  ;;  %v3481_v13 = vmax.f32 %v3475_v35, 0.0  ;;  %v5655_v0 = vld [vmem:[#allocation4 + $0x348] sm:$0xff]  }
 0xa34   :  { %v5656_v60 = vld [vmem:[#allocation4 + $0x350] sm:$0xff]  }
 0xa35   :  { %v3482_v45 = vmax.f32 %v3478_v10, 0.0  ;;  %v7132_v10 = vld [vmem:[#allocation12_spill] sm:$0xff] }
 0xa37   :  { %v3483_v9 = vadd.f32 %v3482_v45, %v3481_v13 }
 0xa39   :  { %v3484_v49 = vrot.slane %v3483_v9, 4 }
 0xa3b   :  { %v3485_v58 = vadd.f32 %v3484_v49, %v3483_v9  ;;  %v5659_v9 = vld [vmem:[#allocation4 + $0x368] sm:$0xff]   ;;  %v5660_v49 = vld [vmem:[#allocation4 + $0x370] sm:$0xff]  }
 0xa3d   :  { %v3486_v33 = vrot.slane %v3485_v58, 2 }
 0xa3f   :  { %v3487_v21 = vadd.f32 %v3486_v33, %v3485_v58  ;;  %v5661_v58 = vld [vmem:[#allocation4 + $0x378] sm:$0xff]   ;;  %v5663_v33 = vld [vmem:[#allocation4 + $0x308] sm:$0xff]  }
 0xa41   :  { %v3488_v16 = vrot.slane %v3487_v21, 1 }
 0xa43   :  { %v3489_v26 = vadd.f32 %v3488_v16, %v3487_v21  ;;  %v7133_v21 = vld [vmem:[#allocation13_spill] sm:$0xff]  ;;  %v7134_v16 = vld [vmem:[#allocation14_spill] sm:$0xff] }
 0xa45   :  { %v3490_v44 = vmul.f32 0.0625, %v3489_v26  ;;  %v5664_v26 = vld [vmem:[#allocation4 + $0x310] sm:$0xff]  }
 0xa47   :  { %v3491_v46 = vsub.f32 %v3481_v13, %v3490_v44  ;;  %v3492_v43 = vsub.f32 %v3482_v45, %v3490_v44  ;;  %v5657_v13 = vld [vmem:[#allocation4 + $0x358] sm:$0xff]   ;;  %v5658_v45 = vld [vmem:[#allocation4 + $0x360] sm:$0xff]  }
 0xa48   :  { %v5665_v44 = vld [vmem:[#allocation4 + $0x318] sm:$0xff]  }
 0xa49   :  { %v3493_v36 = vmul.f32 %v3491_v46, %v3491_v46  ;;  %v3494_v11 = vmul.f32 %v3492_v43, %v3492_v43 }
 0xa4b   :  { %v3495_v8 = vadd.f32 %v3494_v11, %v3493_v36  ;;  %v5666_v36 = vld [vmem:[#allocation4 + $0x320] sm:$0xff]   ;;  %v5667_v11 = vld [vmem:[#allocation4 + $0x328] sm:$0xff]  }
 0xa4d   :  { %v3496_v30 = vrot.slane %v3495_v8, 4 }
 0xa4f   :  { %v3497_v25 = vadd.f32 %v3496_v30, %v3495_v8  ;;  %v7137_v8 = vld [vmem:[#allocation17_spill] sm:$0xff]  ;;  %v7138_v30 = vld [vmem:[#allocation18_spill] sm:$0xff] }
 0xa51   :  { %v3498_v19 = vrot.slane %v3497_v25, 2 }
 0xa53   :  { %v3499_v5 = vadd.f32 %v3498_v19, %v3497_v25  ;;  %v5668_v25 = vld [vmem:[#allocation4 + $0x330] sm:$0xff]   ;;  %v5669_v19 = vld [vmem:[#allocation4 + $0x338] sm:$0xff]  }
 0xa55   :  { %v3500_v23 = vrot.slane %v3499_v5, 1 }
 0xa57   :  { %v3501_v4 = vadd.f32 %v3500_v23, %v3499_v5  ;;  %v7139_v5 = vld [vmem:[#allocation19_spill] sm:$0xff] }
 0xa59   :  { %v3502_v52 = vmul.f32 0.0625, %v3501_v4 }
 0xa5b   :  { %v3503_v51 = vadd.f32 1e-05, %v3502_v52 }
 0xa5d   :  { %5696 = vrsqrt.f32 %v3503_v51 }
 0xa67   :  { %v5697_v20 = vpop.eup %5696 }
 0xa68   :  { %v3505_v3 = vmul.f32 %v5697_v20, %v3491_v46  ;;  %v3506_v27 = vmul.f32 %v5697_v20, %v3492_v43  ;;  %v7135_v46 = vld [vmem:[#allocation15_spill] sm:$0xff]  ;;  %v7136_v43 = vld [vmem:[#allocation16_spill] sm:$0xff] }
 0xa6a   :  { %v3507_v7 = vmul.f32 %v5734_v50, %v3505_v3  ;;  %v3508_v14 = vmul.f32 %v5734_v50, %v3506_v27 }
 0xa6c   :  { %v3510_v12 = vadd.f32 %v5735_v39, %v3508_v14  ;;  %v3509_v35 = vadd.f32 %v5735_v39, %v3507_v7 }
 0xa6e   :  { %v3511_v38 = vpack.c.bf16 %v3510_v12, %v3509_v35  ;;  %v5678_v12 = vld [vmem:[#allocation4 + $0x380] sm:$0xff]  }
 0xa6f   :  { %5434 = vmatprep.subr.bf16.mxu0 %v5678_v12 }
 0xa70   :  { %5347 = vmatmul.mubr.bf16.vlgmr.msra.gmra.mrb[56].mxu1 %v3511_v38 }
 0xa71   :  { %5371 = vmatpush3.bf16.msra.mxu1 %v5654_v48  ;;  %5386 = vmatprep.mubr.bf16.mxu1 %v7132_v10  ;;  %v5662_v48 = vld [vmem:[#allocation4 + $0x300] sm:$0xff]   ;;  %v4743_v10 = vld [vmem:[#allocation7 + $0x13] ss:$0 sm:$0xff] }
 0xa72   :  { %5372 = vmatprep.subr.bf16.mxu1 %v5655_v0 }
 0xa75   :  { %5373 = vmatpush3.bf16.msra.mxu1 %v5655_v0 }
 0xa76   :  { %5374 = vmatprep.subr.bf16.mxu1 %v5656_v60 }
 0xa79   :  { %5375 = vmatpush3.bf16.msra.mxu1 %v5656_v60 }
 0xa7a   :  { %5376 = vmatprep.subr.bf16.mxu1 %v5657_v13 }
 0xa7d   :  { %5377 = vmatpush3.bf16.msra.mxu1 %v5657_v13 }
 0xa7e   :  { %5378 = vmatprep.subr.bf16.mxu1 %v5658_v45 }
 0xa81   :  { %5379 = vmatpush3.bf16.msra.mxu1 %v5658_v45  ;;  %v4744_v45 = vld [vmem:[#allocation7 + $0x14] ss:$0 sm:$0xff] }
 0xa82   :  { %5380 = vmatprep.subr.bf16.mxu1 %v5659_v9 }
 0xa85   :  { %5381 = vmatpush3.bf16.msra.mxu1 %v5659_v9 }
 0xa86   :  { %5382 = vmatprep.subr.bf16.mxu1 %v5660_v49 }
 0xa89   :  { %5383 = vmatpush3.bf16.msra.mxu1 %v5660_v49 }
 0xa8a   :  { %5384 = vmatprep.subr.bf16.mxu1 %v5661_v58 }
 0xa8d   :  { %5385 = vmatpush3.bf16.msra.mxu1 %v5661_v58 }
 0xa8e   :  { %5402 = vmatprep.subr.bf16.mxu1 %v5662_v48 }
 0xa90   :  { %5387 = vmatmul.mubr.bf16.vlgmr.msra.gmra.mrb[60].mxu1 %v7133_v21 }
 0xa91   :  { %5390 = vmatprep.mubr.bf16.mxu1 %v7134_v16  ;;  %5403 = vmatpush3.bf16.msra.mxu1 %v5662_v48 }
 0xa92   :  { %5404 = vmatprep.subr.bf16.mxu1 %v5663_v33 }
 0xa95   :  { %5405 = vmatpush3.bf16.msra.mxu1 %v5663_v33  ;;  %v6932_v33 = vld [vmem:[#allocation7 + $0x16] ss:$0 sm:$0xff] }
 0xa96   :  { %5406 = vmatprep.subr.bf16.mxu1 %v5664_v26 }
 0xa98   :  { %5391 = vmatmul.mubr.bf16.gmra.mrb[64].mxu1 %v7135_v46 }
 0xa99   :  { %5394 = vmatprep.mubr.bf16.mxu1 %v7136_v43  ;;  %5407 = vmatpush3.bf16.msra.mxu1 %v5664_v26  ;;  %v5679_v26 = vld [vmem:[#allocation4 + $0x388] sm:$0xff]  }
 0xa9a   :  { %5408 = vmatprep.subr.bf16.mxu1 %v5665_v44 }
 0xa9d   :  { %5409 = vmatpush3.bf16.msra.mxu1 %v5665_v44 }
 0xa9e   :  { %5410 = vmatprep.subr.bf16.mxu1 %v5666_v36 }
 0xaa0   :  { %5395 = vmatmul.mubr.bf16.gmra.mrb[68].mxu1 %v7137_v8 }
 0xaa1   :  { %5398 = vmatprep.mubr.bf16.mxu1 %v7138_v30  ;;  %5411 = vmatpush3.bf16.msra.mxu1 %v5666_v36  ;;  %v5680_v30 = vld [vmem:[#allocation4 + $0x390] sm:$0xff]  }
 0xaa2   :  { %5412 = vmatprep.subr.bf16.mxu1 %v5667_v11 }
 0xaa5   :  { %5413 = vmatpush3.bf16.msra.mxu1 %v5667_v11 }
 0xaa6   :  { %5414 = vmatprep.subr.bf16.mxu1 %v5668_v25 }
 0xaa8   :  { %5399 = vmatmul.mubr.bf16.gmra.mrb[72].mxu1 %v7139_v5 }
 0xaa9   :  { %5415 = vmatpush3.bf16.msra.mxu1 %v5668_v25  ;;  %5418 = vmatprep.mubr.bf16.mxu1 %v3883_v54 }
 0xaaa   :  { %5416 = vmatprep.subr.bf16.mxu1 %v5669_v19 }
 0xaad   :  { %5417 = vmatpush3.bf16.msra.mxu1 %v5669_v19 }
 0xab0   :  { %5419 = vmatmul.mubr.bf16.vlgmr.msra.gmra.mrb[60].mxu1 %v3884_v42 }
 0xab1   :  { %5422 = vmatprep.mubr.bf16.mxu1 %v3885_v53 }
 0xab8   :  { %5423 = vmatmul.mubr.bf16.gmra.mrb[64].mxu1 %v3886_v41 }
 0xab9   :  { %5426 = vmatprep.mubr.bf16.mxu1 %v3887_v2 }
 0xac0   :  { %5427 = vmatmul.mubr.bf16.gmra.mrb[68].mxu1 %v3888_v17 }
 0xac1   :  { %5430 = vmatprep.mubr.bf16.mxu1 %v3889_v29 }
 0xac8   :  { %5431 = vmatmul.mubr.bf16.gmra.mrb[72].mxu1 %v3890_v57 }
 0xb43   :  { %v3715_v1 = vpop.f32.mrb[56].mxu1 }
 0xb44   :  { %v3716_v37 = vadd.f32 %v3715_v1, %v6880_v40  ;;  %v5348_v6 = vpop.f32.mrb[57].mxu1 }
 0xb45   :  { %v3718_v61 = vpop.f32.mrb[58].mxu1 }
 0xb46   :  { %v3727_v31 = vadd.f32 %v4742_v32, %v3716_v37  ;;  %v3719_v63 = vadd.f32 %v3718_v61, %v6882_v28  ;;  %v5349_v47 = vpop.f32.mrb[59].mxu1 }
 0xb48   :  { %v3728_v54 = vadd.f32 %v4742_v32, %v3719_v63  ;;  %v3729_v42 = vmax.f32 %v3727_v31, 0.0  ;;  %v5682_v63 = vld [vmem:[#allocation4 + $0x3a0] sm:$0xff]  }
 0xb4a   :  { %v3730_v53 = vmax.f32 %v3728_v54, 0.0 }
 0xb4c   :  { %v3731_v41 = vadd.f32 %v3730_v53, %v3729_v42 }
 0xb4e   :  { %v3732_v2 = vrot.slane %v3731_v41, 4 }
 0xb50   :  { %v3733_v17 = vadd.f32 %v3732_v2, %v3731_v41 }
 0xb52   :  { %v3734_v29 = vrot.slane %v3733_v17, 2 }
 0xb54   :  { %v3735_v57 = vadd.f32 %v3734_v29, %v3733_v17  ;;  %v5683_v17 = vld [vmem:[#allocation4 + $0x3a8] sm:$0xff]  }
 0xb56   :  { %v3736_v34 = vrot.slane %v3735_v57, 1 }
 0xb58   :  { %v3737_v23 = vadd.f32 %v3736_v34, %v3735_v57 }
 0xb5a   :  { %v3738_v4 = vmul.f32 0.0625, %v3737_v23 }
 0xb5c   :  { %v3739_v52 = vsub.f32 %v3729_v42, %v3738_v4  ;;  %v3740_v51 = vsub.f32 %v3730_v53, %v3738_v4 }
 0xb5e   :  { %v3741_v40 = vmul.f32 %v3739_v52, %v3739_v52  ;;  %v3742_v20 = vmul.f32 %v3740_v51, %v3740_v51 }
 0xb60   :  { %v3743_v3 = vadd.f32 %v3742_v20, %v3741_v40 }
 0xb62   :  { %v3744_v27 = vrot.slane %v3743_v3, 4 }
 0xb64   :  { %v3745_v50 = vadd.f32 %v3744_v27, %v3743_v3  ;;  %v5684_v27 = vld [vmem:[#allocation4 + $0x3b0] sm:$0xff]  }
 0xb66   :  { %v3746_v28 = vrot.slane %v3745_v50, 2 }
 0xb68   :  { %v3747_v7 = vadd.f32 %v3746_v28, %v3745_v50 }
 0xb6a   :  { %v3748_v14 = vrot.slane %v3747_v7, 1 }
 0xb6c   :  { %v3749_v39 = vadd.f32 %v3748_v14, %v3747_v7 }
 0xb6e   :  { %v3750_v35 = vmul.f32 0.0625, %v3749_v39 }
 0xb70   :  { %v3751_v38 = vadd.f32 1e-05, %v3750_v35  ;;  %v5685_v35 = vld [vmem:[#allocation4 + $0x3b8] sm:$0xff]  }
 0xb72   :  { %5698 = vrsqrt.f32 %v3751_v38 }
 0xb7c   :  { %v5699_v0 = vpop.eup %5698 }
 0xb7d   :  { %v3753_v60 = vmul.f32 %v5699_v0, %v3739_v52  ;;  %v3754_v13 = vmul.f32 %v5699_v0, %v3740_v51 }
 0xb7f   :  { %v3760_v9 = vmul.f32 %v4743_v10, %v3753_v60  ;;  %v3761_v49 = vmul.f32 %v4743_v10, %v3754_v13 }
 0xb81   :  { %v3767_v58 = vadd.f32 %v4744_v45, %v3760_v9  ;;  %v3768_v48 = vadd.f32 %v4744_v45, %v3761_v49 }
 0xb83   :  { %v5420_v21 = vpop.f32.mrb[60].mxu1  ;;  %v3769_v16 = vpack.c.bf16 %v3768_v48, %v3767_v58 }
 0xb84   :  { %v4150_v44 = vpop.f32.mrb[61].mxu1  ;;  %v6938_v11 = vadd.f32 %v5420_v21, %v6932_v33 }
 0xb85   :  { %v6935_v46 = vadd.f32 %v6932_v33, %v4150_v44  ;;  %v5421_v43 = vpop.f32.mrb[62].mxu1  ;;  %5367 = vmatmul.mubr.bf16.vlgmr.msra.gmra.mrb[60].mxu0 %v3769_v16 }
 0xb86   :  { %v4153_v36 = vpop.f32.mrb[63].mxu1  ;;  %5435 = vmatpush3.bf16.msra.mxu0 %v5678_v12  ;;  %v6945_v19 = vadd.f32 %v5421_v43, %v6932_v33  ;;  %v4236_v15 = vmax.f32 %v6938_v11, 0.0 }
 0xb87   :  { %v6941_v8 = vadd.f32 %v6932_v33, %v4153_v36  ;;  %5436 = vmatprep.subr.bf16.mxu0 %v5679_v26  ;;  %v4234_v25 = vmax.f32 %v6935_v46, 0.0 }
 0xb88   :  { %v4237_v62 = vmax.f32 %v6945_v19, 0.0 }
 0xb89   :  { %v4235_v5 = vmax.f32 %v6941_v8, 0.0 }
 0xb8a   :  { %5437 = vmatpush3.bf16.msra.mxu0 %v5679_v26 }
 0xb8b   :  { %v4250_v59 = vadd.f32 %v4235_v5, %v4234_v25  ;;  %v5424_v24 = vpop.f32.mrb[64].mxu1  ;;  %5438 = vmatprep.subr.bf16.mxu0 %v5680_v30 }
 0xb8c   :  { %v4166_v56 = vpop.f32.mrb[65].mxu1  ;;  %v6960_v37 = vadd.f32 %v5424_v24, %v6932_v33 }
 0xb8d   :  { %v4251_v22 = vadd.f32 %v4250_v59, %v4236_v15  ;;  %v6957_v55 = vadd.f32 %v6932_v33, %v4166_v56  ;;  %v5425_v1 = vpop.f32.mrb[66].mxu1 }
 0xb8e   :  { %v4169_v32 = vpop.f32.mrb[67].mxu1  ;;  %5439 = vmatpush3.bf16.msra.mxu0 %v5680_v30  ;;  %v6971_v54 = vadd.f32 %v5425_v1, %v6932_v33  ;;  %v4240_v53 = vmax.f32 %v6960_v37, 0.0 }
 0xb8f   :  { %v4238_v6 = vmax.f32 %v6957_v55, 0.0  ;;  %v4252_v61 = vadd.f32 %v4251_v22, %v4237_v62  ;;  %v6966_v31 = vadd.f32 %v6932_v33, %v4169_v32  ;;  %5440 = vmatprep.subr.bf16.mxu0 %v5681_v18 }
 0xb90   :  { %v4241_v57 = vmax.f32 %v6971_v54, 0.0 }
 0xb91   :  { %v4253_v47 = vadd.f32 %v4252_v61, %v4238_v6  ;;  %v4239_v42 = vmax.f32 %v6966_v31, 0.0 }
 0xb92   :  { %5441 = vmatpush3.bf16.msra.mxu0 %v5681_v18 }
 0xb93   :  { %v4254_v41 = vadd.f32 %v4253_v47, %v4239_v42  ;;  %v5428_v2 = vpop.f32.mrb[68].mxu1  ;;  %5442 = vmatprep.subr.bf16.mxu0 %v5682_v63 }
 0xb94   :  { %v4182_v29 = vpop.f32.mrb[69].mxu1  ;;  %v4228_v51 = vadd.f32 %v5428_v2, %v6932_v33 }
 0xb95   :  { %v4255_v34 = vadd.f32 %v4254_v41, %v4240_v53  ;;  %v4226_v23 = vadd.f32 %v6932_v33, %v4182_v29  ;;  %v5429_v4 = vpop.f32.mrb[70].mxu1 }
 0xb96   :  { %v4185_v52 = vpop.f32.mrb[71].mxu1  ;;  %5443 = vmatpush3.bf16.msra.mxu0 %v5682_v63  ;;  %v4229_v28 = vadd.f32 %v5429_v4, %v6932_v33  ;;  %v4244_v14 = vmax.f32 %v4228_v51, 0.0 }
 0xb97   :  { %v4242_v40 = vmax.f32 %v4226_v23, 0.0  ;;  %v4256_v20 = vadd.f32 %v4255_v34, %v4241_v57  ;;  %v4227_v3 = vadd.f32 %v6932_v33, %v4185_v52  ;;  %5444 = vmatprep.subr.bf16.mxu0 %v5683_v17 }
 0xb98   :  { %v4245_v0 = vmax.f32 %v4229_v28, 0.0 }
 0xb99   :  { %v4257_v50 = vadd.f32 %v4256_v20, %v4242_v40  ;;  %v4243_v7 = vmax.f32 %v4227_v3, 0.0 }
 0xb9a   :  { %5445 = vmatpush3.bf16.msra.mxu0 %v5683_v17 }
 0xb9b   :  { %v4258_v39 = vadd.f32 %v4257_v50, %v4243_v7  ;;  %v5432_v12 = vpop.f32.mrb[72].mxu1  ;;  %5446 = vmatprep.subr.bf16.mxu0 %v5684_v27 }
 0xb9c   :  { %v4198_v38 = vpop.f32.mrb[73].mxu1  ;;  %v4232_v9 = vadd.f32 %v5432_v12, %v6932_v33 }
 0xb9d   :  { %v4259_v10 = vadd.f32 %v4258_v39, %v4244_v14  ;;  %v4230_v60 = vadd.f32 %v6932_v33, %v4198_v38  ;;  %v5433_v13 = vpop.f32.mrb[74].mxu1 }
 0xb9e   :  { %v4201_v45 = vpop.f32.mrb[75].mxu1  ;;  %5447 = vmatpush3.bf16.msra.mxu0 %v5684_v27  ;;  %v4233_v16 = vadd.f32 %v5433_v13, %v6932_v33  ;;  %v4248_v44 = vmax.f32 %v4232_v9, 0.0 }
 0xb9f   :  { %v4246_v49 = vmax.f32 %v4230_v60, 0.0  ;;  %v4260_v58 = vadd.f32 %v4259_v10, %v4245_v0  ;;  %v4231_v48 = vadd.f32 %v6932_v33, %v4201_v45  ;;  %5448 = vmatprep.subr.bf16.mxu0 %v5685_v35 }
 0xba0   :  { %v4249_v36 = vmax.f32 %v4233_v16, 0.0 }
 0xba1   :  { %v4261_v21 = vadd.f32 %v4260_v58, %v4246_v49  ;;  %v4247_v26 = vmax.f32 %v4231_v48, 0.0 }
 0xba2   :  { %5449 = vmatpush3.bf16.msra.mxu0 %v5685_v35 }
 0xba3   :  { %v4262_v43 = vadd.f32 %v4261_v21, %v4247_v26 }
 0xba5   :  { %v4263_v30 = vadd.f32 %v4262_v43, %v4248_v44 }
 0xba7   :  { %v4264_v59 = vadd.f32 %v4263_v30, %v4249_v36 }
 0xba9   :  { %v4265_v24 = vrot.slane %v4264_v59, 4 }
 0xbab   :  { %v4266_v18 = vadd.f32 %v4265_v24, %v4264_v59  ;;  %v4771_v59 = vld [vmem:[#allocation7 + $0x17] ss:$0 sm:$0xff] }
 0xbad   :  { %v4267_v56 = vrot.slane %v4266_v18, 2 }
 0xbaf   :  { %v4268_v22 = vadd.f32 %v4267_v56, %v4266_v18 }
 0xbb1   :  { %v4269_v1 = vrot.slane %v4268_v22, 1 }
 0xbb3   :  { %v4270_v32 = vadd.f32 %v4269_v1, %v4268_v22  ;;  %v4772_v1 = vld [vmem:[#allocation7 + $0x18] ss:$0 sm:$0xff] }
 0xbb5   :  { %v4271_v37 = vmul.f32 0.0078125, %v4270_v32 }
 0xbb7   :  { %v4272_v61 = vsub.f32 %v4234_v25, %v4271_v37  ;;  %v4273_v33 = vsub.f32 %v4235_v5, %v4271_v37  ;;  %v4274_v31 = vsub.f32 %v4236_v15, %v4271_v37  ;;  %v4275_v63 = vsub.f32 %v4237_v62, %v4271_v37 }
 0xbb8   :  { %v4276_v47 = vsub.f32 %v4238_v6, %v4271_v37  ;;  %v4277_v54 = vsub.f32 %v4239_v42, %v4271_v37  ;;  %v4278_v41 = vsub.f32 %v4240_v53, %v4271_v37  ;;  %v6994_v2 = vsub.f32 %v4241_v57, %v4271_v37 }
 0xbb9   :  { %v6996_v17 = vsub.f32 %v4242_v40, %v4271_v37  ;;  %v6998_v46 = vsub.f32 %v4243_v7, %v4271_v37  ;;  %v7000_v25 = vsub.f32 %v4244_v14, %v4271_v37  ;;  %v7002_v8 = vsub.f32 %v4245_v0, %v4271_v37 }
 0xbba   :  { %v7004_v11 = vsub.f32 %v4246_v49, %v4271_v37  ;;  %v4285_v5 = vsub.f32 %v4247_v26, %v4271_v37  ;;  %v7006_v19 = vsub.f32 %v4248_v44, %v4271_v37  ;;  %v7008_v15 = vsub.f32 %v4249_v36, %v4271_v37 }
 0xbbb   :  { %v4288_v62 = vmul.f32 %v4272_v61, %v4272_v61  ;;  %v4289_v55 = vmul.f32 %v4273_v33, %v4273_v33  ;;  %v4290_v6 = vmul.f32 %v4274_v31, %v4274_v31  ;;  %v4291_v53 = vmul.f32 %v4275_v63, %v4275_v63 }
 0xbbc   :  { %v4292_v57 = vmul.f32 %v4276_v47, %v4276_v47  ;;  %v4293_v23 = vmul.f32 %v4277_v54, %v4277_v54  ;;  %v4294_v52 = vmul.f32 %v4278_v41, %v4278_v41  ;;  %v4295_v40 = vmul.f32 %v6994_v2, %v6994_v2 }
 0xbbd   :  { %v4304_v42 = vadd.f32 %v4289_v55, %v4288_v62  ;;  %v4296_v3 = vmul.f32 %v6996_v17, %v6996_v17  ;;  %v4297_v50 = vmul.f32 %v6998_v46, %v6998_v46  ;;  %v4298_v7 = vmul.f32 %v7000_v25, %v7000_v25 }
 0xbbe   :  { %v4299_v39 = vmul.f32 %v7002_v8, %v7002_v8  ;;  %v4300_v35 = vmul.f32 %v7004_v11, %v7004_v11  ;;  %v4301_v0 = vmul.f32 %v4285_v5, %v4285_v5  ;;  %v4302_v60 = vmul.f32 %v7006_v19, %v7006_v19 }
 0xbbf   :  { %v4305_v29 = vadd.f32 %v4304_v42, %v4290_v6  ;;  %v4303_v45 = vmul.f32 %v7008_v15, %v7008_v15 }
 0xbc1   :  { %v4306_v34 = vadd.f32 %v4305_v29, %v4291_v53 }
 0xbc3   :  { %v4307_v4 = vadd.f32 %v4306_v34, %v4292_v57 }
 0xbc5   :  { %v4308_v51 = vadd.f32 %v4307_v4, %v4293_v23 }
 0xbc7   :  { %v4309_v20 = vadd.f32 %v4308_v51, %v4294_v52 }
 0xbc9   :  { %v4310_v27 = vadd.f32 %v4309_v20, %v4295_v40 }
 0xbcb   :  { %v4311_v28 = vadd.f32 %v4310_v27, %v4296_v3 }
 0xbcd   :  { %v4312_v14 = vadd.f32 %v4311_v28, %v4297_v50 }
 0xbcf   :  { %v4313_v12 = vadd.f32 %v4312_v14, %v4298_v7 }
 0xbd1   :  { %v4314_v38 = vadd.f32 %v4313_v12, %v4299_v39 }
 0xbd3   :  { %v4315_v10 = vadd.f32 %v4314_v38, %v4300_v35 }
 0xbd5   :  { %v4316_v13 = vadd.f32 %v4315_v10, %v4301_v0 }
 0xbd7   :  { %v4317_v9 = vadd.f32 %v4316_v13, %v4302_v60 }
 0xbd9   :  { %v4318_v49 = vadd.f32 %v4317_v9, %v4303_v45 }
 0xbdb   :  { %v4319_v58 = vrot.slane %v4318_v49, 4 }
 0xbdd   :  { %v4320_v48 = vadd.f32 %v4319_v58, %v4318_v49 }
 0xbdf   :  { %v4321_v21 = vrot.slane %v4320_v48, 2 }
 0xbe1   :  { %v4322_v16 = vadd.f32 %v4321_v21, %v4320_v48 }
 0xbe3   :  { %v4323_v26 = vrot.slane %v4322_v16, 1 }
 0xbe5   :  { %v4324_v44 = vadd.f32 %v4323_v26, %v4322_v16 }
 0xbe7   :  { %v4325_v43 = vmul.f32 0.0078125, %v4324_v44 }
 0xbe9   :  { %v4326_v36 = vadd.f32 1e-05, %v4325_v43 }
 0xbeb   :  { %5700 = vrsqrt.f32 %v4326_v36 }
 0xbf5   :  { %v5701_v30 = vpop.eup %5700 }
 0xbf6   :  { %v4341_v24 = vmul.f32 %v5701_v30, %v4285_v5  ;;  %v4328_v18 = vmul.f32 %v5701_v30, %v4272_v61  ;;  %v4329_v56 = vmul.f32 %v5701_v30, %v4273_v33  ;;  %v4330_v22 = vmul.f32 %v5701_v30, %v4274_v31 }
 0xbf7   :  { %v4331_v32 = vmul.f32 %v5701_v30, %v4275_v63  ;;  %v4332_v37 = vmul.f32 %v5701_v30, %v4276_v47  ;;  %v4333_v62 = vmul.f32 %v5701_v30, %v4277_v54  ;;  %v4334_v55 = vmul.f32 %v5701_v30, %v4278_v41 }
 0xbf8   :  { %v4362_v6 = vmul.f32 %v4771_v59, %v4341_v24  ;;  %v4349_v42 = vmul.f32 %v4771_v59, %v4328_v18  ;;  %v4350_v53 = vmul.f32 %v4771_v59, %v4329_v56  ;;  %v4351_v29 = vmul.f32 %v4771_v59, %v4330_v22  ;;  %v4773_v24 = vld [vmem:[#allocation7 + $0x19] ss:$0 sm:$0xff] }
 0xbf9   :  { %v4352_v57 = vmul.f32 %v4771_v59, %v4331_v32  ;;  %v4353_v34 = vmul.f32 %v4771_v59, %v4332_v37  ;;  %v4354_v23 = vmul.f32 %v4771_v59, %v4333_v62  ;;  %v4335_v4 = vmul.f32 %v5701_v30, %v6994_v2 }
 0xbfa   :  { %v4370_v52 = vadd.f32 %v4772_v1, %v4349_v42  ;;  %v4371_v51 = vadd.f32 %v4772_v1, %v4350_v53  ;;  %v4372_v5 = vadd.f32 %v4772_v1, %v4351_v29  ;;  %v4355_v61 = vmul.f32 %v4771_v59, %v4334_v55 }
 0xbfb   :  { %v4373_v33 = vadd.f32 %v4772_v1, %v4352_v57  ;;  %v4374_v31 = vadd.f32 %v4772_v1, %v4353_v34  ;;  %v4375_v40 = vadd.f32 %v4772_v1, %v4354_v23  ;;  %v4356_v63 = vmul.f32 %v4771_v59, %v4335_v4 }
 0xbfc   :  { %v4386_v47 = vpack.c.bf16 %v4371_v51, %v4370_v52  ;;  %v4376_v54 = vadd.f32 %v4772_v1, %v4355_v61  ;;  %v4336_v41 = vmul.f32 %v5701_v30, %v6996_v17  ;;  %v4337_v20 = vmul.f32 %v5701_v30, %v6998_v46 }
 0xbfd   :  { %v4387_v3 = vpack.c.bf16 %v4373_v33, %v4372_v5  ;;  %v4388_v27 = vpack.c.bf16 %v4375_v40, %v4374_v31  ;;  %v4377_v50 = vadd.f32 %v4772_v1, %v4356_v63  ;;  %v4338_v28 = vmul.f32 %v5701_v30, %v7000_v25 }
 0xbfe   :  { %5450 = vmatprep.mubr.bf16.mxu0 %v4386_v47  ;;  %v4357_v2 = vmul.f32 %v4771_v59, %v4336_v41  ;;  %v4358_v7 = vmul.f32 %v4771_v59, %v4337_v20  ;;  %v4339_v14 = vmul.f32 %v5701_v30, %v7002_v8  ;;  %v4340_v39 = vmul.f32 %v5701_v30, %v7004_v11 }
 0xbff   :  { %5451 = vmatmul.mubr.bf16.vlgmr.msra.gmra.mrb[64].mxu0 %v4387_v3  ;;  %v4389_v12 = vpack.c.bf16 %v4377_v50, %v4376_v54  ;;  %v4359_v35 = vmul.f32 %v4771_v59, %v4338_v28  ;;  %v4383_v38 = vadd.f32 %v4772_v1, %v4362_v6  ;;  %v4342_v17 = vmul.f32 %v5701_v30, %v7006_v19  ;;  %v4745_v19 = vld [vmem:[#allocation7 + $0x15] ss:$0 sm:$0xff] }
 0xc00   :  { %5454 = vmatprep.mubr.bf16.mxu0 %v4388_v27  ;;  %v4378_v46 = vadd.f32 %v4772_v1, %v4357_v2  ;;  %v4379_v0 = vadd.f32 %v4772_v1, %v4358_v7  ;;  %v4360_v10 = vmul.f32 %v4771_v59, %v4339_v14  ;;  %v4361_v60 = vmul.f32 %v4771_v59, %v4340_v39 }
 0xc01   :  { %v4380_v13 = vadd.f32 %v4772_v1, %v4359_v35  ;;  %v4343_v25 = vmul.f32 %v5701_v30, %v7008_v15  ;;  %v4363_v45 = vmul.f32 %v4771_v59, %v4342_v17 }
 0xc02   :  { %v4390_v9 = vpack.c.bf16 %v4379_v0, %v4378_v46  ;;  %v4381_v49 = vadd.f32 %v4772_v1, %v4360_v10  ;;  %v4382_v8 = vadd.f32 %v4772_v1, %v4361_v60 }
 0xc03   :  { %v4364_v58 = vmul.f32 %v4771_v59, %v4343_v25  ;;  %v4384_v11 = vadd.f32 %v4772_v1, %v4363_v45 }
 0xc04   :  { %v4391_v48 = vpack.c.bf16 %v4381_v49, %v4380_v13  ;;  %v4392_v21 = vpack.c.bf16 %v4383_v38, %v4382_v8 }
 0xc05   :  { %v4385_v16 = vadd.f32 %v4772_v1, %v4364_v58 }
 0xc07   :  { %5455 = vmatmul.mubr.bf16.gmra.mrb[68].mxu0 %v4389_v12  ;;  %v4393_v26 = vpack.c.bf16 %v4385_v16, %v4384_v11 }
 0xc08   :  { %5458 = vmatprep.mubr.bf16.mxu0 %v4390_v9 }
 0xc0f   :  { %5459 = vmatmul.mubr.bf16.gmra.mrb[72].mxu0 %v4391_v48 }
 0xc10   :  { %5462 = vmatprep.mubr.bf16.mxu0 %v4392_v21 }
 0xc17   :  { %5463 = vmatmul.mubr.bf16.gmra.mrb[76].mxu0 %v4393_v26 }
 0xc58   :  { %v3873_v44 = vpop.f32.mrb[60].mxu0 }
 0xc59   :  { %v3874_v43 = vadd.f32 %v4745_v19, %v3873_v44  ;;  %v5368_v15 = vpop.f32.mrb[61].mxu0 }
 0xc5a   :  { %v3876_v36 = vpop.f32.mrb[62].mxu0 }
 0xc5b   :  { %3881 = vst.msk [vmem:[%s7108_s4] sm:$0xff] %vm3880_vm8, %v3874_v43  ;;  %v3877_v30 = vadd.f32 %v4745_v19, %v3876_v36  ;;  %v5369_v59 = vpop.f32.mrb[63].mxu0 }
 0xc5d   :  { %3882 = vst.msk [vmem:[%s7108_s4 + $0x8] sm:$0xff] %vm3880_vm8, %v3877_v30 }
 0xcd2   :  { %v5452_v18 = vpop.f32.mrb[64].mxu0 }
 0xcd3   :  { %v4506_v56 = vadd.f32 %v5452_v18, %v4773_v24  ;;  %v4497_v22 = vpop.f32.mrb[65].mxu0 }
 0xcd4   :  { %v4498_v1 = vadd.f32 %v4773_v24, %v4497_v22  ;;  %v5453_v32 = vpop.f32.mrb[66].mxu0 }
 0xcd5   :  { %4563 = vst.msk [vmem:[%s7109_s5 + $0x10] sm:$0xff] %vm4560_vm9, %v4506_v56  ;;  %v4509_v37 = vadd.f32 %v5453_v32, %v4773_v24  ;;  %v4500_v62 = vpop.f32.mrb[67].mxu0 }
 0xcd6   :  { %4561 = vst.msk [vmem:[%s7109_s5] sm:$0xff] %vm4560_vm9, %v4498_v1  ;;  %v4501_v55 = vadd.f32 %v4773_v24, %v4500_v62 }
 0xcd7   :  { %4564 = vst.msk [vmem:[%s7109_s5 + $0x18] sm:$0xff] %vm4560_vm9, %v4509_v37 }
 0xcd8   :  { %4562 = vst.msk [vmem:[%s7109_s5 + $0x8] sm:$0xff] %vm4560_vm9, %v4501_v55 }
 0xcda   :  { %v5456_v6 = vpop.f32.mrb[68].mxu0 }
 0xcdb   :  { %v4522_v42 = vadd.f32 %v5456_v6, %v4773_v24  ;;  %v4513_v53 = vpop.f32.mrb[69].mxu0 }
 0xcdc   :  { %v4514_v29 = vadd.f32 %v4773_v24, %v4513_v53  ;;  %v5457_v57 = vpop.f32.mrb[70].mxu0 }
 0xcdd   :  { %4567 = vst.msk [vmem:[%s7109_s5 + $0x30] sm:$0xff] %vm4560_vm9, %v4522_v42  ;;  %v4525_v34 = vadd.f32 %v5457_v57, %v4773_v24  ;;  %v4516_v23 = vpop.f32.mrb[71].mxu0 }
 0xcde   :  { %4565 = vst.msk [vmem:[%s7109_s5 + $0x20] sm:$0xff] %vm4560_vm9, %v4514_v29  ;;  %v4517_v4 = vadd.f32 %v4773_v24, %v4516_v23 }
 0xcdf   :  { %4568 = vst.msk [vmem:[%s7109_s5 + $0x38] sm:$0xff] %vm4560_vm9, %v4525_v34 }
 0xce0   :  { %4566 = vst.msk [vmem:[%s7109_s5 + $0x28] sm:$0xff] %vm4560_vm9, %v4517_v4 }
 0xce2   :  { %v5460_v52 = vpop.f32.mrb[72].mxu0 }
 0xce3   :  { %v4538_v51 = vadd.f32 %v5460_v52, %v4773_v24  ;;  %v4529_v5 = vpop.f32.mrb[73].mxu0 }
 0xce4   :  { %v4530_v61 = vadd.f32 %v4773_v24, %v4529_v5  ;;  %v5461_v33 = vpop.f32.mrb[74].mxu0 }
 0xce5   :  { %4571 = vst.msk [vmem:[%s7109_s5 + $0x50] sm:$0xff] %vm4560_vm9, %v4538_v51  ;;  %v4541_v31 = vadd.f32 %v5461_v33, %v4773_v24  ;;  %v4532_v40 = vpop.f32.mrb[75].mxu0 }
 0xce6   :  { %4569 = vst.msk [vmem:[%s7109_s5 + $0x40] sm:$0xff] %vm4560_vm9, %v4530_v61  ;;  %v4533_v63 = vadd.f32 %v4773_v24, %v4532_v40 }
 0xce7   :  { %4572 = vst.msk [vmem:[%s7109_s5 + $0x58] sm:$0xff] %vm4560_vm9, %v4541_v31 }
 0xce8   :  { %4570 = vst.msk [vmem:[%s7109_s5 + $0x48] sm:$0xff] %vm4560_vm9, %v4533_v63 }
 0xcea   :  { %v5464_v47 = vpop.f32.mrb[76].mxu0 }
 0xceb   :  { %v4554_v54 = vadd.f32 %v5464_v47, %v4773_v24  ;;  %v4545_v41 = vpop.f32.mrb[77].mxu0 }
 0xcec   :  { %v4546_v20 = vadd.f32 %v4773_v24, %v4545_v41  ;;  %v5465_v3 = vpop.f32.mrb[78].mxu0 }
 0xced   :  { %4575 = vst.msk [vmem:[%s7109_s5 + $0x70] sm:$0xff] %vm4560_vm9, %v4554_v54  ;;  %v4557_v27 = vadd.f32 %v5465_v3, %v4773_v24  ;;  %v4548_v50 = vpop.f32.mrb[79].mxu0 }
 0xcee   :  { %4573 = vst.msk [vmem:[%s7109_s5 + $0x60] sm:$0xff] %vm4560_vm9, %v4546_v20  ;;  %v4549_v28 = vadd.f32 %v4773_v24, %v4548_v50 }
 0xcef   :  { %4576 = vst.msk [vmem:[%s7109_s5 + $0x78] sm:$0xff] %vm4560_vm9, %v4557_v27 }
 0xcf0   :  { %4574 = vst.msk [vmem:[%s7109_s5 + $0x68] sm:$0xff] %vm4560_vm9, %v4549_v28 }
 0xcf1   :  { %4585 = vsyncpa [#allocation3], 1 }
 0xcf2   :  { %4586 = vsyncpa [#allocation5], 1 }
 0xcf3   :  { %4587 = vsyncpa [#allocation8], 1 }

</bundles_post_ra>
